<compile_context>
chip_gen: v7x
topology: tpu7x:2x2x1
jax: 0.10.0
libtpu: 0.0.40
codegen_flags: <defaults>
</compile_context>

<pallas_src>
import jax
import jax.numpy as jnp
from jax.experimental import pallas as pl
from jax.experimental.pallas import tpu as pltpu

EPS = 1e-5
MATMUL_DTYPE = jnp.bfloat16      # MXU operand dtype; accumulation is f32.


# ---------------------------------------------------------------------------
# kernels — each grid step processes one image: grid=(N,), "parallel"
# ---------------------------------------------------------------------------
def _bn_relu(a, aff_ref):
    """a: (M, C) f32; aff_ref: (2, C) rows = (scale, shift). f32 VPU math."""
    return jnp.maximum(a * aff_ref[0:1, :] + aff_ref[1:2, :], 0.0)


def _stats_epilogue(h, h_ref, s_ref, q_ref):
    """Store conv output + fused per-tile BN partial sums (single pass over h)."""
    _, H, W, C = h_ref.shape
    h_ref[0] = h.reshape(H, W, C)
    s_ref[0] = jnp.sum(h, axis=0, keepdims=True)
    q_ref[0] = jnp.sum(h * h, axis=0, keepdims=True)


def conv1_kernel(x_ref, w1_ref, h1_ref, s1_ref, q1_ref):
    """1x1 conv (Ci -> Cm) + fused partial BN1 statistics."""
    _, H, W, Ci = x_ref.shape
    x = x_ref[0].reshape(H * W, Ci).astype(MATMUL_DTYPE)
    h = jnp.dot(x, w1_ref[...], preferred_element_type=jnp.float32)
    _stats_epilogue(h, h1_ref, s1_ref, q1_ref)


def conv2_kernel(h1_ref, aff1_ref, w2_ref, h2_ref, s2_ref, q2_ref):
    """BN1+ReLU -> 3x3 conv (stride=1, pad=1) + fused partial BN2 statistics.

    The 3x3 conv is 3 MXU matmuls with K=3*Cm (one per kernel row) instead of
    9 matmuls with K=Cm.
    """
    _, H, W, Cm = h1_ref.shape
    z = _bn_relu(h1_ref[0].reshape(H * W, Cm), aff1_ref)
    z = z.astype(MATMUL_DTYPE).reshape(H, W, Cm)

    # 1-pixel zero halo (post-BN/ReLU zeros == true conv padding); only the
    # thin border is materialised — never a full-tensor zero fill.
    zr = jnp.zeros((1, W, Cm), MATMUL_DTYPE)
    zp = jnp.concatenate([zr, z, zr], axis=0)                  # (H+2, W,   Cm)
    zc = jnp.zeros((H + 2, 1, Cm), MATMUL_DTYPE)
    zp = jnp.concatenate([zc, zp, zc], axis=1)                 # (H+2, W+2, Cm)

    acc = jnp.zeros((H * W, Cm), jnp.float32)
    for dy in range(3):                                        # static unroll
        rows = zp[dy:dy + H]                                   # (H, W+2, Cm)
        patch = jnp.concatenate(
            [rows[:, dx:dx + W, :] for dx in range(3)], axis=-1)   # (H, W, 3*Cm)
        acc = acc + jnp.dot(patch.reshape(H * W, 3 * Cm), w2_ref[dy],
                            preferred_element_type=jnp.float32)
    _stats_epilogue(acc, h2_ref, s2_ref, q2_ref)


def conv3_kernel(h2_ref, aff2_ref, w3_ref, h3_ref, s3_ref, q3_ref):
    """BN2+ReLU -> 1x1 conv (Cm -> 4*Cm) + fused partial BN3 statistics."""
    _, H, W, Cm = h2_ref.shape
    z = _bn_relu(h2_ref[0].reshape(H * W, Cm), aff2_ref)
    h = jnp.dot(z.astype(MATMUL_DTYPE), w3_ref[...],
                preferred_element_type=jnp.float32)
    _stats_epilogue(h, h3_ref, s3_ref, q3_ref)


def residual_kernel(h3_ref, x_ref, aff3_ref, out_ref):
    """BN3 -> + identity -> ReLU (pure elementwise)."""
    y = h3_ref[0] * aff3_ref[0:1, :] + aff3_ref[1:2, :]        # BN3 scale/shift
    y = y + x_ref[0].astype(jnp.float32)                       # identity skip
    out_ref[0] = jnp.maximum(y, 0.0).astype(out_ref.dtype)


# ---------------------------------------------------------------------------
# wrapper
# ---------------------------------------------------------------------------
def _fold_bn(s, q, gamma, beta, count):
    """Per-tile partial (sum, sumsq) -> torch training-mode BN scale/shift."""
    mean = jnp.sum(s, axis=0)[0] / count                       # (C,)
    var = jnp.sum(q, axis=0)[0] / count - mean * mean          # biased variance
    inv = jax.lax.rsqrt(var + EPS)
    scale = gamma * inv
    shift = beta - mean * scale
    return jnp.stack([scale, shift]).astype(jnp.float32)       # (2, C)


@jax.jit
def bottleneck(x_nchw, params):
    """Forward pass of Bottleneck (stride=1, downsample=None, expansion=4)."""
    w1, g1, b1, w2, g2, b2, w3, g3, b3 = params
    N, Ci, H, W = x_nchw.shape
    Cm = w1.shape[0]
    Co = w3.shape[0]
    assert Co == Ci, "identity add needs in_channel == expansion*out_channel"

    # NCHW (torch) -> NHWC once at the boundary; no host-side padding.
    # TODO(synk): in a full network keep activations NHWC end-to-end so these
    #             boundary transposes disappear.
    x = jnp.transpose(x_nchw, (0, 2, 3, 1)).astype(jnp.float32)

    # Weight re-layout once, outside the kernels; MXU operands in bf16.
    w1r = jnp.transpose(w1.reshape(Cm, Ci), (1, 0)).astype(MATMUL_DTYPE)        # (Ci, Cm)
    w2r = jnp.transpose(w2, (2, 3, 1, 0)).reshape(3, 3 * Cm, Cm).astype(MATMUL_DTYPE)
    w3r = jnp.transpose(w3.reshape(Co, Cm), (1, 0)).astype(MATMUL_DTYPE)        # (Cm, Co)

    count = float(N * H * W)
    cparams = pltpu.CompilerParams(
        dimension_semantics=("parallel",),        # pipeline + megacore over batch
        vmem_limit_bytes=48 * 1024 * 1024,        # explicit budget (< v7x 64 MiB)
    )

    def img_spec(c):          # one image per grid step (channel-minor NHWC)
        return pl.BlockSpec((1, H, W, c), lambda i: (i, 0, 0, 0))

    def stat_spec(c):         # per-tile partial BN sums
        return pl.BlockSpec((1, 1, c), lambda i: (i, 0, 0))

    def full_spec(shape):     # small weights / folded BN params (broadcast)
        return pl.BlockSpec(shape, lambda i: (0,) * len(shape))

    def stats_shapes(c):
        return [jax.ShapeDtypeStruct((N, 1, c), jnp.float32)] * 2

    # ---- stage 1: 1x1 conv + partial BN1 stats ------------------------------
    h1, s1, q1 = pl.pallas_call(
        conv1_kernel,
        grid=(N,),
        in_specs=[img_spec(Ci), full_spec((Ci, Cm))],
        out_specs=[img_spec(Cm), stat_spec(Cm), stat_spec(Cm)],
        out_shape=[jax.ShapeDtypeStruct((N, H, W, Cm), jnp.float32)] + stats_shapes(Cm),
        compiler_params=cparams,
    )(x, w1r)
    aff1 = _fold_bn(s1, q1, g1, b1, count)

    # ---- stage 2: BN1+ReLU -> 3x3 conv + partial BN2 stats -------------------
    h2, s2, q2 = pl.pallas_call(
        conv2_kernel,
        grid=(N,),
        in_specs=[img_spec(Cm), full_spec((2, Cm)), full_spec((3, 3 * Cm, Cm))],
        out_specs=[img_spec(Cm), stat_spec(Cm), stat_spec(Cm)],
        out_shape=[jax.ShapeDtypeStruct((N, H, W, Cm), jnp.float32)] + stats_shapes(Cm),
        compiler_params=cparams,
    )(h1, aff1, w2r)
    aff2 = _fold_bn(s2, q2, g2, b2, count)

    # ---- stage 3: BN2+ReLU -> 1x1 conv (expand) + partial BN3 stats ----------
    h3, s3, q3 = pl.pallas_call(
        conv3_kernel,
        grid=(N,),
        in_specs=[img_spec(Cm), full_spec((2, Cm)), full_spec((Cm, Co))],
        out_specs=[img_spec(Co), stat_spec(Co), stat_spec(Co)],
        out_shape=[jax.ShapeDtypeStruct((N, H, W, Co), jnp.float32)] + stats_shapes(Co),
        compiler_params=cparams,
    )(h2, aff2, w3r)
    aff3 = _fold_bn(s3, q3, g3, b3, count)

    # ---- stage 4: BN3 -> + identity -> ReLU ----------------------------------
    out = pl.pallas_call(
        residual_kernel,
        grid=(N,),
        in_specs=[img_spec(Co), img_spec(Ci), full_spec((2, Co))],
        out_specs=img_spec(Co),
        out_shape=jax.ShapeDtypeStruct((N, H, W, Co), x_nchw.dtype),
        compiler_params=cparams,
    )(h3, x, aff3)

    return jnp.transpose(out, (0, 3, 1, 2))                     # NHWC -> NCHW


# ---------------------------------------------------------------------------
# pure-JAX reference (same bf16-operand / f32-accumulation MXU precision so the
# comparison isolates kernel correctness)
# ---------------------------------------------------------------------------
def ref_bottleneck(x_nchw, params):
    w1, g1, b1, w2, g2, b2, w3, g3, b3 = params

    def conv(x, w, pad):
        return jax.lax.conv_general_dilated(
            x.astype(MATMUL_DTYPE), w.astype(MATMUL_DTYPE),
            window_strides=(1, 1), padding=pad,
            dimension_numbers=("NCHW", "OIHW", "NCHW"),
            preferred_element_type=jnp.float32)

    def bn(y, g, b):
        mean = jnp.mean(y, axis=(0, 2, 3), keepdims=True)
        var = jnp.mean(jnp.square(y), axis=(0, 2, 3), keepdims=True) - jnp.square(mean)
        return ((y - mean) * jax.lax.rsqrt(var + EPS) * g.reshape(1, -1, 1, 1)
                + b.reshape(1, -1, 1, 1))

    h = jax.nn.relu(bn(conv(x_nchw, w1, "VALID"), g1, b1))
    h = jax.nn.relu(bn(conv(h, w2, "SAME"), g2, b2))
    h = bn(conv(h, w3, "VALID"), g3, b3)
    return jax.nn.relu(h + x_nchw)


if __name__ == "__main__":
    N, H, W = 2, 16, 16
    Cm = 4                       # out_channel (bottleneck width)
    Ci = Co = Cm * 4             # expansion = 4; stride=1, downsample=None

    key = jax.random.PRNGKey(0)
    kx, k1, k2, k3, kg = jax.random.split(key, 5)
    x = jax.random.normal(kx, (N, Ci, H, W), jnp.float32)
    w1 = jax.random.normal(k1, (Cm, Ci, 1, 1), jnp.float32) * 0.1
    w2 = jax.random.normal(k2, (Cm, Cm, 3, 3), jnp.float32) * 0.1
    w3 = jax.random.normal(k3, (Co, Cm, 1, 1), jnp.float32) * 0.1
    gb = jax.random.normal(kg, (2, 2 * Cm + Co), jnp.float32) * 0.1
    g1 = 1.0 + gb[0, :Cm];        b1 = gb[1, :Cm]
    g2 = 1.0 + gb[0, Cm:2 * Cm];  b2 = gb[1, Cm:2 * Cm]
    g3 = 1.0 + gb[0, 2 * Cm:];    b3 = gb[1, 2 * Cm:]
    params = (w1, g1, b1, w2, g2, b2, w3, g3, b3)

    out = bottleneck(x, params)
    jax.block_until_ready(out)

    ref = ref_bottleneck(x, params)
    err = float(jnp.max(jnp.abs(out - ref)))
    assert out.shape == x.shape
    assert jnp.allclose(out, ref, atol=2e-3, rtol=2e-3), f"max abs err = {err}"
    print("KERNEL_OK")
</pallas_src>

<mosaic_0001>
module attributes {stable_mosaic.version = 11 : i64} {
  func.func @conv1_kernel(%arg0: i32, %arg1: memref<1x16x16x16xf32, #tpu.memory_space<vmem>>, %arg2: memref<16x4xbf16, #tpu.memory_space<vmem>>, %arg3: memref<1x16x16x4xf32, #tpu.memory_space<vmem>>, %arg4: memref<1x1x4xf32, #tpu.memory_space<vmem>>, %arg5: memref<1x1x4xf32, #tpu.memory_space<vmem>>) attributes {dimension_semantics = [#tpu.dimension_semantics<parallel>], iteration_bounds = array<i64: 2>, scalar_prefetch = 0 : i64, scratch_operands = 0 : i64, tpu.core_type = #tpu.core_type<tc>, window_params = [{transform_indices = @transform_0, window_bounds = array<i64: 1, 16, 16, 16>}, {pipeline_mode = #tpu.pipeline_mode<synchronous>, transform_indices = @transform_1, window_bounds = array<i64: 16, 4>}, {transform_indices = @transform_2, window_bounds = array<i64: 1, 16, 16, 4>}, {transform_indices = @transform_3, window_bounds = array<i64: 1, 1, 4>}, {transform_indices = @transform_4, window_bounds = array<i64: 1, 1, 4>}]} {
    %c0 = arith.constant 0 : index
    %c0_0 = arith.constant 0 : index
    %c0_1 = arith.constant 0 : index
    %c0_2 = arith.constant 0 : index
    %0 = vector.load %arg1[%c0, %c0_0, %c0_1, %c0_2] : memref<1x16x16x16xf32, #tpu.memory_space<vmem>>, vector<1x16x16x16xf32>
    %1 = vector.shape_cast %0 : vector<1x16x16x16xf32> to vector<16x16x16xf32>
    %2 = vector.shape_cast %1 : vector<16x16x16xf32> to vector<256x16xf32>
    %3 = arith.truncf %2 : vector<256x16xf32> to vector<256x16xbf16>
    %c0_3 = arith.constant 0 : index
    %c0_4 = arith.constant 0 : index
    %4 = vector.load %arg2[%c0_3, %c0_4] : memref<16x4xbf16, #tpu.memory_space<vmem>>, vector<16x4xbf16>
    %cst = arith.constant dense<0.000000e+00> : vector<256x4xf32>
    %5 = tpu.matmul %3, %4, %cst {dimension_numbers = #tpu.dot_dimension_numbers<[1], [0], [0], [1], [0, 0, 1, 1], [], []>} : vector<256x16xbf16>, vector<16x4xbf16>, vector<256x4xf32> -> vector<256x4xf32>
    %6 = vector.shape_cast %5 : vector<256x4xf32> to vector<16x16x4xf32>
    %c0_5 = arith.constant 0 : index
    %c0_6 = arith.constant 0 : index
    %c0_7 = arith.constant 0 : index
    %c0_8 = arith.constant 0 : index
    %7 = vector.load %arg3[%c0_5, %c0_6, %c0_7, %c0_8] : memref<1x16x16x4xf32, #tpu.memory_space<vmem>>, vector<1x16x16x4xf32>
    %8 = vector.shape_cast %7 : vector<1x16x16x4xf32> to vector<16x16x4xf32>
    %9 = vector.shape_cast %6 : vector<16x16x4xf32> to vector<1x16x16x4xf32>
    tpu.vector_store %arg3[%c0_5, %c0_6, %c0_7, %c0_8], %9 {strides = array<i32>} : memref<1x16x16x4xf32, #tpu.memory_space<vmem>>, vector<1x16x16x4xf32>,
    %cst_9 = arith.constant dense<0.000000e+00> : vector<4xf32>
    %10 = vector.multi_reduction <add>, %5, %cst_9 [0] : vector<256x4xf32> to vector<4xf32>
    %11 = vector.shape_cast %10 : vector<4xf32> to vector<1x4xf32>
    %c0_10 = arith.constant 0 : index
    %c0_11 = arith.constant 0 : index
    %c0_12 = arith.constant 0 : index
    %12 = vector.load %arg4[%c0_10, %c0_11, %c0_12] : memref<1x1x4xf32, #tpu.memory_space<vmem>>, vector<1x1x4xf32>
    %13 = vector.shape_cast %12 : vector<1x1x4xf32> to vector<1x4xf32>
    %14 = vector.shape_cast %11 : vector<1x4xf32> to vector<1x1x4xf32>
    tpu.vector_store %arg4[%c0_10, %c0_11, %c0_12], %14 {strides = array<i32>} : memref<1x1x4xf32, #tpu.memory_space<vmem>>, vector<1x1x4xf32>,
    %15 = arith.mulf %5, %5 : vector<256x4xf32>
    %cst_13 = arith.constant dense<0.000000e+00> : vector<4xf32>
    %16 = vector.multi_reduction <add>, %15, %cst_13 [0] : vector<256x4xf32> to vector<4xf32>
    %17 = vector.shape_cast %16 : vector<4xf32> to vector<1x4xf32>
    %c0_14 = arith.constant 0 : index
    %c0_15 = arith.constant 0 : index
    %c0_16 = arith.constant 0 : index
    %18 = vector.load %arg5[%c0_14, %c0_15, %c0_16] : memref<1x1x4xf32, #tpu.memory_space<vmem>>, vector<1x1x4xf32>
    %19 = vector.shape_cast %18 : vector<1x1x4xf32> to vector<1x4xf32>
    %20 = vector.shape_cast %17 : vector<1x4xf32> to vector<1x1x4xf32>
    tpu.vector_store %arg5[%c0_14, %c0_15, %c0_16], %20 {strides = array<i32>} : memref<1x1x4xf32, #tpu.memory_space<vmem>>, vector<1x1x4xf32>,
    return
  }
  func.func @transform_0(%arg0: i32) -> (i32, i32, i32, i32) {
    %c0_i32 = arith.constant 0 : i32
    %c0_i32_0 = arith.constant 0 : i32
    %c0_i32_1 = arith.constant 0 : i32
    %c0_i32_2 = arith.constant 0 : i32
    return %arg0, %c0_i32, %c0_i32_0, %c0_i32_1 : i32, i32, i32, i32
  }
  func.func @transform_1(%arg0: i32) -> (i32, i32) {
    %c0_i32 = arith.constant 0 : i32
    %c0_i32_0 = arith.constant 0 : i32
    %c0_i32_1 = arith.constant 0 : i32
    return %c0_i32, %c0_i32_0 : i32, i32
  }
  func.func @transform_2(%arg0: i32) -> (i32, i32, i32, i32) {
    %c0_i32 = arith.constant 0 : i32
    %c0_i32_0 = arith.constant 0 : i32
    %c0_i32_1 = arith.constant 0 : i32
    %c0_i32_2 = arith.constant 0 : i32
    return %arg0, %c0_i32, %c0_i32_0, %c0_i32_1 : i32, i32, i32, i32
  }
  func.func @transform_3(%arg0: i32) -> (i32, i32, i32) {
    %c0_i32 = arith.constant 0 : i32
    %c0_i32_0 = arith.constant 0 : i32
    %c0_i32_1 = arith.constant 0 : i32
    return %arg0, %c0_i32, %c0_i32_0 : i32, i32, i32
  }
  func.func @transform_4(%arg0: i32) -> (i32, i32, i32) {
    %c0_i32 = arith.constant 0 : i32
    %c0_i32_0 = arith.constant 0 : i32
    %c0_i32_1 = arith.constant 0 : i32
    return %arg0, %c0_i32, %c0_i32_0 : i32, i32, i32
  }
}

module attributes {stable_mosaic.version = 11 : i64} {
  func.func @residual_kernel(%arg0: i32, %arg1: memref<1x16x16x16xf32, #tpu.memory_space<vmem>>, %arg2: memref<1x16x16x16xf32, #tpu.memory_space<vmem>>, %arg3: memref<2x16xf32, #tpu.memory_space<vmem>>, %arg4: memref<1x16x16x16xf32, #tpu.memory_space<vmem>>) attributes {dimension_semantics = [#tpu.dimension_semantics<parallel>], iteration_bounds = array<i64: 2>, scalar_prefetch = 0 : i64, scratch_operands = 0 : i64, tpu.core_type = #tpu.core_type<tc>, window_params = [{transform_indices = @transform_0, window_bounds = array<i64: 1, 16, 16, 16>}, {transform_indices = @transform_1, window_bounds = array<i64: 1, 16, 16, 16>}, {pipeline_mode = #tpu.pipeline_mode<synchronous>, transform_indices = @transform_2, window_bounds = array<i64: 2, 16>}, {transform_indices = @transform_3, window_bounds = array<i64: 1, 16, 16, 16>}]} {
    %c0 = arith.constant 0 : index
    %c0_0 = arith.constant 0 : index
    %c0_1 = arith.constant 0 : index
    %c0_2 = arith.constant 0 : index
    %0 = vector.load %arg1[%c0, %c0_0, %c0_1, %c0_2] : memref<1x16x16x16xf32, #tpu.memory_space<vmem>>, vector<1x16x16x16xf32>
    %1 = vector.shape_cast %0 : vector<1x16x16x16xf32> to vector<16x16x16xf32>
    %c0_3 = arith.constant 0 : index
    %c0_4 = arith.constant 0 : index
    %2 = vector.load %arg3[%c0_3, %c0_4] : memref<2x16xf32, #tpu.memory_space<vmem>>, vector<1x16xf32>
    %3 = vector.shape_cast %2 : vector<1x16xf32> to vector<1x1x16xf32>
    %4 = vector.broadcast %3 : vector<1x1x16xf32> to vector<16x16x16xf32>
    %5 = arith.mulf %1, %4 : vector<16x16x16xf32>
    %c1 = arith.constant 1 : index
    %c0_5 = arith.constant 0 : index
    %6 = vector.load %arg3[%c1, %c0_5] : memref<2x16xf32, #tpu.memory_space<vmem>>, vector<1x16xf32>
    %7 = vector.shape_cast %6 : vector<1x16xf32> to vector<1x1x16xf32>
    %8 = vector.broadcast %7 : vector<1x1x16xf32> to vector<16x16x16xf32>
    %9 = arith.addf %5, %8 : vector<16x16x16xf32>
    %c0_6 = arith.constant 0 : index
    %c0_7 = arith.constant 0 : index
    %c0_8 = arith.constant 0 : index
    %c0_9 = arith.constant 0 : index
    %10 = vector.load %arg2[%c0_6, %c0_7, %c0_8, %c0_9] : memref<1x16x16x16xf32, #tpu.memory_space<vmem>>, vector<1x16x16x16xf32>
    %11 = vector.shape_cast %10 : vector<1x16x16x16xf32> to vector<16x16x16xf32>
    %12 = arith.addf %9, %11 : vector<16x16x16xf32>
    %cst = arith.constant 0.000000e+00 : f32
    %13 = vector.broadcast %cst : f32 to vector<16x16x16xf32>
    %14 = arith.maximumf %12, %13 : vector<16x16x16xf32>
    %c0_10 = arith.constant 0 : index
    %c0_11 = arith.constant 0 : index
    %c0_12 = arith.constant 0 : index
    %c0_13 = arith.constant 0 : index
    %15 = vector.load %arg4[%c0_10, %c0_11, %c0_12, %c0_13] : memref<1x16x16x16xf32, #tpu.memory_space<vmem>>, vector<1x16x16x16xf32>
    %16 = vector.shape_cast %15 : vector<1x16x16x16xf32> to vector<16x16x16xf32>
    %17 = vector.shape_cast %14 : vector<16x16x16xf32> to vector<1x16x16x16xf32>
    tpu.vector_store %arg4[%c0_10, %c0_11, %c0_12, %c0_13], %17 {strides = array<i32>} : memref<1x16x16x16xf32, #tpu.memory_space<vmem>>, vector<1x16x16x16xf32>,
    return
  }
  func.func @transform_0(%arg0: i32) -> (i32, i32, i32, i32) {
    %c0_i32 = arith.constant 0 : i32
    %c0_i32_0 = arith.constant 0 : i32
    %c0_i32_1 = arith.constant 0 : i32
    %c0_i32_2 = arith.constant 0 : i32
    return %arg0, %c0_i32, %c0_i32_0, %c0_i32_1 : i32, i32, i32, i32
  }
  func.func @transform_1(%arg0: i32) -> (i32, i32, i32, i32) {
    %c0_i32 = arith.constant 0 : i32
    %c0_i32_0 = arith.constant 0 : i32
    %c0_i32_1 = arith.constant 0 : i32
    %c0_i32_2 = arith.constant 0 : i32
    return %arg0, %c0_i32, %c0_i32_0, %c0_i32_1 : i32, i32, i32, i32
  }
  func.func @transform_2(%arg0: i32) -> (i32, i32) {
    %c0_i32 = arith.constant 0 : i32
    %c0_i32_0 = arith.constant 0 : i32
    %c0_i32_1 = arith.constant 0 : i32
    return %c0_i32, %c0_i32_0 : i32, i32
  }
  func.func @transform_3(%arg0: i32) -> (i32, i32, i32, i32) {
    %c0_i32 = arith.constant 0 : i32
    %c0_i32_0 = arith.constant 0 : i32
    %c0_i32_1 = arith.constant 0 : i32
    %c0_i32_2 = arith.constant 0 : i32
    return %arg0, %c0_i32, %c0_i32_0, %c0_i32_1 : i32, i32, i32, i32
  }
}

module attributes {stable_mosaic.version = 11 : i64} {
  func.func @conv3_kernel(%arg0: i32, %arg1: memref<1x16x16x4xf32, #tpu.memory_space<vmem>>, %arg2: memref<2x4xf32, #tpu.memory_space<vmem>>, %arg3: memref<4x16xbf16, #tpu.memory_space<vmem>>, %arg4: memref<1x16x16x16xf32, #tpu.memory_space<vmem>>, %arg5: memref<1x1x16xf32, #tpu.memory_space<vmem>>, %arg6: memref<1x1x16xf32, #tpu.memory_space<vmem>>) attributes {dimension_semantics = [#tpu.dimension_semantics<parallel>], iteration_bounds = array<i64: 2>, scalar_prefetch = 0 : i64, scratch_operands = 0 : i64, tpu.core_type = #tpu.core_type<tc>, window_params = [{transform_indices = @transform_0, window_bounds = array<i64: 1, 16, 16, 4>}, {pipeline_mode = #tpu.pipeline_mode<synchronous>, transform_indices = @transform_1, window_bounds = array<i64: 2, 4>}, {pipeline_mode = #tpu.pipeline_mode<synchronous>, transform_indices = @transform_2, window_bounds = array<i64: 4, 16>}, {transform_indices = @transform_3, window_bounds = array<i64: 1, 16, 16, 16>}, {transform_indices = @transform_4, window_bounds = array<i64: 1, 1, 16>}, {transform_indices = @transform_5, window_bounds = array<i64: 1, 1, 16>}]} {
    %c0 = arith.constant 0 : index
    %c0_0 = arith.constant 0 : index
    %c0_1 = arith.constant 0 : index
    %c0_2 = arith.constant 0 : index
    %0 = vector.load %arg1[%c0, %c0_0, %c0_1, %c0_2] : memref<1x16x16x4xf32, #tpu.memory_space<vmem>>, vector<1x16x16x4xf32>
    %1 = vector.shape_cast %0 : vector<1x16x16x4xf32> to vector<16x16x4xf32>
    %2 = vector.shape_cast %1 : vector<16x16x4xf32> to vector<256x4xf32>
    %c0_3 = arith.constant 0 : index
    %c0_4 = arith.constant 0 : index
    %3 = vector.load %arg2[%c0_3, %c0_4] : memref<2x4xf32, #tpu.memory_space<vmem>>, vector<1x4xf32>
    %4 = vector.broadcast %3 : vector<1x4xf32> to vector<256x4xf32>
    %5 = arith.mulf %2, %4 : vector<256x4xf32>
    %c1 = arith.constant 1 : index
    %c0_5 = arith.constant 0 : index
    %6 = vector.load %arg2[%c1, %c0_5] : memref<2x4xf32, #tpu.memory_space<vmem>>, vector<1x4xf32>
    %7 = vector.broadcast %6 : vector<1x4xf32> to vector<256x4xf32>
    %8 = arith.addf %5, %7 : vector<256x4xf32>
    %cst = arith.constant 0.000000e+00 : f32
    %9 = vector.broadcast %cst : f32 to vector<256x4xf32>
    %10 = arith.maximumf %8, %9 : vector<256x4xf32>
    %11 = arith.truncf %10 : vector<256x4xf32> to vector<256x4xbf16>
    %c0_6 = arith.constant 0 : index
    %c0_7 = arith.constant 0 : index
    %12 = vector.load %arg3[%c0_6, %c0_7] : memref<4x16xbf16, #tpu.memory_space<vmem>>, vector<4x16xbf16>
    %cst_8 = arith.constant dense<0.000000e+00> : vector<256x16xf32>
    %13 = tpu.matmul %11, %12, %cst_8 {dimension_numbers = #tpu.dot_dimension_numbers<[1], [0], [0], [1], [0, 0, 1, 1], [], []>} : vector<256x4xbf16>, vector<4x16xbf16>, vector<256x16xf32> -> vector<256x16xf32>
    %14 = vector.shape_cast %13 : vector<256x16xf32> to vector<16x16x16xf32>
    %c0_9 = arith.constant 0 : index
    %c0_10 = arith.constant 0 : index
    %c0_11 = arith.constant 0 : index
    %c0_12 = arith.constant 0 : index
    %15 = vector.load %arg4[%c0_9, %c0_10, %c0_11, %c0_12] : memref<1x16x16x16xf32, #tpu.memory_space<vmem>>, vector<1x16x16x16xf32>
    %16 = vector.shape_cast %15 : vector<1x16x16x16xf32> to vector<16x16x16xf32>
    %17 = vector.shape_cast %14 : vector<16x16x16xf32> to vector<1x16x16x16xf32>
    tpu.vector_store %arg4[%c0_9, %c0_10, %c0_11, %c0_12], %17 {strides = array<i32>} : memref<1x16x16x16xf32, #tpu.memory_space<vmem>>, vector<1x16x16x16xf32>,
    %cst_13 = arith.constant dense<0.000000e+00> : vector<16xf32>
    %18 = vector.multi_reduction <add>, %13, %cst_13 [0] : vector<256x16xf32> to vector<16xf32>
    %19 = vector.shape_cast %18 : vector<16xf32> to vector<1x16xf32>
    %c0_14 = arith.constant 0 : index
    %c0_15 = arith.constant 0 : index
    %c0_16 = arith.constant 0 : index
    %20 = vector.load %arg5[%c0_14, %c0_15, %c0_16] : memref<1x1x16xf32, #tpu.memory_space<vmem>>, vector<1x1x16xf32>
    %21 = vector.shape_cast %20 : vector<1x1x16xf32> to vector<1x16xf32>
    %22 = vector.shape_cast %19 : vector<1x16xf32> to vector<1x1x16xf32>
    tpu.vector_store %arg5[%c0_14, %c0_15, %c0_16], %22 {strides = array<i32>} : memref<1x1x16xf32, #tpu.memory_space<vmem>>, vector<1x1x16xf32>,
    %23 = arith.mulf %13, %13 : vector<256x16xf32>
    %cst_17 = arith.constant dense<0.000000e+00> : vector<16xf32>
    %24 = vector.multi_reduction <add>, %23, %cst_17 [0] : vector<256x16xf32> to vector<16xf32>
    %25 = vector.shape_cast %24 : vector<16xf32> to vector<1x16xf32>
    %c0_18 = arith.constant 0 : index
    %c0_19 = arith.constant 0 : index
    %c0_20 = arith.constant 0 : index
    %26 = vector.load %arg6[%c0_18, %c0_19, %c0_20] : memref<1x1x16xf32, #tpu.memory_space<vmem>>, vector<1x1x16xf32>
    %27 = vector.shape_cast %26 : vector<1x1x16xf32> to vector<1x16xf32>
    %28 = vector.shape_cast %25 : vector<1x16xf32> to vector<1x1x16xf32>
    tpu.vector_store %arg6[%c0_18, %c0_19, %c0_20], %28 {strides = array<i32>} : memref<1x1x16xf32, #tpu.memory_space<vmem>>, vector<1x1x16xf32>,
    return
  }
  func.func @transform_0(%arg0: i32) -> (i32, i32, i32, i32) {
    %c0_i32 = arith.constant 0 : i32
    %c0_i32_0 = arith.constant 0 : i32
    %c0_i32_1 = arith.constant 0 : i32
    %c0_i32_2 = arith.constant 0 : i32
    return %arg0, %c0_i32, %c0_i32_0, %c0_i32_1 : i32, i32, i32, i32
  }
  func.func @transform_1(%arg0: i32) -> (i32, i32) {
    %c0_i32 = arith.constant 0 : i32
    %c0_i32_0 = arith.constant 0 : i32
    %c0_i32_1 = arith.constant 0 : i32
    return %c0_i32, %c0_i32_0 : i32, i32
  }
  func.func @transform_2(%arg0: i32) -> (i32, i32) {
    %c0_i32 = arith.constant 0 : i32
    %c0_i32_0 = arith.constant 0 : i32
    %c0_i32_1 = arith.constant 0 : i32
    return %c0_i32, %c0_i32_0 : i32, i32
  }
  func.func @transform_3(%arg0: i32) -> (i32, i32, i32, i32) {
    %c0_i32 = arith.constant 0 : i32
    %c0_i32_0 = arith.constant 0 : i32
    %c0_i32_1 = arith.constant 0 : i32
    %c0_i32_2 = arith.constant 0 : i32
    return %arg0, %c0_i32, %c0_i32_0, %c0_i32_1 : i32, i32, i32, i32
  }
  func.func @transform_4(%arg0: i32) -> (i32, i32, i32) {
    %c0_i32 = arith.constant 0 : i32
    %c0_i32_0 = arith.constant 0 : i32
    %c0_i32_1 = arith.constant 0 : i32
    return %arg0, %c0_i32, %c0_i32_0 : i32, i32, i32
  }
  func.func @transform_5(%arg0: i32) -> (i32, i32, i32) {
    %c0_i32 = arith.constant 0 : i32
    %c0_i32_0 = arith.constant 0 : i32
    %c0_i32_1 = arith.constant 0 : i32
    return %arg0, %c0_i32, %c0_i32_0 : i32, i32, i32
  }
}

module attributes {stable_mosaic.version = 11 : i64} {
  func.func @conv2_kernel(%arg0: i32, %arg1: memref<1x16x16x4xf32, #tpu.memory_space<vmem>>, %arg2: memref<2x4xf32, #tpu.memory_space<vmem>>, %arg3: memref<3x12x4xbf16, #tpu.memory_space<vmem>>, %arg4: memref<1x16x16x4xf32, #tpu.memory_space<vmem>>, %arg5: memref<1x1x4xf32, #tpu.memory_space<vmem>>, %arg6: memref<1x1x4xf32, #tpu.memory_space<vmem>>) attributes {dimension_semantics = [#tpu.dimension_semantics<parallel>], iteration_bounds = array<i64: 2>, scalar_prefetch = 0 : i64, scratch_operands = 0 : i64, tpu.core_type = #tpu.core_type<tc>, window_params = [{transform_indices = @transform_0, window_bounds = array<i64: 1, 16, 16, 4>}, {pipeline_mode = #tpu.pipeline_mode<synchronous>, transform_indices = @transform_1, window_bounds = array<i64: 2, 4>}, {pipeline_mode = #tpu.pipeline_mode<synchronous>, transform_indices = @transform_2, window_bounds = array<i64: 3, 12, 4>}, {transform_indices = @transform_3, window_bounds = array<i64: 1, 16, 16, 4>}, {transform_indices = @transform_4, window_bounds = array<i64: 1, 1, 4>}, {transform_indices = @transform_5, window_bounds = array<i64: 1, 1, 4>}]} {
    %c0 = arith.constant 0 : index
    %c0_0 = arith.constant 0 : index
    %c0_1 = arith.constant 0 : index
    %c0_2 = arith.constant 0 : index
    %0 = vector.load %arg1[%c0, %c0_0, %c0_1, %c0_2] : memref<1x16x16x4xf32, #tpu.memory_space<vmem>>, vector<1x16x16x4xf32>
    %1 = vector.shape_cast %0 : vector<1x16x16x4xf32> to vector<16x16x4xf32>
    %2 = vector.shape_cast %1 : vector<16x16x4xf32> to vector<256x4xf32>
    %c0_3 = arith.constant 0 : index
    %c0_4 = arith.constant 0 : index
    %3 = vector.load %arg2[%c0_3, %c0_4] : memref<2x4xf32, #tpu.memory_space<vmem>>, vector<1x4xf32>
    %4 = vector.broadcast %3 : vector<1x4xf32> to vector<256x4xf32>
    %5 = arith.mulf %2, %4 : vector<256x4xf32>
    %c1 = arith.constant 1 : index
    %c0_5 = arith.constant 0 : index
    %6 = vector.load %arg2[%c1, %c0_5] : memref<2x4xf32, #tpu.memory_space<vmem>>, vector<1x4xf32>
    %7 = vector.broadcast %6 : vector<1x4xf32> to vector<256x4xf32>
    %8 = arith.addf %5, %7 : vector<256x4xf32>
    %cst = arith.constant 0.000000e+00 : f32
    %9 = vector.broadcast %cst : f32 to vector<256x4xf32>
    %10 = arith.maximumf %8, %9 : vector<256x4xf32>
    %11 = arith.truncf %10 : vector<256x4xf32> to vector<256x4xbf16>
    %12 = vector.shape_cast %11 : vector<256x4xbf16> to vector<16x16x4xbf16>
    %cst_6 = arith.constant 0.000000e+00 : bf16
    %13 = vector.broadcast %cst_6 : bf16 to vector<1x16x4xbf16>
    %14 = tpu.concatenate %13, %12, %13 in 0 : vector<1x16x4xbf16>, vector<16x16x4xbf16>, vector<1x16x4xbf16> -> vector<18x16x4xbf16>
    %cst_7 = arith.constant 0.000000e+00 : bf16
    %15 = vector.broadcast %cst_7 : bf16 to vector<18x1x4xbf16>
    %16 = tpu.concatenate %15, %14, %15 in 1 : vector<18x1x4xbf16>, vector<18x16x4xbf16>, vector<18x1x4xbf16> -> vector<18x18x4xbf16>
    %cst_8 = arith.constant 0.000000e+00 : f32
    %17 = vector.broadcast %cst_8 : f32 to vector<256x4xf32>
    %18 = vector.extract_strided_slice %16 {offsets = [0, 0, 0], sizes = [16, 18, 4], strides = [1, 1, 1]} : vector<18x18x4xbf16> to vector<16x18x4xbf16>
    %19 = vector.extract_strided_slice %18 {offsets = [0, 0, 0], sizes = [16, 16, 4], strides = [1, 1, 1]} : vector<16x18x4xbf16> to vector<16x16x4xbf16>
    %20 = vector.extract_strided_slice %18 {offsets = [0, 1, 0], sizes = [16, 16, 4], strides = [1, 1, 1]} : vector<16x18x4xbf16> to vector<16x16x4xbf16>
    %21 = vector.extract_strided_slice %18 {offsets = [0, 2, 0], sizes = [16, 16, 4], strides = [1, 1, 1]} : vector<16x18x4xbf16> to vector<16x16x4xbf16>
    %22 = tpu.concatenate %19, %20, %21 in 2 : vector<16x16x4xbf16>, vector<16x16x4xbf16>, vector<16x16x4xbf16> -> vector<16x16x12xbf16>
    %23 = vector.shape_cast %22 : vector<16x16x12xbf16> to vector<256x12xbf16>
    %c0_9 = arith.constant 0 : index
    %c0_10 = arith.constant 0 : index
    %c0_11 = arith.constant 0 : index
    %24 = vector.load %arg3[%c0_9, %c0_10, %c0_11] : memref<3x12x4xbf16, #tpu.memory_space<vmem>>, vector<1x12x4xbf16>
    %25 = vector.shape_cast %24 : vector<1x12x4xbf16> to vector<12x4xbf16>
    %cst_12 = arith.constant dense<0.000000e+00> : vector<256x4xf32>
    %26 = tpu.matmul %23, %25, %cst_12 {dimension_numbers = #tpu.dot_dimension_numbers<[1], [0], [0], [1], [0, 0, 1, 1], [], []>} : vector<256x12xbf16>, vector<12x4xbf16>, vector<256x4xf32> -> vector<256x4xf32>
    %27 = arith.addf %17, %26 : vector<256x4xf32>
    %28 = vector.extract_strided_slice %16 {offsets = [1, 0, 0], sizes = [16, 18, 4], strides = [1, 1, 1]} : vector<18x18x4xbf16> to vector<16x18x4xbf16>
    %29 = vector.extract_strided_slice %28 {offsets = [0, 0, 0], sizes = [16, 16, 4], strides = [1, 1, 1]} : vector<16x18x4xbf16> to vector<16x16x4xbf16>
    %30 = vector.extract_strided_slice %28 {offsets = [0, 1, 0], sizes = [16, 16, 4], strides = [1, 1, 1]} : vector<16x18x4xbf16> to vector<16x16x4xbf16>
    %31 = vector.extract_strided_slice %28 {offsets = [0, 2, 0], sizes = [16, 16, 4], strides = [1, 1, 1]} : vector<16x18x4xbf16> to vector<16x16x4xbf16>
    %32 = tpu.concatenate %29, %30, %31 in 2 : vector<16x16x4xbf16>, vector<16x16x4xbf16>, vector<16x16x4xbf16> -> vector<16x16x12xbf16>
    %33 = vector.shape_cast %32 : vector<16x16x12xbf16> to vector<256x12xbf16>
    %c1_13 = arith.constant 1 : index
    %c0_14 = arith.constant 0 : index
    %c0_15 = arith.constant 0 : index
    %34 = vector.load %arg3[%c1_13, %c0_14, %c0_15] : memref<3x12x4xbf16, #tpu.memory_space<vmem>>, vector<1x12x4xbf16>
    %35 = vector.shape_cast %34 : vector<1x12x4xbf16> to vector<12x4xbf16>
    %cst_16 = arith.constant dense<0.000000e+00> : vector<256x4xf32>
    %36 = tpu.matmul %33, %35, %cst_16 {dimension_numbers = #tpu.dot_dimension_numbers<[1], [0], [0], [1], [0, 0, 1, 1], [], []>} : vector<256x12xbf16>, vector<12x4xbf16>, vector<256x4xf32> -> vector<256x4xf32>
    %37 = arith.addf %27, %36 : vector<256x4xf32>
    %38 = vector.extract_strided_slice %16 {offsets = [2, 0, 0], sizes = [16, 18, 4], strides = [1, 1, 1]} : vector<18x18x4xbf16> to vector<16x18x4xbf16>
    %39 = vector.extract_strided_slice %38 {offsets = [0, 0, 0], sizes = [16, 16, 4], strides = [1, 1, 1]} : vector<16x18x4xbf16> to vector<16x16x4xbf16>
    %40 = vector.extract_strided_slice %38 {offsets = [0, 1, 0], sizes = [16, 16, 4], strides = [1, 1, 1]} : vector<16x18x4xbf16> to vector<16x16x4xbf16>
    %41 = vector.extract_strided_slice %38 {offsets = [0, 2, 0], sizes = [16, 16, 4], strides = [1, 1, 1]} : vector<16x18x4xbf16> to vector<16x16x4xbf16>
    %42 = tpu.concatenate %39, %40, %41 in 2 : vector<16x16x4xbf16>, vector<16x16x4xbf16>, vector<16x16x4xbf16> -> vector<16x16x12xbf16>
    %43 = vector.shape_cast %42 : vector<16x16x12xbf16> to vector<256x12xbf16>
    %c2 = arith.constant 2 : index
    %c0_17 = arith.constant 0 : index
    %c0_18 = arith.constant 0 : index
    %44 = vector.load %arg3[%c2, %c0_17, %c0_18] : memref<3x12x4xbf16, #tpu.memory_space<vmem>>, vector<1x12x4xbf16>
    %45 = vector.shape_cast %44 : vector<1x12x4xbf16> to vector<12x4xbf16>
    %cst_19 = arith.constant dense<0.000000e+00> : vector<256x4xf32>
    %46 = tpu.matmul %43, %45, %cst_19 {dimension_numbers = #tpu.dot_dimension_numbers<[1], [0], [0], [1], [0, 0, 1, 1], [], []>} : vector<256x12xbf16>, vector<12x4xbf16>, vector<256x4xf32> -> vector<256x4xf32>
    %47 = arith.addf %37, %46 : vector<256x4xf32>
    %48 = vector.shape_cast %47 : vector<256x4xf32> to vector<16x16x4xf32>
    %c0_20 = arith.constant 0 : index
    %c0_21 = arith.constant 0 : index
    %c0_22 = arith.constant 0 : index
    %c0_23 = arith.constant 0 : index
    %49 = vector.load %arg4[%c0_20, %c0_21, %c0_22, %c0_23] : memref<1x16x16x4xf32, #tpu.memory_space<vmem>>, vector<1x16x16x4xf32>
    %50 = vector.shape_cast %49 : vector<1x16x16x4xf32> to vector<16x16x4xf32>
    %51 = vector.shape_cast %48 : vector<16x16x4xf32> to vector<1x16x16x4xf32>
    tpu.vector_store %arg4[%c0_20, %c0_21, %c0_22, %c0_23], %51 {strides = array<i32>} : memref<1x16x16x4xf32, #tpu.memory_space<vmem>>, vector<1x16x16x4xf32>,
    %cst_24 = arith.constant dense<0.000000e+00> : vector<4xf32>
    %52 = vector.multi_reduction <add>, %47, %cst_24 [0] : vector<256x4xf32> to vector<4xf32>
    %53 = vector.shape_cast %52 : vector<4xf32> to vector<1x4xf32>
    %c0_25 = arith.constant 0 : index
    %c0_26 = arith.constant 0 : index
    %c0_27 = arith.constant 0 : index
    %54 = vector.load %arg5[%c0_25, %c0_26, %c0_27] : memref<1x1x4xf32, #tpu.memory_space<vmem>>, vector<1x1x4xf32>
    %55 = vector.shape_cast %54 : vector<1x1x4xf32> to vector<1x4xf32>
    %56 = vector.shape_cast %53 : vector<1x4xf32> to vector<1x1x4xf32>
    tpu.vector_store %arg5[%c0_25, %c0_26, %c0_27], %56 {strides = array<i32>} : memref<1x1x4xf32, #tpu.memory_space<vmem>>, vector<1x1x4xf32>,
    %57 = arith.mulf %47, %47 : vector<256x4xf32>
    %cst_28 = arith.constant dense<0.000000e+00> : vector<4xf32>
    %58 = vector.multi_reduction <add>, %57, %cst_28 [0] : vector<256x4xf32> to vector<4xf32>
    %59 = vector.shape_cast %58 : vector<4xf32> to vector<1x4xf32>
    %c0_29 = arith.constant 0 : index
    %c0_30 = arith.constant 0 : index
    %c0_31 = arith.constant 0 : index
    %60 = vector.load %arg6[%c0_29, %c0_30, %c0_31] : memref<1x1x4xf32, #tpu.memory_space<vmem>>, vector<1x1x4xf32>
    %61 = vector.shape_cast %60 : vector<1x1x4xf32> to vector<1x4xf32>
    %62 = vector.shape_cast %59 : vector<1x4xf32> to vector<1x1x4xf32>
    tpu.vector_store %arg6[%c0_29, %c0_30, %c0_31], %62 {strides = array<i32>} : memref<1x1x4xf32, #tpu.memory_space<vmem>>, vector<1x1x4xf32>,
    return
  }
  func.func @transform_0(%arg0: i32) -> (i32, i32, i32, i32) {
    %c0_i32 = arith.constant 0 : i32
    %c0_i32_0 = arith.constant 0 : i32
    %c0_i32_1 = arith.constant 0 : i32
    %c0_i32_2 = arith.constant 0 : i32
    return %arg0, %c0_i32, %c0_i32_0, %c0_i32_1 : i32, i32, i32, i32
  }
  func.func @transform_1(%arg0: i32) -> (i32, i32) {
    %c0_i32 = arith.constant 0 : i32
    %c0_i32_0 = arith.constant 0 : i32
    %c0_i32_1 = arith.constant 0 : i32
    return %c0_i32, %c0_i32_0 : i32, i32
  }
  func.func @transform_2(%arg0: i32) -> (i32, i32, i32) {
    %c0_i32 = arith.constant 0 : i32
    %c0_i32_0 = arith.constant 0 : i32
    %c0_i32_1 = arith.constant 0 : i32
    %c0_i32_2 = arith.constant 0 : i32
    return %c0_i32, %c0_i32_0, %c0_i32_1 : i32, i32, i32
  }
  func.func @transform_3(%arg0: i32) -> (i32, i32, i32, i32) {
    %c0_i32 = arith.constant 0 : i32
    %c0_i32_0 = arith.constant 0 : i32
    %c0_i32_1 = arith.constant 0 : i32
    %c0_i32_2 = arith.constant 0 : i32
    return %arg0, %c0_i32, %c0_i32_0, %c0_i32_1 : i32, i32, i32, i32
  }
  func.func @transform_4(%arg0: i32) -> (i32, i32, i32) {
    %c0_i32 = arith.constant 0 : i32
    %c0_i32_0 = arith.constant 0 : i32
    %c0_i32_1 = arith.constant 0 : i32
    return %arg0, %c0_i32, %c0_i32_0 : i32, i32, i32
  }
  func.func @transform_5(%arg0: i32) -> (i32, i32, i32) {
    %c0_i32 = arith.constant 0 : i32
    %c0_i32_0 = arith.constant 0 : i32
    %c0_i32_1 = arith.constant 0 : i32
    return %arg0, %c0_i32, %c0_i32_0 : i32, i32, i32
  }
}

</mosaic_0001>

<bundles_post_ra>
// kernel: bottleneck.4
= control target key start
LH: loop header
LB: loop body
LE: loop exit
PB: predicated region body
PF: predicated region fallthrough
CT: control target
= control target key end

     0   :  { %s918_s15 = smov 0   ;;  %s1232_s0 = inlined_call_operand.vmem [shape: f32[2,16,16,16], index: 0, kind: input, shape index: {}]   ;;  %s1233_s1 = inlined_call_operand.vmem [shape: bf16[16,4], index: 1, kind: input, shape index: {}]   ;;  %s1234_s2 = inlined_call_operand.vmem [shape: f32[2,16,16,4], index: 2, kind: output, shape index: {0}]   ;;  %s1235_s3 = inlined_call_operand.vmem [shape: f32[2,1,4], index: 3, kind: output, shape index: {1}]   ;;  %s1236_s4 = inlined_call_operand.vmem [shape: f32[2,1,4], index: 4, kind: output, shape index: {2}]  }
   0x1 LB: > { %s793_s16 = sadd.s32 4294967295, %s891_s15   ;;  %p797_p0 = scmp.ge.s32.totalorder %s891_s15, 1  ;;  %s891_s15 = sphi %s918_s15, %s15_s15  }
   0x2   : > { %p167_p1 = scmp.lt.s32.totalorder %s891_s15, 3 }
   0x4   : > { %p168_p2 = pnand %p797_p0, %p167_p1 }
   0x5   : > { %v884_v0 = vld [vmem:[%s1233_s1] sm:$0xff] (!%p168_p2)   ;;  %p199_p3 = scmp.lt.s32.totalorder (!%p168_p2), %s793_s16, 1  ;;  %vm272_vm0 = vcmask (!%p168_p2), 130048   ;;  %vm482_vm1 = vcmask (!%p168_p2), 31744   ;;  %vm584_vm2 = vcmask (!%p168_p2), 24576  }
   0x6   : > { %171 = sbr.rel (%p168_p2) target bundleno = 313 (0x139), region = 28  ;;  %840 = vmatprep.subr.bf16.mxu0 (!%p168_p2), %v884_v0  ;;  %874 = vmatprep.subr.bf16.mxu1 (!%p168_p2), %v884_v0 }
   0x7   : > { %841 = vmatpush3.bf16.msra.mxu0 (!%p168_p2), %v884_v0  ;;  %875 = vmatpush3.bf16.msra.mxu1 (!%p168_p2), %v884_v0 }
   0xd   : > { %s1238_s16 = smov (!%p199_p3, %s793_s16), 1 }
   0xe   : > { %s821_s19 = sshll.u32 %s1238_s16, 8  ;;  %s211_s28 = scalar_lea.vmem %s1235_s3, %s1238_s16 }
   0xf   : > { %s937_s22 = scalar_lea.vmem %s1232_s0, %s821_s19  ;;  %s992_s25 = scalar_lea.vmem %s1234_s2, %s821_s19 }
  0x10   : > { %v216_v1 = vld [vmem:[%s937_s22] sm:$0xff]  ;;  %v217_v2 = vld [vmem:[%s937_s22 + $0x8] sm:$0xff]  ;;  %v218_v3 = vld [vmem:[%s937_s22 + $0x10] sm:$0xff]  ;;  %s214_s5 = scalar_lea.vmem %s1236_s4, %s1238_s16 }
  0x11   : > { %v248_v4 = vpack.c.bf16 %v217_v2, %v216_v1  ;;  %v219_v5 = vld [vmem:[%s937_s22 + $0x18] sm:$0xff]  ;;  %v220_v6 = vld [vmem:[%s937_s22 + $0x20] sm:$0xff]  ;;  %v221_v7 = vld [vmem:[%s937_s22 + $0x28] sm:$0xff] }
  0x12   : > { %v249_v8 = vpack.c.bf16 %v219_v5, %v218_v3  ;;  %v250_v9 = vpack.c.bf16 %v221_v7, %v220_v6  ;;  %v222_v10 = vld [vmem:[%s937_s22 + $0x30] sm:$0xff]  ;;  %v223_v11 = vld [vmem:[%s937_s22 + $0x38] sm:$0xff]  ;;  %v224_v12 = vld [vmem:[%s937_s22 + $0x40] sm:$0xff] }
  0x13   : > { %842 = vmatprep.mubr.msk.bf16.mxu0 %vm272_vm0, %v248_v4  ;;  %v225_v13 = vld [vmem:[%s937_s22 + $0x48] sm:$0xff]  ;;  %v232_v14 = vld [vmem:[%s937_s22 + $0x80] sm:$0xff]  ;;  %v234_v17 = vld [vmem:[%s937_s22 + $0x90] sm:$0xff]  ;;  %v251_v22 = vpack.c.bf16 %v223_v11, %v222_v10 }
  0x14   : > { %843 = vmatmul.mubr.msk.bf16.vlgmr.msra.gmra.mrb[0].mxu0 %vm272_vm0, %v249_v8  ;;  %v233_v15 = vld [vmem:[%s937_s22 + $0x88] sm:$0xff]  ;;  %v235_v18 = vld [vmem:[%s937_s22 + $0x98] sm:$0xff]  ;;  %v236_v19 = vld [vmem:[%s937_s22 + $0xa0] sm:$0xff]  ;;  %v252_v24 = vpack.c.bf16 %v225_v13, %v224_v12 }
  0x15   : > { %846 = vmatprep.mubr.msk.bf16.mxu0 %vm272_vm0, %v250_v9  ;;  %v256_v16 = vpack.c.bf16 %v233_v15, %v232_v14  ;;  %v257_v20 = vpack.c.bf16 %v235_v18, %v234_v17  ;;  %v237_v21 = vld [vmem:[%s937_s22 + $0xa8] sm:$0xff]  ;;  %v238_v25 = vld [vmem:[%s937_s22 + $0xb0] sm:$0xff]  ;;  %v239_v26 = vld [vmem:[%s937_s22 + $0xb8] sm:$0xff] }
  0x16   : > { %v258_v23 = vpack.c.bf16 %v237_v21, %v236_v19  ;;  %v240_v27 = vld [vmem:[%s937_s22 + $0xc0] sm:$0xff]  ;;  %v241_v28 = vld [vmem:[%s937_s22 + $0xc8] sm:$0xff]  ;;  %v226_v29 = vld [vmem:[%s937_s22 + $0x50] sm:$0xff]  ;;  %v259_v31 = vpack.c.bf16 %v239_v26, %v238_v25 }
  0x17   : > { %858 = vmatprep.mubr.msk.bf16.mxu1 %vm272_vm0, %v256_v16  ;;  %v227_v30 = vld [vmem:[%s937_s22 + $0x58] sm:$0xff]  ;;  %v228_v32 = vld [vmem:[%s937_s22 + $0x60] sm:$0xff]  ;;  %v229_v33 = vld [vmem:[%s937_s22 + $0x68] sm:$0xff]  ;;  %v260_v34 = vpack.c.bf16 %v241_v28, %v240_v27 }
  0x18   : > { %859 = vmatmul.mubr.msk.bf16.vlgmr.msra.gmra.mrb[0].mxu1 %vm272_vm0, %v257_v20  ;;  %v253_v35 = vpack.c.bf16 %v227_v30, %v226_v29  ;;  %v254_v36 = vpack.c.bf16 %v229_v33, %v228_v32  ;;  %v242_v37 = vld [vmem:[%s937_s22 + $0xd0] sm:$0xff]  ;;  %v243_v38 = vld [vmem:[%s937_s22 + $0xd8] sm:$0xff]  ;;  %v244_v39 = vld [vmem:[%s937_s22 + $0xe0] sm:$0xff] }
  0x19   : > { %862 = vmatprep.mubr.msk.bf16.mxu1 %vm272_vm0, %v258_v23  ;;  %v245_v40 = vld [vmem:[%s937_s22 + $0xe8] sm:$0xff]  ;;  %v230_v41 = vld [vmem:[%s937_s22 + $0x70] sm:$0xff]  ;;  %v231_v42 = vld [vmem:[%s937_s22 + $0x78] sm:$0xff]  ;;  %v261_v43 = vpack.c.bf16 %v243_v38, %v242_v37 }
  0x1a   : > { %v262_v44 = vpack.c.bf16 %v245_v40, %v244_v39  ;;  %v255_v45 = vpack.c.bf16 %v231_v42, %v230_v41  ;;  %v246_v46 = vld [vmem:[%s937_s22 + $0xf0] sm:$0xff]  ;;  %v247_v47 = vld [vmem:[%s937_s22 + $0xf8] sm:$0xff] }
  0x1b   : > { %v263_v48 = vpack.c.bf16 %v247_v47, %v246_v46 }
  0x1c   : > { %847 = vmatmul.mubr.msk.bf16.gmra.mrb[4].mxu0 %vm272_vm0, %v251_v22 }
  0x1d   : > { %850 = vmatprep.mubr.msk.bf16.mxu0 %vm272_vm0, %v252_v24 }
  0x20   : > { %863 = vmatmul.mubr.msk.bf16.gmra.mrb[4].mxu1 %vm272_vm0, %v259_v31 }
  0x21   : > { %866 = vmatprep.mubr.msk.bf16.mxu1 %vm272_vm0, %v260_v34 }
  0x24   : > { %851 = vmatmul.mubr.msk.bf16.gmra.mrb[8].mxu0 %vm272_vm0, %v253_v35 }
  0x25   : > { %854 = vmatprep.mubr.msk.bf16.mxu0 %vm272_vm0, %v254_v36 }
  0x28   : > { %867 = vmatmul.mubr.msk.bf16.gmra.mrb[8].mxu1 %vm272_vm0, %v261_v43 }
  0x29   : > { %870 = vmatprep.mubr.msk.bf16.mxu1 %vm272_vm0, %v262_v44 }
  0x2c   : > { %855 = vmatmul.mubr.msk.bf16.gmra.mrb[12].mxu0 %vm272_vm0, %v255_v45 }
  0x30   : > { %871 = vmatmul.mubr.msk.bf16.gmra.mrb[12].mxu1 %vm272_vm0, %v263_v48 }
  0xe7   : > { %v844_v49 = vpop.f32.mrb[0].mxu0 }
  0xe8   : > { %485 = vst.msk [vmem:[%s992_s25 + $0x10] sm:$0xff] %vm482_vm1, %v844_v49  ;;  %v355_v50 = vpop.f32.mrb[1].mxu0  ;;  %v588_v54 = vmul.f32 %v844_v49, %v844_v49  ;;  %v518_v60 = vsel %vm482_vm1, %v844_v49, 0.0 }
  0xe9   : > { %483 = vst.msk [vmem:[%s992_s25] sm:$0xff] %vm482_vm1, %v355_v50  ;;  %v586_v51 = vmul.f32 %v355_v50, %v355_v50  ;;  %v845_v52 = vpop.f32.mrb[2].mxu0  ;;  %v515_v55 = vsel %vm482_vm1, %v355_v50, 0.0 }
  0xea   : > { %486 = vst.msk [vmem:[%s992_s25 + $0x18] sm:$0xff] %vm482_vm1, %v845_v52  ;;  %v358_v53 = vpop.f32.mrb[3].mxu0  ;;  %v589_v62 = vmul.f32 %v845_v52, %v845_v52  ;;  %v621_v4 = vsel %vm482_vm1, %v588_v54, 0.0  ;;  %v520_v5 = vsel %vm482_vm1, %v845_v52, 0.0 }
  0xeb   : > { %484 = vst.msk [vmem:[%s992_s25 + $0x8] sm:$0xff] %vm482_vm1, %v358_v53  ;;  %v516_v56 = vsel %vm482_vm1, %v358_v53, 0.0  ;;  %v587_v57 = vmul.f32 %v358_v53, %v358_v53  ;;  %v1004_v59 = vpop.f32.mrb[0].mxu1  ;;  %v618_v61 = vsel %vm482_vm1, %v586_v51, 0.0 }
  0xec   : > { %v517_v58 = vadd.f32 %v516_v56, %v515_v55  ;;  %501 = vst.msk [vmem:[%s992_s25 + $0x90] sm:$0xff] %vm482_vm1, %v1004_v59  ;;  %v1012_v0 = vpop.f32.mrb[1].mxu1  ;;  %v623_v11 = vsel %vm482_vm1, %v589_v62, 0.0 }
  0xed   : > { %v619_v63 = vsel %vm482_vm1, %v587_v57, 0.0  ;;  %499 = vst.msk [vmem:[%s992_s25 + $0x80] sm:$0xff] %vm482_vm1, %v1012_v0  ;;  %v1017_v3 = vpop.f32.mrb[2].mxu1 }
  0xee   : > { %v519_v1 = vadd.f32 %v518_v60, %v517_v58  ;;  %v620_v2 = vadd.f32 %v619_v63, %v618_v61  ;;  %502 = vst.msk [vmem:[%s992_s25 + $0x98] sm:$0xff] %vm482_vm1, %v1017_v3  ;;  %v1024_v7 = vpop.f32.mrb[3].mxu1 }
  0xef   : > { %v848_v6 = vpop.f32.mrb[4].mxu0  ;;  %500 = vst.msk [vmem:[%s992_s25 + $0x88] sm:$0xff] %vm482_vm1, %v1024_v7 }
  0xf0   : > { %v622_v8 = vadd.f32 %v621_v4, %v620_v2  ;;  %489 = vst.msk [vmem:[%s992_s25 + $0x30] sm:$0xff] %vm482_vm1, %v848_v6  ;;  %v371_v9 = vpop.f32.mrb[5].mxu0  ;;  %v521_v10 = vadd.f32 %v520_v5, %v519_v1  ;;  %v592_v18 = vmul.f32 %v848_v6, %v848_v6  ;;  %v526_v25 = vsel %vm482_vm1, %v848_v6, 0.0 }
  0xf1   : > { %487 = vst.msk [vmem:[%s992_s25 + $0x20] sm:$0xff] %vm482_vm1, %v371_v9  ;;  %v522_v12 = vsel %vm482_vm1, %v371_v9, 0.0  ;;  %v590_v13 = vmul.f32 %v371_v9, %v371_v9  ;;  %v849_v14 = vpop.f32.mrb[6].mxu0 }
  0xf2   : > { %v523_v15 = vadd.f32 %v522_v12, %v521_v10  ;;  %v624_v16 = vadd.f32 %v623_v11, %v622_v8  ;;  %490 = vst.msk [vmem:[%s992_s25 + $0x38] sm:$0xff] %vm482_vm1, %v849_v14  ;;  %v374_v17 = vpop.f32.mrb[7].mxu0  ;;  %v593_v26 = vmul.f32 %v849_v14, %v849_v14  ;;  %v629_v32 = vsel %vm482_vm1, %v592_v18, 0.0 }
  0xf3   : > { %v625_v19 = vsel %vm482_vm1, %v590_v13, 0.0  ;;  %488 = vst.msk [vmem:[%s992_s25 + $0x28] sm:$0xff] %vm482_vm1, %v374_v17  ;;  %v524_v20 = vsel %vm482_vm1, %v374_v17, 0.0  ;;  %v591_v21 = vmul.f32 %v374_v17, %v374_v17  ;;  %v1041_v24 = vpop.f32.mrb[4].mxu1  ;;  %v528_v33 = vsel %vm482_vm1, %v849_v14, 0.0 }
  0xf4   : > { %v626_v22 = vadd.f32 %v625_v19, %v624_v16  ;;  %v525_v23 = vadd.f32 %v524_v20, %v523_v15  ;;  %505 = vst.msk [vmem:[%s992_s25 + $0xb0] sm:$0xff] %vm482_vm1, %v1041_v24  ;;  %v1048_v28 = vpop.f32.mrb[5].mxu1  ;;  %v631_v39 = vsel %vm482_vm1, %v593_v26, 0.0 }
  0xf5   : > { %v627_v27 = vsel %vm482_vm1, %v591_v21, 0.0  ;;  %503 = vst.msk [vmem:[%s992_s25 + $0xa0] sm:$0xff] %vm482_vm1, %v1048_v28  ;;  %v1053_v31 = vpop.f32.mrb[6].mxu1 }
  0xf6   : > { %v527_v29 = vadd.f32 %v526_v25, %v525_v23  ;;  %v628_v30 = vadd.f32 %v627_v27, %v626_v22  ;;  %506 = vst.msk [vmem:[%s992_s25 + $0xb8] sm:$0xff] %vm482_vm1, %v1053_v31  ;;  %v1060_v35 = vpop.f32.mrb[7].mxu1  ;;  %v602_v25 = vmul.f32 %v1012_v0, %v1012_v0 }
  0xf7   : > { %v852_v34 = vpop.f32.mrb[8].mxu0  ;;  %504 = vst.msk [vmem:[%s992_s25 + $0xa8] sm:$0xff] %vm482_vm1, %v1060_v35 }
  0xf8   : > { %v630_v36 = vadd.f32 %v629_v32, %v628_v30  ;;  %493 = vst.msk [vmem:[%s992_s25 + $0x50] sm:$0xff] %vm482_vm1, %v852_v34  ;;  %v387_v37 = vpop.f32.mrb[9].mxu0  ;;  %v529_v38 = vadd.f32 %v528_v33, %v527_v29  ;;  %v596_v46 = vmul.f32 %v852_v34, %v852_v34  ;;  %v534_v53 = vsel %vm482_vm1, %v852_v34, 0.0 }
  0xf9   : > { %491 = vst.msk [vmem:[%s992_s25 + $0x40] sm:$0xff] %vm482_vm1, %v387_v37  ;;  %v530_v40 = vsel %vm482_vm1, %v387_v37, 0.0  ;;  %v594_v41 = vmul.f32 %v387_v37, %v387_v37  ;;  %v853_v42 = vpop.f32.mrb[10].mxu0  ;;  %v546_v34 = vsel %vm482_vm1, %v1012_v0, 0.0  ;;  %v603_v0 = vmul.f32 %v1024_v7, %v1024_v7 }
  0xfa   : > { %v531_v43 = vadd.f32 %v530_v40, %v529_v38  ;;  %v632_v44 = vadd.f32 %v631_v39, %v630_v36  ;;  %494 = vst.msk [vmem:[%s992_s25 + $0x58] sm:$0xff] %vm482_vm1, %v853_v42  ;;  %v390_v45 = vpop.f32.mrb[11].mxu0  ;;  %v597_v54 = vmul.f32 %v853_v42, %v853_v42  ;;  %v637_v61 = vsel %vm482_vm1, %v596_v46, 0.0 }
  0xfb   : > { %v633_v47 = vsel %vm482_vm1, %v594_v41, 0.0  ;;  %492 = vst.msk [vmem:[%s992_s25 + $0x48] sm:$0xff] %vm482_vm1, %v390_v45  ;;  %v532_v48 = vsel %vm482_vm1, %v390_v45, 0.0  ;;  %v595_v49 = vmul.f32 %v390_v45, %v390_v45  ;;  %v1077_v52 = vpop.f32.mrb[8].mxu1  ;;  %v536_v62 = vsel %vm482_vm1, %v853_v42, 0.0 }
  0xfc   : > { %v634_v50 = vadd.f32 %v633_v47, %v632_v44  ;;  %v533_v51 = vadd.f32 %v532_v48, %v531_v43  ;;  %509 = vst.msk [vmem:[%s992_s25 + $0xd0] sm:$0xff] %vm482_vm1, %v1077_v52  ;;  %v1084_v56 = vpop.f32.mrb[9].mxu1  ;;  %v639_v6 = vsel %vm482_vm1, %v597_v54, 0.0  ;;  %v649_v41 = vsel %vm482_vm1, %v602_v25, 0.0 }
  0xfd   : > { %v635_v55 = vsel %vm482_vm1, %v595_v49, 0.0  ;;  %507 = vst.msk [vmem:[%s992_s25 + $0xc0] sm:$0xff] %vm482_vm1, %v1084_v56  ;;  %v1089_v60 = vpop.f32.mrb[10].mxu1  ;;  %v604_v45 = vmul.f32 %v1004_v59, %v1004_v59  ;;  %v548_v46 = vsel %vm482_vm1, %v1024_v7, 0.0  ;;  %v550_v49 = vsel %vm482_vm1, %v1004_v59, 0.0 }
  0xfe   : > { %v535_v57 = vadd.f32 %v534_v53, %v533_v51  ;;  %v636_v58 = vadd.f32 %v635_v55, %v634_v50  ;;  %510 = vst.msk [vmem:[%s992_s25 + $0xd8] sm:$0xff] %vm482_vm1, %v1089_v60  ;;  %v1096_v1 = vpop.f32.mrb[11].mxu1  ;;  %v605_v50 = vmul.f32 %v1017_v3, %v1017_v3  ;;  %v651_v51 = vsel %vm482_vm1, %v603_v0, 0.0 }
  0xff   : > { %v856_v63 = vpop.f32.mrb[12].mxu0  ;;  %508 = vst.msk [vmem:[%s992_s25 + $0xc8] sm:$0xff] %vm482_vm1, %v1096_v1  ;;  %v606_v53 = vmul.f32 %v1048_v28, %v1048_v28  ;;  %v552_v7 = vsel %vm482_vm1, %v1017_v3, 0.0  ;;  %v556_v3 = vsel %vm482_vm1, %v1060_v35, 0.0  ;;  %v612_v25 = vmul.f32 %v1077_v52, %v1077_v52 }
 0x100   : > { %v638_v2 = vadd.f32 %v637_v61, %v636_v58  ;;  %497 = vst.msk [vmem:[%s992_s25 + $0x70] sm:$0xff] %vm482_vm1, %v856_v63  ;;  %v403_v4 = vpop.f32.mrb[13].mxu0  ;;  %v537_v5 = vadd.f32 %v536_v62, %v535_v57  ;;  %v600_v14 = vmul.f32 %v856_v63, %v856_v63  ;;  %v542_v21 = vsel %vm482_vm1, %v856_v63, 0.0 }
 0x101   : > { %495 = vst.msk [vmem:[%s992_s25 + $0x60] sm:$0xff] %vm482_vm1, %v403_v4  ;;  %v538_v8 = vsel %vm482_vm1, %v403_v4, 0.0  ;;  %v598_v9 = vmul.f32 %v403_v4, %v403_v4  ;;  %v857_v10 = vpop.f32.mrb[14].mxu0  ;;  %v653_v57 = vsel %vm482_vm1, %v604_v45, 0.0  ;;  %v554_v58 = vsel %vm482_vm1, %v1048_v28, 0.0 }
 0x102   : > { %v539_v11 = vadd.f32 %v538_v8, %v537_v5  ;;  %v640_v12 = vadd.f32 %v639_v6, %v638_v2  ;;  %498 = vst.msk [vmem:[%s992_s25 + $0x78] sm:$0xff] %vm482_vm1, %v857_v10  ;;  %v406_v13 = vpop.f32.mrb[15].mxu0  ;;  %v601_v22 = vmul.f32 %v857_v10, %v857_v10  ;;  %v645_v32 = vsel %vm482_vm1, %v600_v14, 0.0 }
 0x103   : > { %v641_v15 = vsel %vm482_vm1, %v598_v9, 0.0  ;;  %496 = vst.msk [vmem:[%s992_s25 + $0x68] sm:$0xff] %vm482_vm1, %v406_v13  ;;  %v540_v16 = vsel %vm482_vm1, %v406_v13, 0.0  ;;  %v599_v17 = vmul.f32 %v406_v13, %v406_v13  ;;  %v1113_v20 = vpop.f32.mrb[12].mxu1  ;;  %v544_v33 = vsel %vm482_vm1, %v857_v10, 0.0 }
 0x104   : > { %v642_v18 = vadd.f32 %v641_v15, %v640_v12  ;;  %v541_v19 = vadd.f32 %v540_v16, %v539_v11  ;;  %513 = vst.msk [vmem:[%s992_s25 + $0xf0] sm:$0xff] %vm482_vm1, %v1113_v20  ;;  %v1122_v26 = vpop.f32.mrb[13].mxu1  ;;  %v647_v40 = vsel %vm482_vm1, %v601_v22, 0.0  ;;  %v655_v62 = vsel %vm482_vm1, %v605_v50, 0.0 }
 0x105   : > { %v643_v23 = vsel %vm482_vm1, %v599_v17, 0.0  ;;  %511 = vst.msk [vmem:[%s992_s25 + $0xe0] sm:$0xff] %vm482_vm1, %v1122_v26  ;;  %v1127_v30 = vpop.f32.mrb[14].mxu1  ;;  %v657_v63 = vsel %vm482_vm1, %v606_v53, 0.0  ;;  %v607_v2 = vmul.f32 %v1060_v35, %v1060_v35  ;;  %v608_v6 = vmul.f32 %v1041_v24, %v1041_v24 }
 0x106   : > { %v543_v27 = vadd.f32 %v542_v21, %v541_v19  ;;  %v644_v29 = vadd.f32 %v643_v23, %v642_v18  ;;  %514 = vst.msk [vmem:[%s992_s25 + $0xf8] sm:$0xff] %vm482_vm1, %v1127_v30  ;;  %v617_v36 = vmul.f32 %v1127_v30, %v1127_v30  ;;  %v1138_v37 = vpop.f32.mrb[15].mxu1  ;;  %v558_v28 = vsel %vm482_vm1, %v1041_v24, 0.0 }
 0x107   : > { %512 = vst.msk [vmem:[%s992_s25 + $0xe8] sm:$0xff] %vm482_vm1, %v1138_v37  ;;  %v609_v10 = vmul.f32 %v1053_v31, %v1053_v31  ;;  %v659_v11 = vsel %vm482_vm1, %v607_v2, 0.0  ;;  %v610_v12 = vmul.f32 %v1084_v56, %v1084_v56  ;;  %v661_v15 = vsel %vm482_vm1, %v608_v6, 0.0 }
 0x108   : > { %v646_v38 = vadd.f32 %v645_v32, %v644_v29  ;;  %v545_v39 = vadd.f32 %v544_v33, %v543_v27  ;;  %v1148_v42 = vsel %vm482_vm1, %v617_v36, 0.0  ;;  %v560_v35 = vsel %vm482_vm1, %v1053_v31, 0.0 }
 0x109   : > { %v562_v16 = vsel %vm482_vm1, %v1084_v56, 0.0  ;;  %v663_v18 = vsel %vm482_vm1, %v609_v10, 0.0  ;;  %v665_v19 = vsel %vm482_vm1, %v610_v12, 0.0  ;;  %v611_v21 = vmul.f32 %v1096_v1, %v1096_v1 }
 0x10a   : > { %v547_v43 = vadd.f32 %v546_v34, %v545_v39  ;;  %v648_v44 = vadd.f32 %v647_v40, %v646_v38  ;;  %v564_v31 = vsel %vm482_vm1, %v1096_v1, 0.0  ;;  %v566_v56 = vsel %vm482_vm1, %v1077_v52, 0.0 }
 0x10b   : > { %v613_v32 = vmul.f32 %v1089_v60, %v1089_v60  ;;  %v667_v33 = vsel %vm482_vm1, %v611_v21, 0.0  ;;  %v614_v34 = vmul.f32 %v1122_v26, %v1122_v26  ;;  %v669_v39 = vsel %vm482_vm1, %v612_v25, 0.0 }
 0x10c   : > { %v650_v47 = vadd.f32 %v649_v41, %v648_v44  ;;  %v549_v48 = vadd.f32 %v548_v46, %v547_v43  ;;  %v568_v1 = vsel %vm482_vm1, %v1089_v60, 0.0  ;;  %v570_v40 = vsel %vm482_vm1, %v1122_v26, 0.0 }
 0x10d   : > { %v671_v0 = vsel %vm482_vm1, %v613_v32, 0.0  ;;  %v673_v43 = vsel %vm482_vm1, %v614_v34, 0.0  ;;  %v615_v44 = vmul.f32 %v1138_v37, %v1138_v37  ;;  %v572_v60 = vsel %vm482_vm1, %v1138_v37, 0.0 }
 0x10e   : > { %v551_v54 = vadd.f32 %v550_v49, %v549_v48  ;;  %v652_v55 = vadd.f32 %v651_v51, %v650_v47  ;;  %v616_v47 = vmul.f32 %v1113_v20, %v1113_v20  ;;  %v574_v26 = vsel %vm482_vm1, %v1113_v20, 0.0 }
 0x10f   : > { %v675_v50 = vsel %vm482_vm1, %v615_v44, 0.0 }
 0x110   : > { %v654_v61 = vadd.f32 %v653_v57, %v652_v55  ;;  %v553_v59 = vadd.f32 %v552_v7, %v551_v54  ;;  %v677_v54 = vsel %vm482_vm1, %v616_v47, 0.0  ;;  %v576_v55 = vsel %vm482_vm1, %v1127_v30, 0.0 }
 0x112   : > { %v555_v4 = vadd.f32 %v554_v58, %v553_v59  ;;  %v656_v5 = vadd.f32 %v655_v62, %v654_v61 }
 0x114   : > { %v658_v8 = vadd.f32 %v657_v63, %v656_v5  ;;  %v557_v9 = vadd.f32 %v556_v3, %v555_v4 }
 0x116   : > { %v559_v13 = vadd.f32 %v558_v28, %v557_v9  ;;  %v660_v14 = vadd.f32 %v659_v11, %v658_v8 }
 0x118   : > { %v662_v17 = vadd.f32 %v661_v15, %v660_v14  ;;  %v561_v24 = vadd.f32 %v560_v35, %v559_v13 }
 0x11a   : > { %v563_v22 = vadd.f32 %v562_v16, %v561_v24  ;;  %v664_v23 = vadd.f32 %v663_v18, %v662_v17 }
 0x11c   : > { %v666_v27 = vadd.f32 %v665_v19, %v664_v23  ;;  %v565_v29 = vadd.f32 %v564_v31, %v563_v22 }
 0x11e   : > { %v567_v36 = vadd.f32 %v566_v56, %v565_v29  ;;  %v668_v38 = vadd.f32 %v667_v33, %v666_v27 }
 0x120   : > { %v670_v41 = vadd.f32 %v669_v39, %v668_v38  ;;  %v569_v52 = vadd.f32 %v568_v1, %v567_v36 }
 0x122   : > { %v571_v45 = vadd.f32 %v570_v40, %v569_v52  ;;  %v672_v46 = vadd.f32 %v671_v0, %v670_v41 }
 0x124   : > { %v674_v48 = vadd.f32 %v673_v43, %v672_v46  ;;  %v573_v49 = vadd.f32 %v572_v60, %v571_v45 }
 0x126   : > { %v575_v51 = vadd.f32 %v574_v26, %v573_v49  ;;  %v676_v53 = vadd.f32 %v675_v50, %v674_v48 }
 0x128   : > { %v577_v57 = vadd.f32 %v576_v55, %v575_v51  ;;  %v678_v7 = vadd.f32 %v677_v54, %v676_v53 }
 0x12a   : > { %v578_v58 = vrot.slane %v577_v57, 4  ;;  %v680_v37 = vadd.f32 %v1148_v42, %v678_v7 }
 0x12c   : > { %v579_v61 = vadd.f32 %v578_v58, %v577_v57  ;;  %v681_v59 = vrot.slane %v680_v37, 4 }
 0x12e   : > { %v580_v62 = vrot.slane %v579_v61, 2  ;;  %v682_v20 = vadd.f32 %v681_v59, %v680_v37 }
 0x130   : > { %v581_v63 = vadd.f32 %v580_v62, %v579_v61  ;;  %v683_v2 = vrot.slane %v682_v20, 2 }
 0x132   : > { %v582_v4 = vrot.slane %v581_v63, 1  ;;  %v684_v5 = vadd.f32 %v683_v2, %v682_v20 }
 0x134   : > { %v583_v30 = vadd.f32 %v582_v4, %v581_v63  ;;  %v685_v6 = vrot.slane %v684_v5, 1 }
 0x136   : > { %585 = vst.msk [vmem:[%s211_s28] sm:$0x1] %vm584_vm2, %v583_v30  ;;  %v686_v42 = vadd.f32 %v685_v6, %v684_v5 }
 0x138   : > { %687 = vst.msk [vmem:[%s214_s5] sm:$0x1] %vm584_vm2, %v686_v42 }
 0x139 PF: > { %s15_s15 = sadd.s32 1, %s891_s15  }
 0x13a   : > { %p12_p4 = scmp.ge.s32.totalorder %s15_s15, 4  }
 0x13c   :  { %14 = sbr.rel (!%p12_p4) target bundleno = 1 (0x1), region = 82 }

// kernel: bottleneck.7
= control target key start
LH: loop header
LB: loop body
LE: loop exit
PB: predicated region body
PF: predicated region fallthrough
CT: control target
= control target key end

     0   :  { %s547_s12 = smov 0   ;;  %s780_s0 = inlined_call_operand.vmem [shape: f32[2,16,16,16], index: 0, kind: input, shape index: {}]   ;;  %s781_s1 = inlined_call_operand.vmem [shape: f32[2,16,16,16], index: 1, kind: input, shape index: {}]   ;;  %s782_s2 = inlined_call_operand.vmem [shape: f32[2,16], index: 2, kind: input, shape index: {}]   ;;  %s783_s3 = inlined_call_operand.vmem [shape: f32[2,16,16,16], index: 3, kind: output, shape index: {}]  }
   0x1 LB: > { %s493_s13 = sadd.s32 4294967295, %s525_s12   ;;  %p497_p0 = scmp.ge.s32.totalorder %s525_s12, 1  ;;  %s525_s12 = sphi %s547_s12, %s13_s12  }
   0x2   : > { %p147_p1 = scmp.lt.s32.totalorder %s525_s12, 3 }
   0x4   : > { %p148_p2 = pnand %p497_p0, %p147_p1 }
   0x5   : > { %p176_p3 = scmp.lt.s32.totalorder (!%p148_p2), %s493_s13, 1  ;;  %v560_v0 = vld [vmem:[%s782_s2] ss:$0 sm:$0xff] (!%p148_p2)  ;;  %v578_v2 = vld [vmem:[%s782_s2 + $0x1] ss:$0 sm:$0xff] (!%p148_p2)  ;;  %vm393_vm0 = vcmask (!%p148_p2), 130048  }
   0x6   : > { %151 = sbr.rel (%p148_p2) target bundleno = 55 (0x37), region = 32 }
   0xd   : > { %s785_s13 = smov (!%p176_p3, %s493_s13), 1 }
   0xe   : > { %s555_s14 = sshll.u32 %s785_s13, 8 }
   0xf   : > { %s566_s19 = scalar_lea.vmem %s780_s0, %s555_s14  ;;  %s572_s22 = scalar_lea.vmem %s781_s1, %s555_s14 }
  0x10   : > { %v191_v1 = vld [vmem:[%s566_s19] sm:$0xff]  ;;  %v192_v3 = vld [vmem:[%s566_s19 + $0x8] sm:$0xff]  ;;  %v193_v7 = vld [vmem:[%s566_s19 + $0x10] sm:$0xff]  ;;  %s608_s27 = scalar_lea.vmem %s783_s3, %s555_s14 }
  0x11   : > { %v228_v4 = vmul.f32 %v560_v0, %v191_v1  ;;  %v297_v5 = vld [vmem:[%s572_s22] sm:$0xff]  ;;  %v229_v6 = vmul.f32 %v560_v0, %v192_v3  ;;  %v298_v8 = vld [vmem:[%s572_s22 + $0x8] sm:$0xff]  ;;  %v230_v9 = vmul.f32 %v560_v0, %v193_v7  ;;  %v194_v10 = vld [vmem:[%s566_s19 + $0x18] sm:$0xff] }
  0x12   : > { %v195_v11 = vld [vmem:[%s566_s19 + $0x20] sm:$0xff]  ;;  %v299_v14 = vld [vmem:[%s572_s22 + $0x10] sm:$0xff]  ;;  %v231_v15 = vmul.f32 %v560_v0, %v194_v10  ;;  %v300_v16 = vld [vmem:[%s572_s22 + $0x18] sm:$0xff] }
  0x13   : > { %v265_v12 = vadd.f32 %v578_v2, %v228_v4  ;;  %v266_v13 = vadd.f32 %v578_v2, %v229_v6  ;;  %v232_v17 = vmul.f32 %v560_v0, %v195_v11  ;;  %v196_v18 = vld [vmem:[%s566_s19 + $0x28] sm:$0xff]  ;;  %v267_v19 = vadd.f32 %v578_v2, %v230_v9  ;;  %v301_v20 = vld [vmem:[%s572_s22 + $0x20] sm:$0xff]  ;;  %v197_v22 = vld [vmem:[%s566_s19 + $0x30] sm:$0xff] }
  0x14   : > { %v233_v21 = vmul.f32 %v560_v0, %v196_v18  ;;  %v198_v23 = vld [vmem:[%s566_s19 + $0x38] sm:$0xff]  ;;  %v268_v26 = vadd.f32 %v578_v2, %v231_v15  ;;  %v302_v28 = vld [vmem:[%s572_s22 + $0x28] sm:$0xff]  ;;  %v234_v31 = vmul.f32 %v560_v0, %v197_v22  ;;  %v199_v33 = vld [vmem:[%s566_s19 + $0x40] sm:$0xff] }
  0x15   : > { %v329_v24 = vadd.f32 %v297_v5, %v265_v12  ;;  %v330_v25 = vadd.f32 %v298_v8, %v266_v13  ;;  %v269_v27 = vadd.f32 %v578_v2, %v232_v17  ;;  %v331_v29 = vadd.f32 %v299_v14, %v267_v19  ;;  %v200_v34 = vld [vmem:[%s566_s19 + $0x48] sm:$0xff]  ;;  %v303_v39 = vld [vmem:[%s572_s22 + $0x30] sm:$0xff]  ;;  %v304_v40 = vld [vmem:[%s572_s22 + $0x38] sm:$0xff] }
  0x16   : > { %v270_v30 = vadd.f32 %v578_v2, %v233_v21  ;;  %v235_v32 = vmul.f32 %v560_v0, %v198_v23  ;;  %v332_v37 = vadd.f32 %v300_v16, %v268_v26  ;;  %v201_v41 = vld [vmem:[%s566_s19 + $0x50] sm:$0xff]  ;;  %v271_v44 = vadd.f32 %v578_v2, %v234_v31  ;;  %v202_v46 = vld [vmem:[%s566_s19 + $0x58] sm:$0xff]  ;;  %v203_v47 = vld [vmem:[%s566_s19 + $0x60] sm:$0xff] }
  0x17   : > { %v361_v35 = vmax.f32 %v329_v24, 0.0  ;;  %v362_v36 = vmax.f32 %v330_v25, 0.0  ;;  %v333_v38 = vadd.f32 %v301_v20, %v269_v27  ;;  %v363_v42 = vmax.f32 %v331_v29, 0.0  ;;  %v204_v52 = vld [vmem:[%s566_s19 + $0x68] sm:$0xff]  ;;  %v305_v56 = vld [vmem:[%s572_s22 + $0x40] sm:$0xff]  ;;  %v307_v61 = vld [vmem:[%s572_s22 + $0x50] sm:$0xff] }
  0x18   : > { %v334_v43 = vadd.f32 %v302_v28, %v270_v30  ;;  %v272_v45 = vadd.f32 %v578_v2, %v235_v32  ;;  %v364_v48 = vmax.f32 %v332_v37, 0.0  ;;  %v236_v50 = vmul.f32 %v560_v0, %v199_v33  ;;  %v306_v57 = vld [vmem:[%s572_s22 + $0x48] sm:$0xff]  ;;  %v205_v1 = vld [vmem:[%s566_s19 + $0x70] sm:$0xff]  ;;  %v206_v3 = vld [vmem:[%s566_s19 + $0x78] sm:$0xff] }
  0x19   : > { %394 = vst.msk [vmem:[%s608_s27] sm:$0xff] %vm393_vm0, %v361_v35  ;;  %395 = vst.msk [vmem:[%s608_s27 + $0x8] sm:$0xff] %vm393_vm0, %v362_v36  ;;  %v365_v49 = vmax.f32 %v333_v38, 0.0  ;;  %v237_v51 = vmul.f32 %v560_v0, %v200_v34  ;;  %v335_v54 = vadd.f32 %v303_v39, %v271_v44  ;;  %v238_v58 = vmul.f32 %v560_v0, %v201_v41  ;;  %v308_v7 = vld [vmem:[%s572_s22 + $0x58] sm:$0xff]  ;;  %v309_v8 = vld [vmem:[%s572_s22 + $0x60] sm:$0xff] }
  0x1a   : > { %396 = vst.msk [vmem:[%s608_s27 + $0x10] sm:$0xff] %vm393_vm0, %v363_v42  ;;  %v366_v53 = vmax.f32 %v334_v43, 0.0  ;;  %v336_v55 = vadd.f32 %v304_v40, %v272_v45  ;;  %397 = vst.msk [vmem:[%s608_s27 + $0x18] sm:$0xff] %vm393_vm0, %v364_v48  ;;  %v273_v59 = vadd.f32 %v578_v2, %v236_v50  ;;  %v239_v62 = vmul.f32 %v560_v0, %v202_v46  ;;  %v310_v14 = vld [vmem:[%s572_s22 + $0x68] sm:$0xff]  ;;  %v207_v19 = vld [vmem:[%s566_s19 + $0x80] sm:$0xff] }
  0x1b   : > { %398 = vst.msk [vmem:[%s608_s27 + $0x20] sm:$0xff] %vm393_vm0, %v365_v49  ;;  %v274_v60 = vadd.f32 %v578_v2, %v237_v51  ;;  %v240_v63 = vmul.f32 %v560_v0, %v203_v47  ;;  %v367_v4 = vmax.f32 %v335_v54, 0.0  ;;  %v275_v6 = vadd.f32 %v578_v2, %v238_v58  ;;  %v208_v20 = vld [vmem:[%s566_s19 + $0x88] sm:$0xff]  ;;  %v311_v25 = vld [vmem:[%s572_s22 + $0x70] sm:$0xff]  ;;  %v312_v26 = vld [vmem:[%s572_s22 + $0x78] sm:$0xff] }
  0x1c   : > { %399 = vst.msk [vmem:[%s608_s27 + $0x28] sm:$0xff] %vm393_vm0, %v366_v53  ;;  %v368_v5 = vmax.f32 %v336_v55, 0.0  ;;  %v241_v9 = vmul.f32 %v560_v0, %v204_v52  ;;  %v337_v10 = vadd.f32 %v305_v56, %v273_v59  ;;  %v276_v12 = vadd.f32 %v578_v2, %v239_v62  ;;  %v209_v27 = vld [vmem:[%s566_s19 + $0x90] sm:$0xff]  ;;  %v210_v32 = vld [vmem:[%s566_s19 + $0x98] sm:$0xff]  ;;  %v211_v33 = vld [vmem:[%s566_s19 + $0xa0] sm:$0xff] }
  0x1d   : > { %v338_v11 = vadd.f32 %v306_v57, %v274_v60  ;;  %v277_v13 = vadd.f32 %v578_v2, %v240_v63  ;;  %400 = vst.msk [vmem:[%s608_s27 + $0x30] sm:$0xff] %vm393_vm0, %v367_v4  ;;  %v339_v15 = vadd.f32 %v307_v61, %v275_v6  ;;  %v242_v17 = vmul.f32 %v560_v0, %v205_v1  ;;  %v212_v38 = vld [vmem:[%s566_s19 + $0xa8] sm:$0xff]  ;;  %v313_v42 = vld [vmem:[%s572_s22 + $0x80] sm:$0xff]  ;;  %v315_v47 = vld [vmem:[%s572_s22 + $0x90] sm:$0xff] }
  0x1e   : > { %401 = vst.msk [vmem:[%s608_s27 + $0x38] sm:$0xff] %vm393_vm0, %v368_v5  ;;  %v278_v16 = vadd.f32 %v578_v2, %v241_v9  ;;  %v243_v18 = vmul.f32 %v560_v0, %v206_v3  ;;  %v369_v21 = vmax.f32 %v337_v10, 0.0  ;;  %v340_v23 = vadd.f32 %v308_v7, %v276_v12  ;;  %v314_v43 = vld [vmem:[%s572_s22 + $0x88] sm:$0xff]  ;;  %v213_v50 = vld [vmem:[%s566_s19 + $0xb0] sm:$0xff]  ;;  %v214_v51 = vld [vmem:[%s566_s19 + $0xb8] sm:$0xff] }
  0x1f   : > { %v370_v22 = vmax.f32 %v338_v11, 0.0  ;;  %v341_v24 = vadd.f32 %v309_v8, %v277_v13  ;;  %v371_v28 = vmax.f32 %v339_v15, 0.0  ;;  %v279_v30 = vadd.f32 %v578_v2, %v242_v17  ;;  %v316_v55 = vld [vmem:[%s572_s22 + $0x98] sm:$0xff]  ;;  %v317_v56 = vld [vmem:[%s572_s22 + $0xa0] sm:$0xff]  ;;  %v318_v62 = vld [vmem:[%s572_s22 + $0xa8] sm:$0xff] }
  0x20   : > { %v342_v29 = vadd.f32 %v310_v14, %v278_v16  ;;  %v280_v31 = vadd.f32 %v578_v2, %v243_v18  ;;  %402 = vst.msk [vmem:[%s608_s27 + $0x40] sm:$0xff] %vm393_vm0, %v369_v21  ;;  %v372_v34 = vmax.f32 %v340_v23, 0.0  ;;  %v244_v36 = vmul.f32 %v560_v0, %v207_v19  ;;  %v215_v5 = vld [vmem:[%s566_s19 + $0xc0] sm:$0xff]  ;;  %v216_v6 = vld [vmem:[%s566_s19 + $0xc8] sm:$0xff]  ;;  %v319_v11 = vld [vmem:[%s572_s22 + $0xb0] sm:$0xff] }
  0x21   : > { %403 = vst.msk [vmem:[%s608_s27 + $0x48] sm:$0xff] %vm393_vm0, %v370_v22  ;;  %v373_v35 = vmax.f32 %v341_v24, 0.0  ;;  %v245_v37 = vmul.f32 %v560_v0, %v208_v20  ;;  %404 = vst.msk [vmem:[%s608_s27 + $0x50] sm:$0xff] %vm393_vm0, %v371_v28  ;;  %v343_v40 = vadd.f32 %v311_v25, %v279_v30  ;;  %v246_v44 = vmul.f32 %v560_v0, %v209_v27  ;;  %v320_v12 = vld [vmem:[%s572_s22 + $0xb8] sm:$0xff]  ;;  %v217_v13 = vld [vmem:[%s566_s19 + $0xd0] sm:$0xff] }
  0x22   : > { %v374_v39 = vmax.f32 %v342_v29, 0.0  ;;  %v344_v41 = vadd.f32 %v312_v26, %v280_v31  ;;  %405 = vst.msk [vmem:[%s608_s27 + $0x58] sm:$0xff] %vm393_vm0, %v372_v34  ;;  %v281_v45 = vadd.f32 %v578_v2, %v244_v36  ;;  %v247_v48 = vmul.f32 %v560_v0, %v210_v32  ;;  %v218_v18 = vld [vmem:[%s566_s19 + $0xd8] sm:$0xff]  ;;  %v219_v19 = vld [vmem:[%s566_s19 + $0xe0] sm:$0xff]  ;;  %v220_v24 = vld [vmem:[%s566_s19 + $0xe8] sm:$0xff] }
  0x23   : > { %406 = vst.msk [vmem:[%s608_s27 + $0x60] sm:$0xff] %vm393_vm0, %v373_v35  ;;  %v282_v46 = vadd.f32 %v578_v2, %v245_v37  ;;  %v248_v49 = vmul.f32 %v560_v0, %v211_v33  ;;  %v375_v52 = vmax.f32 %v343_v40, 0.0  ;;  %v283_v54 = vadd.f32 %v578_v2, %v246_v44  ;;  %v321_v28 = vld [vmem:[%s572_s22 + $0xc0] sm:$0xff]  ;;  %v322_v29 = vld [vmem:[%s572_s22 + $0xc8] sm:$0xff]  ;;  %v323_v33 = vld [vmem:[%s572_s22 + $0xd0] sm:$0xff] }
  0x24   : > { %407 = vst.msk [vmem:[%s608_s27 + $0x68] sm:$0xff] %vm393_vm0, %v374_v39  ;;  %v376_v53 = vmax.f32 %v344_v41, 0.0  ;;  %v249_v57 = vmul.f32 %v560_v0, %v212_v38  ;;  %v345_v58 = vadd.f32 %v313_v42, %v281_v45  ;;  %v284_v60 = vadd.f32 %v578_v2, %v247_v48  ;;  %v221_v36 = vld [vmem:[%s566_s19 + $0xf0] sm:$0xff]  ;;  %v222_v37 = vld [vmem:[%s566_s19 + $0xf8] sm:$0xff]  ;;  %v325_v42 = vld [vmem:[%s572_s22 + $0xe0] sm:$0xff] }
  0x25   : > { %v346_v59 = vadd.f32 %v314_v43, %v282_v46  ;;  %v285_v61 = vadd.f32 %v578_v2, %v248_v49  ;;  %408 = vst.msk [vmem:[%s608_s27 + $0x70] sm:$0xff] %vm393_vm0, %v375_v52  ;;  %v347_v63 = vadd.f32 %v315_v47, %v283_v54  ;;  %v250_v3 = vmul.f32 %v560_v0, %v213_v50  ;;  %v324_v41 = vld [vmem:[%s572_s22 + $0xd8] sm:$0xff]  ;;  %v326_v48 = vld [vmem:[%s572_s22 + $0xe8] sm:$0xff] }
  0x26   : > { %409 = vst.msk [vmem:[%s608_s27 + $0x78] sm:$0xff] %vm393_vm0, %v376_v53  ;;  %v286_v1 = vadd.f32 %v578_v2, %v249_v57  ;;  %v251_v4 = vmul.f32 %v560_v0, %v214_v51  ;;  %v377_v7 = vmax.f32 %v345_v58, 0.0  ;;  %v348_v9 = vadd.f32 %v316_v55, %v284_v60  ;;  %v327_v57 = vld [vmem:[%s572_s22 + $0xf0] sm:$0xff]  ;;  %v328_v58 = vld [vmem:[%s572_s22 + $0xf8] sm:$0xff] }
  0x27   : > { %v378_v8 = vmax.f32 %v346_v59, 0.0  ;;  %v349_v10 = vadd.f32 %v317_v56, %v285_v61  ;;  %v379_v14 = vmax.f32 %v347_v63, 0.0  ;;  %v287_v16 = vadd.f32 %v578_v2, %v250_v3 }
  0x28   : > { %v350_v15 = vadd.f32 %v318_v62, %v286_v1  ;;  %v288_v17 = vadd.f32 %v578_v2, %v251_v4  ;;  %410 = vst.msk [vmem:[%s608_s27 + $0x80] sm:$0xff] %vm393_vm0, %v377_v7  ;;  %v380_v20 = vmax.f32 %v348_v9, 0.0  ;;  %v252_v22 = vmul.f32 %v560_v0, %v215_v5 }
  0x29   : > { %411 = vst.msk [vmem:[%s608_s27 + $0x88] sm:$0xff] %vm393_vm0, %v378_v8  ;;  %v381_v21 = vmax.f32 %v349_v10, 0.0  ;;  %v253_v23 = vmul.f32 %v560_v0, %v216_v6  ;;  %412 = vst.msk [vmem:[%s608_s27 + $0x90] sm:$0xff] %vm393_vm0, %v379_v14  ;;  %v351_v26 = vadd.f32 %v319_v11, %v287_v16  ;;  %v254_v30 = vmul.f32 %v560_v0, %v217_v13 }
  0x2a   : > { %v382_v25 = vmax.f32 %v350_v15, 0.0  ;;  %v352_v27 = vadd.f32 %v320_v12, %v288_v17  ;;  %413 = vst.msk [vmem:[%s608_s27 + $0x98] sm:$0xff] %vm393_vm0, %v380_v20  ;;  %v289_v31 = vadd.f32 %v578_v2, %v252_v22  ;;  %v255_v34 = vmul.f32 %v560_v0, %v218_v18 }
  0x2b   : > { %414 = vst.msk [vmem:[%s608_s27 + $0xa0] sm:$0xff] %vm393_vm0, %v381_v21  ;;  %v290_v32 = vadd.f32 %v578_v2, %v253_v23  ;;  %v256_v35 = vmul.f32 %v560_v0, %v219_v19  ;;  %v383_v38 = vmax.f32 %v351_v26, 0.0  ;;  %v291_v40 = vadd.f32 %v578_v2, %v254_v30 }
  0x2c   : > { %415 = vst.msk [vmem:[%s608_s27 + $0xa8] sm:$0xff] %vm393_vm0, %v382_v25  ;;  %v384_v39 = vmax.f32 %v352_v27, 0.0  ;;  %v257_v43 = vmul.f32 %v560_v0, %v220_v24  ;;  %v353_v44 = vadd.f32 %v321_v28, %v289_v31  ;;  %v292_v46 = vadd.f32 %v578_v2, %v255_v34 }
  0x2d   : > { %v354_v45 = vadd.f32 %v322_v29, %v290_v32  ;;  %v293_v47 = vadd.f32 %v578_v2, %v256_v35  ;;  %416 = vst.msk [vmem:[%s608_s27 + $0xb0] sm:$0xff] %vm393_vm0, %v383_v38  ;;  %v355_v49 = vadd.f32 %v323_v33, %v291_v40  ;;  %v258_v51 = vmul.f32 %v560_v0, %v221_v36 }
  0x2e   : > { %417 = vst.msk [vmem:[%s608_s27 + $0xb8] sm:$0xff] %vm393_vm0, %v384_v39  ;;  %v294_v50 = vadd.f32 %v578_v2, %v257_v43  ;;  %v259_v52 = vmul.f32 %v560_v0, %v222_v37  ;;  %v385_v53 = vmax.f32 %v353_v44, 0.0  ;;  %v356_v55 = vadd.f32 %v324_v41, %v292_v46 }
  0x2f   : > { %v386_v54 = vmax.f32 %v354_v45, 0.0  ;;  %v357_v56 = vadd.f32 %v325_v42, %v293_v47  ;;  %v387_v59 = vmax.f32 %v355_v49, 0.0  ;;  %v295_v61 = vadd.f32 %v578_v2, %v258_v51 }
  0x30   : > { %v358_v60 = vadd.f32 %v326_v48, %v294_v50  ;;  %v296_v62 = vadd.f32 %v578_v2, %v259_v52  ;;  %418 = vst.msk [vmem:[%s608_s27 + $0xc0] sm:$0xff] %vm393_vm0, %v385_v53  ;;  %v388_v0 = vmax.f32 %v356_v55, 0.0 }
  0x31   : > { %419 = vst.msk [vmem:[%s608_s27 + $0xc8] sm:$0xff] %vm393_vm0, %v386_v54  ;;  %v389_v63 = vmax.f32 %v357_v56, 0.0  ;;  %420 = vst.msk [vmem:[%s608_s27 + $0xd0] sm:$0xff] %vm393_vm0, %v387_v59  ;;  %v359_v3 = vadd.f32 %v327_v57, %v295_v61 }
  0x32   : > { %v390_v1 = vmax.f32 %v358_v60, 0.0  ;;  %v360_v4 = vadd.f32 %v328_v58, %v296_v62  ;;  %421 = vst.msk [vmem:[%s608_s27 + $0xd8] sm:$0xff] %vm393_vm0, %v388_v0 }
  0x33   : > { %422 = vst.msk [vmem:[%s608_s27 + $0xe0] sm:$0xff] %vm393_vm0, %v389_v63  ;;  %v391_v5 = vmax.f32 %v359_v3, 0.0 }
  0x34   : > { %423 = vst.msk [vmem:[%s608_s27 + $0xe8] sm:$0xff] %vm393_vm0, %v390_v1  ;;  %v392_v6 = vmax.f32 %v360_v4, 0.0 }
  0x35   : > { %424 = vst.msk [vmem:[%s608_s27 + $0xf0] sm:$0xff] %vm393_vm0, %v391_v5 }
  0x36   : > { %425 = vst.msk [vmem:[%s608_s27 + $0xf8] sm:$0xff] %vm393_vm0, %v392_v6 }
  0x37 PF: > { %s13_s12 = sadd.s32 1, %s525_s12  }
  0x38   : > { %p10_p4 = scmp.ge.s32.totalorder %s13_s12, 4  }
  0x3a   :  { %12 = sbr.rel (!%p10_p4) target bundleno = 1 (0x1), region = 65 }

// kernel: bottleneck.6
= control target key start
LH: loop header
LB: loop body
LE: loop exit
PB: predicated region body
PF: predicated region fallthrough
CT: control target
= control target key end

     0   :  { %s1055_s18 = smov 0   ;;  %s1419_s0 = inlined_call_operand.vmem [shape: f32[2,16,16,4], index: 0, kind: input, shape index: {}]   ;;  %s1420_s1 = inlined_call_operand.vmem [shape: f32[2,4], index: 1, kind: input, shape index: {}]   ;;  %s1421_s2 = inlined_call_operand.vmem [shape: bf16[4,16], index: 2, kind: input, shape index: {}]   ;;  %s1422_s3 = inlined_call_operand.vmem [shape: f32[2,16,16,16], index: 3, kind: output, shape index: {0}]   ;;  %s1423_s4 = inlined_call_operand.vmem [shape: f32[2,1,16], index: 4, kind: output, shape index: {1}]   ;;  %s1424_s5 = inlined_call_operand.vmem [shape: f32[2,1,16], index: 5, kind: output, shape index: {2}]  }
   0x1 LB: > { %s923_s19 = sadd.s32 4294967295, %s1023_s18   ;;  %p927_p0 = scmp.ge.s32.totalorder %s1023_s18, 1  ;;  %s1023_s18 = sphi %s1055_s18, %s16_s18  }
   0x2   : > { %p192_p1 = scmp.lt.s32.totalorder %s1023_s18, 3 }
   0x4   : > { %p193_p2 = pnand %p927_p0, %p192_p1 }
   0x5   : > { %v397_v0 = vld [vmem:[%s1421_s2] sm:$0x3] (!%p193_p2)  ;;  %vm447_vm0 = vcmask (!%p193_p2), 1041408   ;;  %p226_p3 = scmp.lt.s32.totalorder (!%p193_p2), %s923_s19, 1  ;;  %vm398_vm1 = vcmask (!%p193_p2), 31744   ;;  %vm612_vm2 = vcmask (!%p193_p2), 130048  }
   0x6   : > { %196 = sbr.rel (%p193_p2) target bundleno = 319 (0x13f), region = 32  ;;  %1007 = vmatprep.subr.msk.bf16.mxu0 (!%p193_p2), %vm447_vm0, %v397_v0  ;;  %v449_v1 = vsel (!%p193_p2), %vm447_vm0, %v397_v0, 0  ;;  %1008 = vmatprep.subr.msk.bf16.mxu1 (!%p193_p2), %vm447_vm0, %v397_v0  ;;  %v1072_v2 = vld [vmem:[%s1420_s1] ss:$0 sm:$0xff] (!%p193_p2)  ;;  %v1084_v3 = vld [vmem:[%s1420_s1 + $0x1] ss:$0 sm:$0xff] (!%p193_p2) }
   0x7   : > { %972 = vmatpush3.bf16.msra.mxu0 (!%p193_p2), %v449_v1  ;;  %1006 = vmatpush3.bf16.msra.mxu1 (!%p193_p2), %v449_v1  ;;  %vm714_vm3 = vcmask (!%p193_p2), 122880  }
   0xd   : > { %s1426_s19 = smov (!%p226_p3, %s923_s19), 1 }
   0xe   : > { %s952_s22 = sshll.u32 %s1426_s19, 8  ;;  %s238_s10 = scalar_lea.vmem %s1423_s4, %s1426_s19 }
   0xf   : > { %s1079_s27 = scalar_lea.vmem %s1419_s0, %s952_s22  ;;  %s1206_s7 = scalar_lea.vmem %s1422_s3, %s952_s22 }
  0x10   : > { %v243_v4 = vld [vmem:[%s1079_s27] sm:$0xff]  ;;  %v244_v5 = vld [vmem:[%s1079_s27 + $0x8] sm:$0xff]  ;;  %v245_v6 = vld [vmem:[%s1079_s27 + $0x10] sm:$0xff]  ;;  %s241_s13 = scalar_lea.vmem %s1424_s5, %s1426_s19 }
  0x11   : > { %v280_v7 = vmul.f32 %v1072_v2, %v243_v4  ;;  %v281_v8 = vmul.f32 %v1072_v2, %v244_v5  ;;  %v246_v9 = vld [vmem:[%s1079_s27 + $0x18] sm:$0xff]  ;;  %v282_v10 = vmul.f32 %v1072_v2, %v245_v6  ;;  %v247_v11 = vld [vmem:[%s1079_s27 + $0x20] sm:$0xff]  ;;  %v248_v12 = vld [vmem:[%s1079_s27 + $0x28] sm:$0xff] }
  0x12   : > { %v283_v13 = vmul.f32 %v1072_v2, %v246_v9  ;;  %v284_v14 = vmul.f32 %v1072_v2, %v247_v11  ;;  %v285_v15 = vmul.f32 %v1072_v2, %v248_v12  ;;  %v249_v16 = vld [vmem:[%s1079_s27 + $0x30] sm:$0xff]  ;;  %v250_v17 = vld [vmem:[%s1079_s27 + $0x38] sm:$0xff]  ;;  %v251_v26 = vld [vmem:[%s1079_s27 + $0x40] sm:$0xff] }
  0x13   : > { %v317_v18 = vadd.f32 %v1084_v3, %v280_v7  ;;  %v318_v19 = vadd.f32 %v1084_v3, %v281_v8  ;;  %v319_v20 = vadd.f32 %v1084_v3, %v282_v10  ;;  %v286_v21 = vmul.f32 %v1072_v2, %v249_v16  ;;  %v252_v27 = vld [vmem:[%s1079_s27 + $0x48] sm:$0xff]  ;;  %v253_v32 = vld [vmem:[%s1079_s27 + $0x50] sm:$0xff]  ;;  %v254_v37 = vld [vmem:[%s1079_s27 + $0x58] sm:$0xff] }
  0x14   : > { %v320_v22 = vadd.f32 %v1084_v3, %v283_v13  ;;  %v321_v23 = vadd.f32 %v1084_v3, %v284_v14  ;;  %v322_v24 = vadd.f32 %v1084_v3, %v285_v15  ;;  %v287_v25 = vmul.f32 %v1072_v2, %v250_v17  ;;  %v255_v38 = vld [vmem:[%s1079_s27 + $0x60] sm:$0xff]  ;;  %v256_v43 = vld [vmem:[%s1079_s27 + $0x68] sm:$0xff]  ;;  %v257_v44 = vld [vmem:[%s1079_s27 + $0x70] sm:$0xff] }
  0x15   : > { %v349_v28 = vmax.f32 %v317_v18, 0.0  ;;  %v350_v29 = vmax.f32 %v318_v19, 0.0  ;;  %v351_v30 = vmax.f32 %v319_v20, 0.0  ;;  %v323_v31 = vadd.f32 %v1084_v3, %v286_v21  ;;  %v258_v53 = vld [vmem:[%s1079_s27 + $0x78] sm:$0xff]  ;;  %v259_v57 = vld [vmem:[%s1079_s27 + $0x80] sm:$0xff]  ;;  %v260_v62 = vld [vmem:[%s1079_s27 + $0x88] sm:$0xff] }
  0x16   : > { %v352_v33 = vmax.f32 %v320_v22, 0.0  ;;  %v353_v34 = vmax.f32 %v321_v23, 0.0  ;;  %v354_v35 = vmax.f32 %v322_v24, 0.0  ;;  %v324_v36 = vadd.f32 %v1084_v3, %v287_v25  ;;  %v261_v1 = vld [vmem:[%s1079_s27 + $0x90] sm:$0xff]  ;;  %v262_v4 = vld [vmem:[%s1079_s27 + $0x98] sm:$0xff]  ;;  %v263_v8 = vld [vmem:[%s1079_s27 + $0xa0] sm:$0xff] }
  0x17   : > { %v381_v39 = vpack.c.bf16 %v350_v29, %v349_v28  ;;  %v355_v40 = vmax.f32 %v323_v31, 0.0  ;;  %v288_v41 = vmul.f32 %v1072_v2, %v251_v26  ;;  %v289_v42 = vmul.f32 %v1072_v2, %v252_v27  ;;  %v264_v13 = vld [vmem:[%s1079_s27 + $0xa8] sm:$0xff]  ;;  %v265_v18 = vld [vmem:[%s1079_s27 + $0xb0] sm:$0xff]  ;;  %v266_v23 = vld [vmem:[%s1079_s27 + $0xb8] sm:$0xff] }
  0x18   : > { %v382_v45 = vpack.c.bf16 %v352_v33, %v351_v30  ;;  %v383_v46 = vpack.c.bf16 %v354_v35, %v353_v34  ;;  %v356_v47 = vmax.f32 %v324_v36, 0.0  ;;  %v290_v48 = vmul.f32 %v1072_v2, %v253_v32  ;;  %v267_v28 = vld [vmem:[%s1079_s27 + $0xc0] sm:$0xff]  ;;  %v268_v33 = vld [vmem:[%s1079_s27 + $0xc8] sm:$0xff] }
  0x19   : > { %973 = vmatprep.mubr.msk.bf16.mxu0 %vm398_vm1, %v381_v39  ;;  %v325_v49 = vadd.f32 %v1084_v3, %v288_v41  ;;  %v326_v50 = vadd.f32 %v1084_v3, %v289_v42  ;;  %v291_v51 = vmul.f32 %v1072_v2, %v254_v37  ;;  %v292_v52 = vmul.f32 %v1072_v2, %v255_v38  ;;  %v269_v38 = vld [vmem:[%s1079_s27 + $0xd0] sm:$0xff] }
  0x1a   : > { %974 = vmatmul.mubr.msk.bf16.vlgmr.msra.gmra.mrb[0].mxu0 %vm398_vm1, %v382_v45  ;;  %v327_v54 = vadd.f32 %v1084_v3, %v290_v48  ;;  %v293_v55 = vmul.f32 %v1072_v2, %v256_v43  ;;  %v294_v56 = vmul.f32 %v1072_v2, %v257_v44  ;;  %v295_v0 = vmul.f32 %v1072_v2, %v258_v53  ;;  %v270_v43 = vld [vmem:[%s1079_s27 + $0xd8] sm:$0xff]  ;;  %v271_v48 = vld [vmem:[%s1079_s27 + $0xe0] sm:$0xff] }
  0x1b   : > { %977 = vmatprep.mubr.msk.bf16.mxu0 %vm398_vm1, %v383_v46  ;;  %v357_v58 = vmax.f32 %v325_v49, 0.0  ;;  %v358_v59 = vmax.f32 %v326_v50, 0.0  ;;  %v328_v60 = vadd.f32 %v1084_v3, %v291_v51  ;;  %v329_v61 = vadd.f32 %v1084_v3, %v292_v52  ;;  %v272_v49 = vld [vmem:[%s1079_s27 + $0xe8] sm:$0xff] }
  0x1c   : > { %v330_v63 = vadd.f32 %v1084_v3, %v293_v55  ;;  %v384_v5 = vpack.c.bf16 %v356_v47, %v355_v40  ;;  %v359_v6 = vmax.f32 %v327_v54, 0.0  ;;  %v296_v7 = vmul.f32 %v1072_v2, %v259_v57 }
  0x1d   : > { %v385_v9 = vpack.c.bf16 %v358_v59, %v357_v58  ;;  %v360_v10 = vmax.f32 %v328_v60, 0.0  ;;  %v1142_v11 = vadd.f32 %v1084_v3, %v294_v56  ;;  %v297_v12 = vmul.f32 %v1072_v2, %v260_v62 }
  0x1e   : > { %v361_v14 = vmax.f32 %v329_v61, 0.0  ;;  %v333_v15 = vadd.f32 %v1084_v3, %v296_v7  ;;  %v298_v16 = vmul.f32 %v1072_v2, %v261_v1  ;;  %v299_v17 = vmul.f32 %v1072_v2, %v262_v4 }
  0x1f   : > { %v362_v19 = vmax.f32 %v330_v63, 0.0  ;;  %v332_v20 = vadd.f32 %v1084_v3, %v295_v0  ;;  %v334_v21 = vadd.f32 %v1084_v3, %v297_v12  ;;  %v300_v22 = vmul.f32 %v1072_v2, %v263_v8  ;;  %v273_v8 = vld [vmem:[%s1079_s27 + $0xf0] sm:$0xff] }
  0x20   : > { %v365_v24 = vmax.f32 %v333_v15, 0.0  ;;  %v335_v25 = vadd.f32 %v1084_v3, %v298_v16  ;;  %v336_v26 = vadd.f32 %v1084_v3, %v299_v17  ;;  %v301_v27 = vmul.f32 %v1072_v2, %v264_v13 }
  0x21   : > { %v386_v29 = vpack.c.bf16 %v360_v10, %v359_v6  ;;  %v366_v30 = vmax.f32 %v334_v21, 0.0  ;;  %v337_v31 = vadd.f32 %v1084_v3, %v300_v22  ;;  %v302_v32 = vmul.f32 %v1072_v2, %v265_v18 }
  0x22   : > { %978 = vmatmul.mubr.msk.bf16.gmra.mrb[4].mxu0 %vm398_vm1, %v384_v5  ;;  %v367_v34 = vmax.f32 %v335_v25, 0.0  ;;  %v368_v35 = vmax.f32 %v336_v26, 0.0  ;;  %v338_v36 = vadd.f32 %v1084_v3, %v301_v27  ;;  %v303_v37 = vmul.f32 %v1072_v2, %v266_v23 }
  0x23   : > { %981 = vmatprep.mubr.msk.bf16.mxu0 %vm398_vm1, %v385_v9  ;;  %v389_v39 = vpack.c.bf16 %v366_v30, %v365_v24  ;;  %v369_v40 = vmax.f32 %v337_v31, 0.0  ;;  %v339_v41 = vadd.f32 %v1084_v3, %v302_v32  ;;  %v304_v42 = vmul.f32 %v1072_v2, %v267_v28  ;;  %v274_v9 = vld [vmem:[%s1079_s27 + $0xf8] sm:$0xff] }
  0x24   : > { %v390_v44 = vpack.c.bf16 %v368_v35, %v367_v34  ;;  %v370_v45 = vmax.f32 %v338_v36, 0.0  ;;  %v340_v46 = vadd.f32 %v1084_v3, %v303_v37  ;;  %v305_v47 = vmul.f32 %v1072_v2, %v268_v33 }
  0x25   : > { %v387_v50 = vpack.c.bf16 %v362_v19, %v361_v14  ;;  %989 = vmatprep.mubr.msk.bf16.mxu1 %vm398_vm1, %v389_v39  ;;  %v371_v51 = vmax.f32 %v339_v41, 0.0  ;;  %v341_v52 = vadd.f32 %v1084_v3, %v304_v42  ;;  %v306_v53 = vmul.f32 %v1072_v2, %v269_v38 }
  0x26   : > { %990 = vmatmul.mubr.msk.bf16.vlgmr.msra.gmra.mrb[0].mxu1 %vm398_vm1, %v390_v44  ;;  %v391_v54 = vpack.c.bf16 %v370_v45, %v369_v40  ;;  %v372_v55 = vmax.f32 %v340_v46, 0.0  ;;  %v342_v56 = vadd.f32 %v1084_v3, %v305_v47  ;;  %v307_v57 = vmul.f32 %v1072_v2, %v270_v43 }
  0x27   : > { %v373_v58 = vmax.f32 %v341_v52, 0.0  ;;  %v308_v59 = vmul.f32 %v1072_v2, %v271_v48  ;;  %v309_v60 = vmul.f32 %v1072_v2, %v272_v49  ;;  %v363_v62 = vmax.f32 %v1142_v11, 0.0 }
  0x28   : > { %993 = vmatprep.mubr.msk.bf16.mxu1 %vm398_vm1, %v391_v54  ;;  %v374_v61 = vmax.f32 %v342_v56, 0.0  ;;  %v364_v63 = vmax.f32 %v332_v20, 0.0  ;;  %v392_v0 = vpack.c.bf16 %v372_v55, %v371_v51  ;;  %v343_v1 = vadd.f32 %v1084_v3, %v306_v53 }
  0x29   : > { %v344_v4 = vadd.f32 %v1084_v3, %v307_v57  ;;  %v345_v6 = vadd.f32 %v1084_v3, %v308_v59  ;;  %v346_v7 = vadd.f32 %v1084_v3, %v309_v60  ;;  %v310_v13 = vmul.f32 %v1072_v2, %v273_v8 }
  0x2a   : > { %982 = vmatmul.mubr.msk.bf16.gmra.mrb[8].mxu0 %vm398_vm1, %v386_v29  ;;  %v393_v5 = vpack.c.bf16 %v374_v61, %v373_v58  ;;  %v388_v10 = vpack.c.bf16 %v364_v63, %v363_v62  ;;  %v375_v12 = vmax.f32 %v343_v1, 0.0  ;;  %v311_v14 = vmul.f32 %v1072_v2, %v274_v9 }
  0x2b   : > { %985 = vmatprep.mubr.msk.bf16.mxu0 %vm398_vm1, %v387_v50  ;;  %v376_v11 = vmax.f32 %v344_v4, 0.0  ;;  %v377_v15 = vmax.f32 %v345_v6, 0.0  ;;  %v378_v16 = vmax.f32 %v346_v7, 0.0  ;;  %v347_v18 = vadd.f32 %v1084_v3, %v310_v13 }
  0x2c   : > { %v348_v19 = vadd.f32 %v1084_v3, %v311_v14 }
  0x2d   : > { %v394_v17 = vpack.c.bf16 %v376_v11, %v375_v12  ;;  %v395_v20 = vpack.c.bf16 %v378_v16, %v377_v15  ;;  %v379_v21 = vmax.f32 %v347_v18, 0.0 }
  0x2e   : > { %994 = vmatmul.mubr.msk.bf16.gmra.mrb[4].mxu1 %vm398_vm1, %v392_v0  ;;  %v380_v22 = vmax.f32 %v348_v19, 0.0 }
  0x2f   : > { %997 = vmatprep.mubr.msk.bf16.mxu1 %vm398_vm1, %v393_v5 }
  0x30   : > { %v396_v23 = vpack.c.bf16 %v380_v22, %v379_v21 }
  0x32   : > { %986 = vmatmul.mubr.msk.bf16.gmra.mrb[12].mxu0 %vm398_vm1, %v388_v10 }
  0x36   : > { %998 = vmatmul.mubr.msk.bf16.gmra.mrb[8].mxu1 %vm398_vm1, %v394_v17 }
  0x37   : > { %1001 = vmatprep.mubr.msk.bf16.mxu1 %vm398_vm1, %v395_v20 }
  0x3e   : > { %1002 = vmatmul.mubr.msk.bf16.gmra.mrb[12].mxu1 %vm398_vm1, %v396_v23 }
  0xed   : > { %v975_v2 = vpop.f32.mrb[0].mxu0 }
  0xee   : > { %615 = vst.msk [vmem:[%s1206_s7 + $0x10] sm:$0xff] %vm612_vm2, %v975_v2  ;;  %v485_v3 = vpop.f32.mrb[1].mxu0  ;;  %v718_v27 = vmul.f32 %v975_v2, %v975_v2  ;;  %v648_v32 = vsel %vm612_vm2, %v975_v2, 0.0 }
  0xef   : > { %613 = vst.msk [vmem:[%s1206_s7] sm:$0xff] %vm612_vm2, %v485_v3  ;;  %v716_v24 = vmul.f32 %v485_v3, %v485_v3  ;;  %v976_v25 = vpop.f32.mrb[2].mxu0  ;;  %v645_v28 = vsel %vm612_vm2, %v485_v3, 0.0 }
  0xf0   : > { %616 = vst.msk [vmem:[%s1206_s7 + $0x18] sm:$0xff] %vm612_vm2, %v976_v25  ;;  %v488_v26 = vpop.f32.mrb[3].mxu0  ;;  %v719_v34 = vmul.f32 %v976_v25, %v976_v25  ;;  %v751_v38 = vsel %vm612_vm2, %v718_v27, 0.0  ;;  %v650_v39 = vsel %vm612_vm2, %v976_v25, 0.0 }
  0xf1   : > { %614 = vst.msk [vmem:[%s1206_s7 + $0x8] sm:$0xff] %vm612_vm2, %v488_v26  ;;  %v646_v29 = vsel %vm612_vm2, %v488_v26, 0.0  ;;  %v717_v30 = vmul.f32 %v488_v26, %v488_v26  ;;  %v748_v33 = vsel %vm612_vm2, %v716_v24, 0.0 }
  0xf2   : > { %v647_v31 = vadd.f32 %v646_v29, %v645_v28  ;;  %v753_v44 = vsel %vm612_vm2, %v719_v34, 0.0 }
  0xf3   : > { %v749_v35 = vsel %vm612_vm2, %v717_v30, 0.0 }
  0xf4   : > { %v649_v36 = vadd.f32 %v648_v32, %v647_v31  ;;  %v750_v37 = vadd.f32 %v749_v35, %v748_v33 }
  0xf5   : > { %v979_v40 = vpop.f32.mrb[4].mxu0 }
  0xf6   : > { %v752_v41 = vadd.f32 %v751_v38, %v750_v37  ;;  %619 = vst.msk [vmem:[%s1206_s7 + $0x30] sm:$0xff] %vm612_vm2, %v979_v40  ;;  %v501_v42 = vpop.f32.mrb[5].mxu0  ;;  %v651_v43 = vadd.f32 %v650_v39, %v649_v36  ;;  %v722_v51 = vmul.f32 %v979_v40, %v979_v40  ;;  %v656_v58 = vsel %vm612_vm2, %v979_v40, 0.0 }
  0xf7   : > { %617 = vst.msk [vmem:[%s1206_s7 + $0x20] sm:$0xff] %vm612_vm2, %v501_v42  ;;  %v652_v45 = vsel %vm612_vm2, %v501_v42, 0.0  ;;  %v720_v46 = vmul.f32 %v501_v42, %v501_v42  ;;  %v980_v47 = vpop.f32.mrb[6].mxu0 }
  0xf8   : > { %v653_v48 = vadd.f32 %v652_v45, %v651_v43  ;;  %v754_v49 = vadd.f32 %v753_v44, %v752_v41  ;;  %620 = vst.msk [vmem:[%s1206_s7 + $0x38] sm:$0xff] %vm612_vm2, %v980_v47  ;;  %v504_v50 = vpop.f32.mrb[7].mxu0  ;;  %v723_v59 = vmul.f32 %v980_v47, %v980_v47  ;;  %v759_v1 = vsel %vm612_vm2, %v722_v51, 0.0 }
  0xf9   : > { %v755_v52 = vsel %vm612_vm2, %v720_v46, 0.0  ;;  %618 = vst.msk [vmem:[%s1206_s7 + $0x28] sm:$0xff] %vm612_vm2, %v504_v50  ;;  %v654_v53 = vsel %vm612_vm2, %v504_v50, 0.0  ;;  %v721_v54 = vmul.f32 %v504_v50, %v504_v50  ;;  %v1235_v57 = vpop.f32.mrb[0].mxu1  ;;  %v658_v4 = vsel %vm612_vm2, %v980_v47, 0.0 }
  0xfa   : > { %v756_v55 = vadd.f32 %v755_v52, %v754_v49  ;;  %v655_v56 = vadd.f32 %v654_v53, %v653_v48  ;;  %631 = vst.msk [vmem:[%s1206_s7 + $0x90] sm:$0xff] %vm612_vm2, %v1235_v57  ;;  %v1242_v61 = vpop.f32.mrb[1].mxu1  ;;  %v761_v10 = vsel %vm612_vm2, %v723_v59, 0.0 }
  0xfb   : > { %v757_v60 = vsel %vm612_vm2, %v721_v54, 0.0  ;;  %629 = vst.msk [vmem:[%s1206_s7 + $0x80] sm:$0xff] %vm612_vm2, %v1242_v61  ;;  %v1247_v0 = vpop.f32.mrb[2].mxu1  ;;  %v732_v53 = vmul.f32 %v1242_v61, %v1242_v61 }
  0xfc   : > { %v657_v62 = vadd.f32 %v656_v58, %v655_v56  ;;  %v758_v63 = vadd.f32 %v757_v60, %v756_v55  ;;  %632 = vst.msk [vmem:[%s1206_s7 + $0x98] sm:$0xff] %vm612_vm2, %v1247_v0  ;;  %v1254_v6 = vpop.f32.mrb[3].mxu1 }
  0xfd   : > { %v983_v5 = vpop.f32.mrb[8].mxu0  ;;  %630 = vst.msk [vmem:[%s1206_s7 + $0x88] sm:$0xff] %vm612_vm2, %v1254_v6 }
  0xfe   : > { %v760_v7 = vadd.f32 %v759_v1, %v758_v63  ;;  %623 = vst.msk [vmem:[%s1206_s7 + $0x50] sm:$0xff] %vm612_vm2, %v983_v5  ;;  %v517_v8 = vpop.f32.mrb[9].mxu0  ;;  %v659_v9 = vadd.f32 %v658_v4, %v657_v62  ;;  %v726_v17 = vmul.f32 %v983_v5, %v983_v5  ;;  %v664_v2 = vsel %vm612_vm2, %v983_v5, 0.0 }
  0xff   : > { %621 = vst.msk [vmem:[%s1206_s7 + $0x40] sm:$0xff] %vm612_vm2, %v517_v8  ;;  %v660_v12 = vsel %vm612_vm2, %v517_v8, 0.0  ;;  %v724_v11 = vmul.f32 %v517_v8, %v517_v8  ;;  %v984_v13 = vpop.f32.mrb[10].mxu0  ;;  %v676_v62 = vsel %vm612_vm2, %v1242_v61, 0.0  ;;  %v733_v8 = vmul.f32 %v1254_v6, %v1254_v6 }
 0x100   : > { %v661_v14 = vadd.f32 %v660_v12, %v659_v9  ;;  %v762_v15 = vadd.f32 %v761_v10, %v760_v7  ;;  %624 = vst.msk [vmem:[%s1206_s7 + $0x58] sm:$0xff] %vm612_vm2, %v984_v13  ;;  %v520_v16 = vpop.f32.mrb[11].mxu0  ;;  %v727_v3 = vmul.f32 %v984_v13, %v984_v13  ;;  %v767_v29 = vsel %vm612_vm2, %v726_v17, 0.0 }
 0x101   : > { %v763_v18 = vsel %vm612_vm2, %v724_v11, 0.0  ;;  %622 = vst.msk [vmem:[%s1206_s7 + $0x48] sm:$0xff] %vm612_vm2, %v520_v16  ;;  %v662_v19 = vsel %vm612_vm2, %v520_v16, 0.0  ;;  %v725_v20 = vmul.f32 %v520_v16, %v520_v16  ;;  %v1271_v23 = vpop.f32.mrb[4].mxu1  ;;  %v666_v30 = vsel %vm612_vm2, %v984_v13, 0.0 }
 0x102   : > { %v764_v21 = vadd.f32 %v763_v18, %v762_v15  ;;  %v663_v22 = vadd.f32 %v662_v19, %v661_v14  ;;  %635 = vst.msk [vmem:[%s1206_s7 + $0xb0] sm:$0xff] %vm612_vm2, %v1271_v23  ;;  %v1278_v25 = vpop.f32.mrb[5].mxu1  ;;  %v769_v36 = vsel %vm612_vm2, %v727_v3, 0.0  ;;  %v779_v7 = vsel %vm612_vm2, %v732_v53, 0.0 }
 0x103   : > { %v765_v24 = vsel %vm612_vm2, %v725_v20, 0.0  ;;  %633 = vst.msk [vmem:[%s1206_s7 + $0xa0] sm:$0xff] %vm612_vm2, %v1278_v25  ;;  %v1283_v28 = vpop.f32.mrb[6].mxu1  ;;  %v734_v61 = vmul.f32 %v1235_v57, %v1235_v57  ;;  %v678_v12 = vsel %vm612_vm2, %v1254_v6, 0.0  ;;  %v680_v15 = vsel %vm612_vm2, %v1235_v57, 0.0 }
 0x104   : > { %v665_v26 = vadd.f32 %v664_v2, %v663_v22  ;;  %v766_v27 = vadd.f32 %v765_v24, %v764_v21  ;;  %636 = vst.msk [vmem:[%s1206_s7 + $0xb8] sm:$0xff] %vm612_vm2, %v1283_v28  ;;  %v1290_v32 = vpop.f32.mrb[7].mxu1  ;;  %v735_v16 = vmul.f32 %v1247_v0, %v1247_v0  ;;  %v781_v17 = vsel %vm612_vm2, %v733_v8, 0.0 }
 0x105   : > { %v987_v31 = vpop.f32.mrb[12].mxu0  ;;  %634 = vst.msk [vmem:[%s1206_s7 + $0xa8] sm:$0xff] %vm612_vm2, %v1290_v32  ;;  %v736_v18 = vmul.f32 %v1278_v25, %v1278_v25  ;;  %v783_v57 = vsel %vm612_vm2, %v734_v61, 0.0  ;;  %v682_v22 = vsel %vm612_vm2, %v1247_v0, 0.0  ;;  %v684_v2 = vsel %vm612_vm2, %v1278_v25, 0.0 }
 0x106   : > { %v768_v33 = vadd.f32 %v767_v29, %v766_v27  ;;  %627 = vst.msk [vmem:[%s1206_s7 + $0x70] sm:$0xff] %vm612_vm2, %v987_v31  ;;  %v533_v34 = vpop.f32.mrb[13].mxu0  ;;  %v667_v35 = vadd.f32 %v666_v30, %v665_v26  ;;  %v730_v43 = vmul.f32 %v987_v31, %v987_v31  ;;  %v672_v50 = vsel %vm612_vm2, %v987_v31, 0.0 }
 0x107   : > { %625 = vst.msk [vmem:[%s1206_s7 + $0x60] sm:$0xff] %vm612_vm2, %v533_v34  ;;  %v668_v37 = vsel %vm612_vm2, %v533_v34, 0.0  ;;  %v728_v38 = vmul.f32 %v533_v34, %v533_v34  ;;  %v988_v39 = vpop.f32.mrb[14].mxu0  ;;  %v785_v29 = vsel %vm612_vm2, %v735_v16, 0.0  ;;  %v787_v30 = vsel %vm612_vm2, %v736_v18, 0.0 }
 0x108   : > { %v669_v40 = vadd.f32 %v668_v37, %v667_v35  ;;  %v770_v41 = vadd.f32 %v769_v36, %v768_v33  ;;  %628 = vst.msk [vmem:[%s1206_s7 + $0x78] sm:$0xff] %vm612_vm2, %v988_v39  ;;  %v536_v42 = vpop.f32.mrb[15].mxu0  ;;  %v731_v51 = vmul.f32 %v988_v39, %v988_v39  ;;  %v775_v59 = vsel %vm612_vm2, %v730_v43, 0.0 }
 0x109   : > { %v771_v44 = vsel %vm612_vm2, %v728_v38, 0.0  ;;  %626 = vst.msk [vmem:[%s1206_s7 + $0x68] sm:$0xff] %vm612_vm2, %v536_v42  ;;  %v670_v45 = vsel %vm612_vm2, %v536_v42, 0.0  ;;  %v729_v46 = vmul.f32 %v536_v42, %v536_v42  ;;  %v1307_v49 = vpop.f32.mrb[8].mxu1  ;;  %v674_v60 = vsel %vm612_vm2, %v988_v39, 0.0 }
 0x10a   : > { %v772_v47 = vadd.f32 %v771_v44, %v770_v41  ;;  %v671_v48 = vadd.f32 %v670_v45, %v669_v40  ;;  %639 = vst.msk [vmem:[%s1206_s7 + $0xd0] sm:$0xff] %vm612_vm2, %v1307_v49  ;;  %v581_v54 = vpop.f32.mrb[9].mxu1  ;;  %v777_v5 = vsel %vm612_vm2, %v731_v51, 0.0  ;;  %v737_v0 = vmul.f32 %v1290_v32, %v1290_v32 }
 0x10b   : > { %v773_v52 = vsel %vm612_vm2, %v729_v46, 0.0  ;;  %637 = vst.msk [vmem:[%s1206_s7 + $0xc0] sm:$0xff] %vm612_vm2, %v581_v54  ;;  %v1318_v58 = vpop.f32.mrb[10].mxu1  ;;  %v738_v34 = vmul.f32 %v1271_v23, %v1271_v23  ;;  %v686_v35 = vsel %vm612_vm2, %v1290_v32, 0.0  ;;  %v688_v38 = vsel %vm612_vm2, %v1271_v23, 0.0 }
 0x10c   : > { %v673_v55 = vadd.f32 %v672_v50, %v671_v48  ;;  %v774_v56 = vadd.f32 %v773_v52, %v772_v47  ;;  %640 = vst.msk [vmem:[%s1206_s7 + $0xd8] sm:$0xff] %vm612_vm2, %v1318_v58  ;;  %v584_v63 = vpop.f32.mrb[11].mxu1  ;;  %v739_v39 = vmul.f32 %v1283_v28, %v1283_v28  ;;  %v789_v40 = vsel %vm612_vm2, %v737_v0, 0.0 }
 0x10d   : > { %638 = vst.msk [vmem:[%s1206_s7 + $0xc8] sm:$0xff] %vm612_vm2, %v584_v63  ;;  %v740_v41 = vmul.f32 %v581_v54, %v581_v54  ;;  %v791_v44 = vsel %vm612_vm2, %v738_v34, 0.0  ;;  %v690_v45 = vsel %vm612_vm2, %v1283_v28, 0.0  ;;  %v692_v32 = vsel %vm612_vm2, %v581_v54, 0.0 }
 0x10e   : > { %v776_v1 = vadd.f32 %v775_v59, %v774_v56  ;;  %v675_v4 = vadd.f32 %v674_v60, %v673_v55  ;;  %v793_v48 = vsel %vm612_vm2, %v739_v39, 0.0  ;;  %v741_v50 = vmul.f32 %v584_v63, %v584_v63 }
 0x10f   : > { %v795_v23 = vsel %vm612_vm2, %v740_v41, 0.0  ;;  %v742_v53 = vmul.f32 %v1307_v49, %v1307_v49  ;;  %v694_v55 = vsel %vm612_vm2, %v584_v63, 0.0  ;;  %v696_v28 = vsel %vm612_vm2, %v1307_v49, 0.0 }
 0x110   : > { %v677_v9 = vadd.f32 %v676_v62, %v675_v4  ;;  %v778_v10 = vadd.f32 %v777_v5, %v776_v1  ;;  %v743_v54 = vmul.f32 %v1318_v58, %v1318_v58  ;;  %v797_v60 = vsel %vm612_vm2, %v741_v50, 0.0 }
 0x111   : > { %v1337_v14 = vpop.f32.mrb[12].mxu1  ;;  %v799_v5 = vsel %vm612_vm2, %v742_v53, 0.0 }
 0x112   : > { %v780_v11 = vadd.f32 %v779_v7, %v778_v10  ;;  %v679_v13 = vadd.f32 %v678_v12, %v677_v9  ;;  %643 = vst.msk [vmem:[%s1206_s7 + $0xf0] sm:$0xff] %vm612_vm2, %v1337_v14  ;;  %v597_v6 = vpop.f32.mrb[13].mxu1  ;;  %v698_v7 = vsel %vm612_vm2, %v1318_v58, 0.0  ;;  %v801_v10 = vsel %vm612_vm2, %v743_v54, 0.0 }
 0x113   : > { %641 = vst.msk [vmem:[%s1206_s7 + $0xe0] sm:$0xff] %vm612_vm2, %v597_v6  ;;  %v1351_v21 = vpop.f32.mrb[14].mxu1  ;;  %v744_v62 = vmul.f32 %v597_v6, %v597_v6  ;;  %v700_v63 = vsel %vm612_vm2, %v597_v6, 0.0  ;;  %v704_v58 = vsel %vm612_vm2, %v1337_v14, 0.0 }
 0x114   : > { %v681_v19 = vadd.f32 %v680_v15, %v679_v13  ;;  %v782_v20 = vadd.f32 %v781_v17, %v780_v11  ;;  %644 = vst.msk [vmem:[%s1206_s7 + $0xf8] sm:$0xff] %vm612_vm2, %v1351_v21  ;;  %v747_v3 = vmul.f32 %v1351_v21, %v1351_v21  ;;  %v600_v24 = vpop.f32.mrb[15].mxu1  ;;  %v746_v13 = vmul.f32 %v1337_v14, %v1337_v14 }
 0x115   : > { %642 = vst.msk [vmem:[%s1206_s7 + $0xe8] sm:$0xff] %vm612_vm2, %v600_v24  ;;  %v803_v49 = vsel %vm612_vm2, %v744_v62, 0.0  ;;  %v745_v61 = vmul.f32 %v600_v24, %v600_v24  ;;  %v702_v15 = vsel %vm612_vm2, %v600_v24, 0.0 }
 0x116   : > { %v784_v26 = vadd.f32 %v783_v57, %v782_v20  ;;  %v683_v27 = vadd.f32 %v682_v22, %v681_v19  ;;  %v809_v25 = vsel %vm612_vm2, %v747_v3, 0.0  ;;  %v807_v20 = vsel %vm612_vm2, %v746_v13, 0.0 }
 0x117   : > { %v805_v18 = vsel %vm612_vm2, %v745_v61, 0.0  ;;  %v706_v57 = vsel %vm612_vm2, %v1351_v21, 0.0 }
 0x118   : > { %v685_v31 = vadd.f32 %v684_v2, %v683_v27  ;;  %v786_v33 = vadd.f32 %v785_v29, %v784_v26 }
 0x11a   : > { %v788_v36 = vadd.f32 %v787_v30, %v786_v33  ;;  %v687_v37 = vadd.f32 %v686_v35, %v685_v31 }
 0x11c   : > { %v689_v42 = vadd.f32 %v688_v38, %v687_v37  ;;  %v790_v43 = vadd.f32 %v789_v40, %v788_v36 }
 0x11e   : > { %v792_v46 = vadd.f32 %v791_v44, %v790_v43  ;;  %v691_v47 = vadd.f32 %v690_v45, %v689_v42 }
 0x120   : > { %v693_v51 = vadd.f32 %v692_v32, %v691_v47  ;;  %v794_v52 = vadd.f32 %v793_v48, %v792_v46 }
 0x122   : > { %v796_v56 = vadd.f32 %v795_v23, %v794_v52  ;;  %v695_v59 = vadd.f32 %v694_v55, %v693_v51 }
 0x124   : > { %v697_v1 = vadd.f32 %v696_v28, %v695_v59  ;;  %v798_v4 = vadd.f32 %v797_v60, %v796_v56 }
 0x126   : > { %v800_v8 = vadd.f32 %v799_v5, %v798_v4  ;;  %v699_v9 = vadd.f32 %v698_v7, %v697_v1 }
 0x128   : > { %v701_v12 = vadd.f32 %v700_v63, %v699_v9  ;;  %v802_v11 = vadd.f32 %v801_v10, %v800_v8 }
 0x12a   : > { %v804_v16 = vadd.f32 %v803_v49, %v802_v11  ;;  %v703_v17 = vadd.f32 %v702_v15, %v701_v12 }
 0x12c   : > { %v705_v6 = vadd.f32 %v704_v58, %v703_v17  ;;  %v806_v19 = vadd.f32 %v805_v18, %v804_v16 }
 0x12e   : > { %v707_v22 = vadd.f32 %v706_v57, %v705_v6  ;;  %v808_v2 = vadd.f32 %v807_v20, %v806_v19 }
 0x130   : > { %v708_v3 = vrot.slane %v707_v22, 4  ;;  %v810_v24 = vadd.f32 %v809_v25, %v808_v2 }
 0x132   : > { %v709_v26 = vadd.f32 %v708_v3, %v707_v22  ;;  %v811_v27 = vrot.slane %v810_v24, 4 }
 0x134   : > { %v710_v29 = vrot.slane %v709_v26, 2  ;;  %v812_v30 = vadd.f32 %v811_v27, %v810_v24 }
 0x136   : > { %v711_v14 = vadd.f32 %v710_v29, %v709_v26  ;;  %v813_v0 = vrot.slane %v812_v30, 2 }
 0x138   : > { %v712_v31 = vrot.slane %v711_v14, 1  ;;  %v814_v33 = vadd.f32 %v813_v0, %v812_v30 }
 0x13a   : > { %v713_v34 = vadd.f32 %v712_v31, %v711_v14  ;;  %v815_v21 = vrot.slane %v814_v33, 1 }
 0x13c   : > { %715 = vst.msk [vmem:[%s238_s10] sm:$0x1] %vm714_vm3, %v713_v34  ;;  %v816_v25 = vadd.f32 %v815_v21, %v814_v33 }
 0x13e   : > { %817 = vst.msk [vmem:[%s241_s13] sm:$0x1] %vm714_vm3, %v816_v25 }
 0x13f PF: > { %s16_s18 = sadd.s32 1, %s1023_s18  }
 0x140   : > { %p13_p4 = scmp.ge.s32.totalorder %s16_s18, 4  }
 0x142   :  { %15 = sbr.rel (!%p13_p4) target bundleno = 1 (0x1), region = 86 }

// kernel: bottleneck.5
= control target key start
LH: loop header
LB: loop body
LE: loop exit
PB: predicated region body
PF: predicated region fallthrough
CT: control target
= control target key end

     0   :  { %s2257_s18 = smov 0   ;;  %s2912_s0 = inlined_call_operand.vmem [shape: f32[2,16,16,4], index: 0, kind: input, shape index: {}]   ;;  %s2913_s1 = inlined_call_operand.vmem [shape: f32[2,4], index: 1, kind: input, shape index: {}]   ;;  %s2914_s2 = inlined_call_operand.vmem [shape: bf16[3,12,4], index: 2, kind: input, shape index: {}]   ;;  %s2915_s3 = inlined_call_operand.vmem [shape: f32[2,16,16,4], index: 3, kind: output, shape index: {0}]   ;;  %s2916_s4 = inlined_call_operand.vmem [shape: f32[2,1,4], index: 4, kind: output, shape index: {1}]   ;;  %s2917_s5 = inlined_call_operand.vmem [shape: f32[2,1,4], index: 5, kind: output, shape index: {2}]  }
   0x1 LB: > { %s1909_s19 = sadd.s32 4294967295, %s2222_s18   ;;  %p1913_p0 = scmp.ge.s32.totalorder %s2222_s18, 1  ;;  %s2222_s18 = sphi %s2257_s18, %s16_s18  }
   0x2   : > { %p192_p1 = scmp.lt.s32.totalorder %s2222_s18, 3 }
   0x4   : > { %p193_p2 = pnand %p1913_p0, %p192_p1 }
   0x5   : > { %vm550_vm0 = vcmask (!%p193_p2), 1040384   ;;  %vm551_vm1 = vsmask.f32 (!%p193_p2), 256  ;;  %v2224_v0 = vmov (!%p193_p2), 0   ;;  %p226_p3 = scmp.lt.s32.totalorder (!%p193_p2), %s1909_s19, 1  ;;  %vm844_vm3 = vcmask (!%p193_p2), 1046528  }
   0x6   : > { %196 = sbr.rel (%p193_p2) target bundleno = 506 (0x1fa), region = 32  ;;  %v400_v1 = vrot.slane (!%p193_p2), %v2224_v0, 7  ;;  %vm2265_vm2 = vmand (!%p193_p2), %vm550_vm0, %vm551_vm1  ;;  %v2280_v5 = vld [vmem:[%s2913_s1] ss:$0 sm:$0xff] (!%p193_p2)  ;;  %v2289_v11 = vld [vmem:[%s2913_s1 + $0x1] ss:$0 sm:$0xff] (!%p193_p2) }
   0x7   : > { %s2225_s28 = smov (!%p193_p2), 8   ;;  %vm587_vm4 = vsmask.f32 (!%p193_p2), 7424  ;;  %s2226_s29 = smov (!%p193_p2), 4   ;;  %vm1059_vm5 = vcmask (!%p193_p2), 1045504   ;;  %vm925_vm6 = vcmask (!%p193_p2), 31744  }
   0x8   : > { %v2271_v3 = vsel (!%p193_p2), %vm2265_vm2, 0, %v400_v1  ;;  %v570_v4 = vsel (!%p193_p2), %vm2265_vm2, %v400_v1, 0  ;;  %vm958_vm7 = vcmask (!%p193_p2), 64512   ;;  %vm1026_vm8 = vcmask (!%p193_p2), 97280  }
   0x9   : > { %v845_v6 = vrot.slane (!%p193_p2), %v2271_v3, 1  ;;  %v846_v7 = vrot.slane (!%p193_p2), %v570_v4, 1  ;;  %v589_v8 = vshrl.u32 (!%p193_p2), %v2271_v3, 16  ;;  %v591_v9 = vshll.u32 (!%p193_p2), %v2271_v3, 16 }
   0xa   : > { %v596_v10 = vshll.u32 (!%p193_p2), %v570_v4, 16  ;;  %vm1700_vm9 = vcmask (!%p193_p2), 24576  }
   0xb   : > { %v847_v12 = vsel (!%p193_p2), %vm844_vm3, %v845_v6, %v846_v7  ;;  %v593_v13 = vrot.slane (!%p193_p2), %v591_v9, 1 }
   0xc   : > { %893 = vrot.lane.b32.xlu1 (!%p193_p2), %v847_v12, %s2225_s28  ;;  %v598_v14 = vrot.slane (!%p193_p2), %v596_v10, 1 }
   0xd   : > { %s2921_s19 = smov (!%p226_p3, %s1909_s19), 1  ;;  %v594_v18 = vor.u32 %v593_v13, %v589_v8 }
   0xe   : > { %s1977_s22 = sshll.u32 %s2921_s19, 8  ;;  %s238_s16 = scalar_lea.vmem %s2916_s4, %s2921_s19 }
   0xf   : > { %s2297_s27 = scalar_lea.vmem %s2912_s0, %s1977_s22  ;;  %v599_v30 = vsel %vm587_vm4, %v594_v18, %v598_v14  ;;  %s2763_s13 = scalar_lea.vmem %s2915_s3, %s1977_s22 }
  0x10   : > { %v245_v15 = vld [vmem:[%s2297_s27 + $0x10] sm:$0xff]  ;;  %v246_v16 = vld [vmem:[%s2297_s27 + $0x18] sm:$0xff]  ;;  %v243_v17 = vld [vmem:[%s2297_s27] sm:$0xff]  ;;  %780 = vrot.lane.b32.xlu0 %v599_v30, %s2226_s29  ;;  %s241_s21 = scalar_lea.vmem %s2917_s5, %s2921_s19 }
  0x11   : > { %v282_v19 = vmul.f32 %v2280_v5, %v245_v15  ;;  %v283_v20 = vmul.f32 %v2280_v5, %v246_v16  ;;  %v244_v21 = vld [vmem:[%s2297_s27 + $0x8] sm:$0xff]  ;;  %v280_v22 = vmul.f32 %v2280_v5, %v243_v17  ;;  %v249_v23 = vld [vmem:[%s2297_s27 + $0x30] sm:$0xff]  ;;  %v250_v24 = vld [vmem:[%s2297_s27 + $0x38] sm:$0xff] }
  0x12   : > { %v281_v25 = vmul.f32 %v2280_v5, %v244_v21  ;;  %v286_v26 = vmul.f32 %v2280_v5, %v249_v23  ;;  %v287_v27 = vmul.f32 %v2280_v5, %v250_v24  ;;  %v247_v28 = vld [vmem:[%s2297_s27 + $0x20] sm:$0xff]  ;;  %v248_v29 = vld [vmem:[%s2297_s27 + $0x28] sm:$0xff]  ;;  %v253_v38 = vld [vmem:[%s2297_s27 + $0x50] sm:$0xff] }
  0x13   : > { %v319_v31 = vadd.f32 %v2289_v11, %v282_v19  ;;  %v320_v32 = vadd.f32 %v2289_v11, %v283_v20  ;;  %v317_v33 = vadd.f32 %v2289_v11, %v280_v22  ;;  %v284_v37 = vmul.f32 %v2280_v5, %v247_v28  ;;  %v254_v39 = vld [vmem:[%s2297_s27 + $0x58] sm:$0xff]  ;;  %v251_v44 = vld [vmem:[%s2297_s27 + $0x40] sm:$0xff]  ;;  %v252_v61 = vld [vmem:[%s2297_s27 + $0x48] sm:$0xff] }
  0x14   : > { %v318_v34 = vadd.f32 %v2289_v11, %v281_v25  ;;  %v323_v35 = vadd.f32 %v2289_v11, %v286_v26  ;;  %v324_v36 = vadd.f32 %v2289_v11, %v287_v27  ;;  %v285_v43 = vmul.f32 %v2280_v5, %v248_v29 }
  0x15   : > { %v351_v40 = vmax.f32 %v319_v31, 0.0  ;;  %v352_v41 = vmax.f32 %v320_v32, 0.0  ;;  %v349_v42 = vmax.f32 %v317_v33, 0.0  ;;  %v321_v48 = vadd.f32 %v2289_v11, %v284_v37 }
  0x16   : > { %v350_v45 = vmax.f32 %v318_v34, 0.0  ;;  %v355_v46 = vmax.f32 %v323_v35, 0.0  ;;  %v356_v47 = vmax.f32 %v324_v36, 0.0  ;;  %v322_v50 = vadd.f32 %v2289_v11, %v285_v43 }
  0x17   : > { %v382_v49 = vpack.c.bf16 %v352_v41, %v351_v40  ;;  %v290_v51 = vmul.f32 %v2280_v5, %v253_v38  ;;  %v291_v52 = vmul.f32 %v2280_v5, %v254_v39  ;;  %v353_v55 = vmax.f32 %v321_v48, 0.0 }
  0x18   : > { %v381_v53 = vpack.c.bf16 %v350_v45, %v349_v42  ;;  %v384_v54 = vpack.c.bf16 %v356_v47, %v355_v46  ;;  %v288_v56 = vmul.f32 %v2280_v5, %v251_v44  ;;  %v354_v59 = vmax.f32 %v322_v50, 0.0 }
  0x19   : > { %v412_v57 = vshrl.u32 %v382_v49, 16  ;;  %v415_v58 = vshll.u32 %v382_v49, 16  ;;  %v2333_v60 = vadd.f32 %v2289_v11, %v290_v51  ;;  %v2337_v7 = vadd.f32 %v2289_v11, %v291_v52 }
  0x1a   : > { %v405_v62 = vshrl.u32 %v381_v53, 16  ;;  %v408_v63 = vshll.u32 %v381_v53, 16  ;;  %v426_v0 = vshrl.u32 %v384_v54, 16  ;;  %v429_v4 = vshll.u32 %v384_v54, 16 }
  0x1b   : > { %v414_v1 = vrot.slane %v412_v57, 7  ;;  %v383_v6 = vpack.c.bf16 %v354_v59, %v353_v55  ;;  %v359_v10 = vmax.f32 %v2333_v60, 0.0  ;;  %v289_v12 = vmul.f32 %v2280_v5, %v252_v61  ;;  %v257_v61 = vld [vmem:[%s2297_s27 + $0x70] sm:$0xff] }
  0x1c   : > { %v407_v8 = vrot.slane %v405_v62, 7  ;;  %v428_v9 = vrot.slane %v426_v0, 7  ;;  %v2344_v16 = vadd.f32 %v2289_v11, %v288_v56  ;;  %v360_v59 = vmax.f32 %v2337_v7, 0.0  ;;  %v258_v62 = vld [vmem:[%s2297_s27 + $0x78] sm:$0xff] }
  0x1d   : > { %v417_v13 = vor.u32 %v415_v58, %v414_v1  ;;  %v572_v14 = vsel %vm2265_vm2, %v414_v1, 0  ;;  %v419_v15 = vshrl.u32 %v383_v6, 16  ;;  %v422_v20 = vshll.u32 %v383_v6, 16 }
  0x1e   : > { %v620_v17 = vshll.u32 %v572_v14, 16  ;;  %v410_v18 = vor.u32 %v408_v63, %v407_v8  ;;  %v571_v19 = vsel %vm2265_vm2, %v407_v8, 0  ;;  %v852_v23 = vrot.slane %v572_v14, 1  ;;  %v255_v63 = vld [vmem:[%s2297_s27 + $0x60] sm:$0xff] }
  0x1f   : > { %v2350_v21 = vsel %vm2265_vm2, 0, %v417_v13  ;;  %v608_v22 = vshll.u32 %v571_v19, 16  ;;  %v431_v24 = vor.u32 %v429_v4, %v428_v9  ;;  %v849_v28 = vrot.slane %v571_v19, 1 }
  0x20   : > { %v613_v25 = vshrl.u32 %v2350_v21, 16  ;;  %v615_v26 = vshll.u32 %v2350_v21, 16  ;;  %v2356_v27 = vsel %vm2265_vm2, 0, %v410_v18  ;;  %v622_v29 = vrot.slane %v620_v17, 1 }
  0x21   : > { %v601_v30 = vshrl.u32 %v2356_v27, 16  ;;  %v603_v31 = vshll.u32 %v2356_v27, 16  ;;  %v851_v32 = vrot.slane %v2350_v21, 1  ;;  %v610_v34 = vrot.slane %v608_v22, 1 }
  0x22   : > { %v617_v33 = vrot.slane %v615_v26, 1  ;;  %v2363_v35 = vsel %vm2265_vm2, 0, %v431_v24  ;;  %v574_v36 = vsel %vm2265_vm2, %v428_v9, 0  ;;  %v848_v38 = vrot.slane %v2356_v27, 1 }
  0x23   : > { %v605_v37 = vrot.slane %v603_v31, 1  ;;  %v637_v39 = vshrl.u32 %v2363_v35, 16  ;;  %v639_v40 = vshll.u32 %v2363_v35, 16  ;;  %v853_v42 = vsel %vm844_vm3, %v851_v32, %v852_v23 }
  0x24   : > { %v618_v41 = vor.u32 %v617_v33, %v613_v25  ;;  %v644_v43 = vshll.u32 %v574_v36, 16  ;;  %v421_v44 = vrot.slane %v419_v15, 7  ;;  %v857_v47 = vrot.slane %v2363_v35, 1  ;;  %v256_v15 = vld [vmem:[%s2297_s27 + $0x68] sm:$0xff] }
  0x25   : > { %v606_v45 = vor.u32 %v605_v37, %v601_v30  ;;  %v641_v46 = vrot.slane %v639_v40, 1  ;;  %v858_v48 = vrot.slane %v574_v36, 1  ;;  %v850_v54 = vsel %vm844_vm3, %v848_v38, %v849_v28  ;;  %v261_v40 = vld [vmem:[%s2297_s27 + $0x90] sm:$0xff] }
  0x26   : > { %v623_v49 = vsel %vm587_vm4, %v618_v41, %v622_v29  ;;  %v646_v50 = vrot.slane %v644_v43, 1  ;;  %v424_v51 = vor.u32 %v422_v20, %v421_v44  ;;  %v573_v52 = vsel %vm2265_vm2, %v421_v44, 0 }
  0x27   : > { %784 = vrot.lane.b32.xlu1 %v623_v49, %s2226_s29  ;;  %v611_v53 = vsel %vm587_vm4, %v606_v45, %v610_v34  ;;  %v642_v55 = vor.u32 %v641_v46, %v637_v39  ;;  %v632_v56 = vshll.u32 %v573_v52, 16  ;;  %v859_v58 = vsel %vm844_vm3, %v857_v47, %v858_v48 }
  0x28   : > { %782 = vrot.lane.b32.xlu0 %v611_v53, %s2226_s29  ;;  %v2381_v57 = vsel %vm2265_vm2, 0, %v424_v51  ;;  %v326_v60 = vadd.f32 %v2289_v11, %v289_v12  ;;  %v855_v6 = vrot.slane %v573_v52, 1  ;;  %v386_v9 = vpack.c.bf16 %v360_v59, %v359_v10  ;;  %v262_v59 = vld [vmem:[%s2297_s27 + $0x98] sm:$0xff] }
  0x29   : > { %v647_v0 = vsel %vm587_vm4, %v642_v55, %v646_v50  ;;  %v625_v1 = vshrl.u32 %v2381_v57, 16  ;;  %v627_v4 = vshll.u32 %v2381_v57, 16  ;;  %v634_v8 = vrot.slane %v632_v56, 1 }
  0x2a   : > { %v357_v13 = vmax.f32 %v2344_v16, 0.0  ;;  %v358_v14 = vmax.f32 %v326_v60, 0.0  ;;  %v294_v12 = vmul.f32 %v2280_v5, %v257_v61  ;;  %v295_v17 = vmul.f32 %v2280_v5, %v258_v62 }
  0x2b   : > { %897 = vrot.lane.b32.xlu1 %v853_v42, %s2225_s28  ;;  %v629_v7 = vrot.slane %v627_v4, 1  ;;  %v292_v18 = vmul.f32 %v2280_v5, %v255_v63  ;;  %v854_v19 = vrot.slane %v2381_v57, 1  ;;  %v440_v20 = vshrl.u32 %v386_v9, 16 }
  0x2c   : > { %895 = vrot.lane.b32.xlu0 %v850_v54, %s2225_s28  ;;  %v443_v22 = vshll.u32 %v386_v9, 16  ;;  %v385_v10 = vpack.c.bf16 %v358_v14, %v357_v13  ;;  %v331_v16 = vadd.f32 %v2289_v11, %v294_v12  ;;  %v332_v24 = vadd.f32 %v2289_v11, %v295_v17 }
  0x2d   : > { %v630_v23 = vor.u32 %v629_v7, %v625_v1  ;;  %v293_v25 = vmul.f32 %v2280_v5, %v256_v15  ;;  %v442_v26 = vrot.slane %v440_v20, 7  ;;  %v329_v30 = vadd.f32 %v2289_v11, %v292_v18 }
  0x2e   : > { %v433_v28 = vshrl.u32 %v385_v10, 16  ;;  %v436_v29 = vshll.u32 %v385_v10, 16  ;;  %v363_v32 = vmax.f32 %v331_v16, 0.0  ;;  %v364_v33 = vmax.f32 %v332_v24, 0.0  ;;  %v259_v24 = vld [vmem:[%s2297_s27 + $0x80] sm:$0xff] }
  0x2f   : > { %788 = vrot.lane.b32.xlu1 %v647_v0, %s2226_s29  ;;  %v635_v31 = vsel %vm587_vm4, %v630_v23, %v634_v8  ;;  %v330_v34 = vadd.f32 %v2289_v11, %v293_v25  ;;  %v856_v36 = vsel %vm844_vm3, %v854_v19, %v855_v6  ;;  %v445_v37 = vor.u32 %v443_v22, %v442_v26  ;;  %v260_v25 = vld [vmem:[%s2297_s27 + $0x88] sm:$0xff] }
  0x30   : > { %786 = vrot.lane.b32.xlu0 %v635_v31, %s2226_s29  ;;  %v576_v38 = vsel %vm2265_vm2, %v442_v26, 0  ;;  %v435_v39 = vrot.slane %v433_v28, 7  ;;  %v388_v43 = vpack.c.bf16 %v364_v33, %v363_v32  ;;  %v361_v44 = vmax.f32 %v329_v30, 0.0  ;;  %v265_v31 = vld [vmem:[%s2297_s27 + $0xb0] sm:$0xff] }
  0x31   : > { %v668_v41 = vshll.u32 %v576_v38, 16  ;;  %v864_v42 = vrot.slane %v576_v38, 1  ;;  %v2414_v45 = vsel %vm2265_vm2, 0, %v445_v37  ;;  %v362_v48 = vmax.f32 %v330_v34, 0.0 }
  0x32   : > { %v438_v46 = vor.u32 %v436_v29, %v435_v39  ;;  %v575_v47 = vsel %vm2265_vm2, %v435_v39, 0  ;;  %v661_v49 = vshrl.u32 %v2414_v45, 16  ;;  %v663_v50 = vshll.u32 %v2414_v45, 16 }
  0x33   : > { %901 = vrot.lane.b32.xlu1 %v859_v58, %s2225_s28  ;;  %v656_v51 = vshll.u32 %v575_v47, 16  ;;  %v298_v52 = vmul.f32 %v2280_v5, %v261_v40  ;;  %v670_v53 = vrot.slane %v668_v41, 1  ;;  %v863_v55 = vrot.slane %v2414_v45, 1 }
  0x34   : > { %899 = vrot.lane.b32.xlu0 %v856_v36, %s2225_s28  ;;  %v2425_v54 = vsel %vm2265_vm2, 0, %v438_v46  ;;  %v454_v56 = vshrl.u32 %v388_v43, 16  ;;  %v665_v60 = vrot.slane %v663_v50, 1  ;;  %v861_v62 = vrot.slane %v575_v47, 1 }
  0x35   : > { %v649_v58 = vshrl.u32 %v2425_v54, 16  ;;  %v651_v61 = vshll.u32 %v2425_v54, 16  ;;  %v658_v63 = vrot.slane %v656_v51, 1  ;;  %v860_v0 = vrot.slane %v2425_v54, 1 }
  0x36   : > { %v456_v1 = vrot.slane %v454_v56, 7  ;;  %v457_v4 = vshll.u32 %v388_v43, 16  ;;  %v666_v6 = vor.u32 %v665_v60, %v661_v49  ;;  %v387_v9 = vpack.c.bf16 %v362_v48, %v361_v44 }
  0x37   : > { %v653_v8 = vrot.slane %v651_v61, 1  ;;  %v299_v13 = vmul.f32 %v2280_v5, %v262_v59  ;;  %v865_v14 = vsel %vm844_vm3, %v863_v55, %v864_v42  ;;  %v335_v12 = vadd.f32 %v2289_v11, %v298_v52  ;;  %v266_v55 = vld [vmem:[%s2297_s27 + $0xb8] sm:$0xff]  ;;  %v263_v61 = vld [vmem:[%s2297_s27 + $0xa0] sm:$0xff] }
  0x38   : > { %v459_v15 = vor.u32 %v457_v4, %v456_v1  ;;  %v578_v7 = vsel %vm2265_vm2, %v456_v1, 0  ;;  %v671_v17 = vsel %vm587_vm4, %v666_v6, %v670_v53  ;;  %v447_v20 = vshrl.u32 %v387_v9, 16 }
  0x39   : > { %v654_v18 = vor.u32 %v653_v8, %v649_v58  ;;  %v692_v19 = vshll.u32 %v578_v7, 16  ;;  %792 = vrot.lane.b32.xlu1 %v671_v17, %s2226_s29  ;;  %v862_v22 = vsel %vm844_vm3, %v860_v0, %v861_v62  ;;  %v450_v23 = vshll.u32 %v387_v9, 16 }
  0x3a   : > { %v2442_v10 = vsel %vm2265_vm2, 0, %v459_v15  ;;  %v336_v16 = vadd.f32 %v2289_v11, %v299_v13  ;;  %v870_v30 = vrot.slane %v578_v7, 1  ;;  %v449_v32 = vrot.slane %v447_v20, 7  ;;  %v264_v20 = vld [vmem:[%s2297_s27 + $0xa8] sm:$0xff] }
  0x3b   : > { %v659_v26 = vsel %vm587_vm4, %v654_v18, %v658_v63  ;;  %v685_v28 = vshrl.u32 %v2442_v10, 16  ;;  %v687_v29 = vshll.u32 %v2442_v10, 16  ;;  %v869_v33 = vrot.slane %v2442_v10, 1 }
  0x3c   : > { %790 = vrot.lane.b32.xlu0 %v659_v26, %s2226_s29  ;;  %v367_v34 = vmax.f32 %v335_v12, 0.0  ;;  %v368_v36 = vmax.f32 %v336_v16, 0.0  ;;  %v694_v38 = vrot.slane %v692_v19, 1  ;;  %v296_v39 = vmul.f32 %v2280_v5, %v259_v24 }
  0x3d   : > { %v689_v37 = vrot.slane %v687_v29, 1  ;;  %v297_v40 = vmul.f32 %v2280_v5, %v260_v25  ;;  %905 = vrot.lane.b32.xlu1 %v865_v14, %s2225_s28  ;;  %v452_v41 = vor.u32 %v450_v23, %v449_v32  ;;  %v577_v42 = vsel %vm2265_vm2, %v449_v32, 0  ;;  %v269_v25 = vld [vmem:[%s2297_s27 + $0xd0] sm:$0xff] }
  0x3e   : > { %v390_v43 = vpack.c.bf16 %v368_v36, %v367_v34  ;;  %v302_v44 = vmul.f32 %v2280_v5, %v265_v31  ;;  %v680_v47 = vshll.u32 %v577_v42, 16  ;;  %v871_v48 = vsel %vm844_vm3, %v869_v33, %v870_v30  ;;  %v270_v31 = vld [vmem:[%s2297_s27 + $0xd8] sm:$0xff] }
  0x3f   : > { %v690_v46 = vor.u32 %v689_v37, %v685_v28  ;;  %v333_v49 = vadd.f32 %v2289_v11, %v296_v39  ;;  %v2464_v50 = vsel %vm2265_vm2, 0, %v452_v41  ;;  %v334_v53 = vadd.f32 %v2289_v11, %v297_v40 }
  0x40   : > { %903 = vrot.lane.b32.xlu0 %v862_v22, %s2225_s28  ;;  %v468_v51 = vshrl.u32 %v390_v43, 16  ;;  %v471_v52 = vshll.u32 %v390_v43, 16  ;;  %v673_v59 = vshrl.u32 %v2464_v50, 16  ;;  %v675_v60 = vshll.u32 %v2464_v50, 16 }
  0x41   : > { %v695_v56 = vsel %vm587_vm4, %v690_v46, %v694_v38  ;;  %v867_v58 = vrot.slane %v577_v42, 1  ;;  %v866_v62 = vrot.slane %v2464_v50, 1  ;;  %v365_v0 = vmax.f32 %v333_v49, 0.0 }
  0x42   : > { %796 = vrot.lane.b32.xlu1 %v695_v56, %s2226_s29  ;;  %v470_v63 = vrot.slane %v468_v51, 7  ;;  %v366_v1 = vmax.f32 %v334_v53, 0.0  ;;  %v677_v4 = vrot.slane %v675_v60, 1  ;;  %v682_v6 = vrot.slane %v680_v47, 1  ;;  %v267_v56 = vld [vmem:[%s2297_s27 + $0xc0] sm:$0xff] }
  0x43   : > { %v303_v8 = vmul.f32 %v2280_v5, %v266_v55  ;;  %v339_v9 = vadd.f32 %v2289_v11, %v302_v44  ;;  %v300_v7 = vmul.f32 %v2280_v5, %v263_v61  ;;  %v868_v17 = vsel %vm844_vm3, %v866_v62, %v867_v58  ;;  %v268_v62 = vld [vmem:[%s2297_s27 + $0xc8] sm:$0xff] }
  0x44   : > { %v473_v13 = vor.u32 %v471_v52, %v470_v63  ;;  %v580_v14 = vsel %vm2265_vm2, %v470_v63, 0  ;;  %v389_v15 = vpack.c.bf16 %v366_v1, %v365_v0  ;;  %v678_v12 = vor.u32 %v677_v4, %v673_v59 }
  0x45   : > { %v716_v18 = vshll.u32 %v580_v14, 16  ;;  %v340_v19 = vadd.f32 %v2289_v11, %v303_v8  ;;  %v371_v24 = vmax.f32 %v339_v9, 0.0  ;;  %v876_v30 = vrot.slane %v580_v14, 1 }
  0x46   : > { %909 = vrot.lane.b32.xlu1 %v871_v48, %s2225_s28  ;;  %v2485_v22 = vsel %vm2265_vm2, 0, %v473_v13  ;;  %v461_v23 = vshrl.u32 %v389_v15, 16  ;;  %v464_v16 = vshll.u32 %v389_v15, 16  ;;  %v683_v26 = vsel %vm587_vm4, %v678_v12, %v682_v6 }
  0x47   : > { %v709_v28 = vshrl.u32 %v2485_v22, 16  ;;  %v711_v29 = vshll.u32 %v2485_v22, 16  ;;  %794 = vrot.lane.b32.xlu0 %v683_v26, %s2226_s29  ;;  %v875_v33 = vrot.slane %v2485_v22, 1  ;;  %v372_v34 = vmax.f32 %v340_v19, 0.0  ;;  %v271_v26 = vld [vmem:[%s2297_s27 + $0xe0] sm:$0xff] }
  0x48   : > { %v463_v32 = vrot.slane %v461_v23, 7  ;;  %v301_v36 = vmul.f32 %v2280_v5, %v264_v20  ;;  %v718_v38 = vrot.slane %v716_v18, 1  ;;  %v337_v39 = vadd.f32 %v2289_v11, %v300_v7 }
  0x49   : > { %v713_v37 = vrot.slane %v711_v29, 1  ;;  %v306_v40 = vmul.f32 %v2280_v5, %v269_v25  ;;  %v392_v43 = vpack.c.bf16 %v372_v34, %v371_v24  ;;  %v307_v44 = vmul.f32 %v2280_v5, %v270_v31 }
  0x4a   : > { %v466_v41 = vor.u32 %v464_v16, %v463_v32  ;;  %v579_v42 = vsel %vm2265_vm2, %v463_v32, 0  ;;  %v877_v48 = vsel %vm844_vm3, %v875_v33, %v876_v30  ;;  %v338_v49 = vadd.f32 %v2289_v11, %v301_v36  ;;  %v272_v32 = vld [vmem:[%s2297_s27 + $0xe8] sm:$0xff] }
  0x4b   : > { %v714_v46 = vor.u32 %v713_v37, %v709_v28  ;;  %v704_v47 = vshll.u32 %v579_v42, 16  ;;  %907 = vrot.lane.b32.xlu0 %v868_v17, %s2225_s28  ;;  %v482_v52 = vshrl.u32 %v392_v43, 16  ;;  %v485_v53 = vshll.u32 %v392_v43, 16 }
  0x4c   : > { %v2505_v51 = vsel %vm2265_vm2, 0, %v466_v41  ;;  %v369_v55 = vmax.f32 %v337_v39, 0.0  ;;  %v873_v61 = vrot.slane %v579_v42, 1  ;;  %v370_v1 = vmax.f32 %v338_v49, 0.0 }
  0x4d   : > { %v719_v59 = vsel %vm587_vm4, %v714_v46, %v718_v38  ;;  %v697_v60 = vshrl.u32 %v2505_v51, 16  ;;  %v699_v58 = vshll.u32 %v2505_v51, 16  ;;  %v872_v63 = vrot.slane %v2505_v51, 1 }
  0x4e   : > { %800 = vrot.lane.b32.xlu1 %v719_v59, %s2226_s29  ;;  %v484_v0 = vrot.slane %v482_v52, 7  ;;  %v343_v4 = vadd.f32 %v2289_v11, %v306_v40  ;;  %v706_v8 = vrot.slane %v704_v47, 1  ;;  %v344_v9 = vadd.f32 %v2289_v11, %v307_v44 }
  0x4f   : > { %v701_v6 = vrot.slane %v699_v58, 1  ;;  %v304_v13 = vmul.f32 %v2280_v5, %v267_v56  ;;  %v391_v7 = vpack.c.bf16 %v370_v1, %v369_v55  ;;  %v305_v12 = vmul.f32 %v2280_v5, %v268_v62 }
  0x50   : > { %v487_v14 = vor.u32 %v485_v53, %v484_v0  ;;  %v582_v15 = vsel %vm2265_vm2, %v484_v0, 0  ;;  %v874_v18 = vsel %vm844_vm3, %v872_v63, %v873_v61  ;;  %v375_v20 = vmax.f32 %v343_v4, 0.0 }
  0x51   : > { %v702_v17 = vor.u32 %v701_v6, %v697_v60  ;;  %v740_v19 = vshll.u32 %v582_v15, 16  ;;  %v475_v16 = vshrl.u32 %v391_v7, 16  ;;  %v478_v24 = vshll.u32 %v391_v7, 16 }
  0x52   : > { %913 = vrot.lane.b32.xlu1 %v877_v48, %s2225_s28  ;;  %v2524_v23 = vsel %vm2265_vm2, 0, %v487_v14  ;;  %v376_v25 = vmax.f32 %v344_v9, 0.0  ;;  %v882_v31 = vrot.slane %v582_v15, 1  ;;  %v341_v37 = vadd.f32 %v2289_v11, %v304_v13 }
  0x53   : > { %v707_v28 = vsel %vm587_vm4, %v702_v17, %v706_v8  ;;  %v733_v29 = vshrl.u32 %v2524_v23, 16  ;;  %v735_v30 = vshll.u32 %v2524_v23, 16  ;;  %v477_v33 = vrot.slane %v475_v16, 7  ;;  %v273_v17 = vld [vmem:[%s2297_s27 + $0xf0] sm:$0xff] }
  0x54   : > { %798 = vrot.lane.b32.xlu0 %v707_v28, %s2226_s29  ;;  %v881_v34 = vrot.slane %v2524_v23, 1  ;;  %v394_v36 = vpack.c.bf16 %v376_v25, %v375_v20  ;;  %v742_v39 = vrot.slane %v740_v19, 1  ;;  %v342_v40 = vadd.f32 %v2289_v11, %v305_v12 }
  0x55   : > { %v737_v38 = vrot.slane %v735_v30, 1  ;;  %v308_v41 = vmul.f32 %v2280_v5, %v271_v26  ;;  %v480_v42 = vor.u32 %v478_v24, %v477_v33  ;;  %v581_v43 = vsel %vm2265_vm2, %v477_v33, 0 }
  0x56   : > { %v496_v44 = vshrl.u32 %v394_v36, 16  ;;  %v309_v46 = vmul.f32 %v2280_v5, %v272_v32  ;;  %v728_v48 = vshll.u32 %v581_v43, 16  ;;  %v883_v49 = vsel %vm844_vm3, %v881_v34, %v882_v31  ;;  %v2213_v34 = vld [vmem:[%s2914_s2 + $0x8] sm:$0x3f]  }
  0x57   : > { %v738_v47 = vor.u32 %v737_v38, %v733_v29  ;;  %v499_v52 = vshll.u32 %v394_v36, 16  ;;  %v2543_v53 = vsel %vm2265_vm2, 0, %v480_v42  ;;  %v373_v56 = vmax.f32 %v341_v37, 0.0  ;;  %v2214_v36 = vld [vmem:[%s2914_s2] sm:$0x3f]   ;;  %2198 = vmatprep.subr.msk.bf16.mxu1 %vm1059_vm5, %v2213_v34 }
  0x58   : > { %911 = vrot.lane.b32.xlu0 %v874_v18, %s2225_s28  ;;  %v498_v55 = vrot.slane %v496_v44, 7  ;;  %v374_v59 = vmax.f32 %v342_v40, 0.0  ;;  %v721_v58 = vshrl.u32 %v2543_v53, 16  ;;  %v723_v61 = vshll.u32 %v2543_v53, 16  ;;  %v274_v18 = vld [vmem:[%s2297_s27 + $0xf8] sm:$0xff]  ;;  %2199 = vmatprep.subr.msk.bf16.mxu0 %vm1059_vm5, %v2214_v36 }
  0x59   : > { %v743_v60 = vsel %vm587_vm4, %v738_v47, %v742_v39  ;;  %v879_v62 = vrot.slane %v581_v43, 1  ;;  %v730_v63 = vrot.slane %v728_v48, 1  ;;  %v878_v8 = vrot.slane %v2543_v53, 1 }
  0x5a   : > { %804 = vrot.lane.b32.xlu1 %v743_v60, %s2226_s29  ;;  %v501_v0 = vor.u32 %v499_v52, %v498_v55  ;;  %v584_v1 = vsel %vm2265_vm2, %v498_v55, 0  ;;  %v393_v4 = vpack.c.bf16 %v374_v59, %v373_v56  ;;  %v725_v6 = vrot.slane %v723_v61, 1  ;;  %v2592_v55 = vld [vmem:[%s2914_s2 + $0x10] sm:$0x3f]  }
  0x5b   : > { %v764_v9 = vshll.u32 %v584_v1, 16  ;;  %v345_v13 = vadd.f32 %v2289_v11, %v308_v41  ;;  %v888_v12 = vrot.slane %v584_v1, 1  ;;  %v346_v28 = vadd.f32 %v2289_v11, %v309_v46 }
  0x5c   : > { %v2555_v14 = vsel %vm2265_vm2, 0, %v501_v0  ;;  %v489_v15 = vshrl.u32 %v393_v4, 16  ;;  %v492_v7 = vshll.u32 %v393_v4, 16  ;;  %v726_v19 = vor.u32 %v725_v6, %v721_v58 }
  0x5d   : > { %v757_v20 = vshrl.u32 %v2555_v14, 16  ;;  %v759_v16 = vshll.u32 %v2555_v14, 16  ;;  %v766_v24 = vrot.slane %v764_v9, 1  ;;  %v887_v26 = vrot.slane %v2555_v14, 1 }
  0x5e   : > { %917 = vrot.lane.b32.xlu1 %v883_v49, %s2225_s28  ;;  %v491_v25 = vrot.slane %v489_v15, 7  ;;  %v377_v29 = vmax.f32 %v345_v13, 0.0  ;;  %v731_v30 = vsel %vm587_vm4, %v726_v19, %v730_v63  ;;  %v310_v32 = vmul.f32 %v2280_v5, %v273_v17 }
  0x5f   : > { %v761_v31 = vrot.slane %v759_v16, 1  ;;  %v311_v33 = vmul.f32 %v2280_v5, %v274_v18  ;;  %802 = vrot.lane.b32.xlu0 %v731_v30, %s2226_s29  ;;  %v378_v39 = vmax.f32 %v346_v28, 0.0  ;;  %v880_v40 = vsel %vm844_vm3, %v878_v8, %v879_v62 }
  0x60   : > { %v494_v37 = vor.u32 %v492_v7, %v491_v25  ;;  %v583_v38 = vsel %vm2265_vm2, %v491_v25, 0  ;;  %v347_v5 = vadd.f32 %v2289_v11, %v310_v32  ;;  %v889_v52 = vsel %vm844_vm3, %v887_v26, %v888_v12 }
  0x61   : > { %v762_v41 = vor.u32 %v761_v31, %v757_v20  ;;  %v752_v42 = vshll.u32 %v583_v38, 16  ;;  %v395_v44 = vpack.c.bf16 %v378_v39, %v377_v29  ;;  %v348_v46 = vadd.f32 %v2289_v11, %v311_v33 }
  0x62   : > { %v2580_v43 = vsel %vm2265_vm2, 0, %v494_v37  ;;  %v379_v60 = vmax.f32 %v347_v5, 0.0  ;;  %v1061_v62 = vsel %vm1059_vm5, %v2213_v34, 0  ;;  %v2598_v63 = vsel %vm1059_vm5, %v2214_v36, 0 }
  0x63   : > { %v767_v47 = vsel %vm587_vm4, %v762_v41, %v766_v24  ;;  %v745_v48 = vshrl.u32 %v2580_v43, 16  ;;  %v747_v49 = vshll.u32 %v2580_v43, 16  ;;  %915 = vrot.lane.b32.xlu0 %v880_v40, %s2225_s28  ;;  %v754_v11 = vrot.slane %v752_v42, 1  ;;  %2031 = vmatpush3.bf16.msra.mxu1 %v1061_v62 }
  0x64   : > { %808 = vrot.lane.b32.xlu1 %v767_v47, %s2226_s29  ;;  %v503_v56 = vshrl.u32 %v395_v44, 16  ;;  %v506_v59 = vshll.u32 %v395_v44, 16  ;;  %v380_v61 = vmax.f32 %v348_v46, 0.0  ;;  %2065 = vmatpush3.bf16.msra.mxu0 %v2598_v63  ;;  %v884_v4 = vrot.slane %v2580_v43, 1 }
  0x65   : > { %v749_v58 = vrot.slane %v747_v49, 1  ;;  %v885_v6 = vrot.slane %v583_v38, 1  ;;  %2200 = vmatprep.subr.msk.bf16.mxu1 %vm1059_vm5, %v2214_v36  ;;  %2201 = vmatprep.subr.msk.bf16.mxu0 %vm1059_vm5, %v2592_v55 }
  0x66   : > { %v505_v0 = vrot.slane %v503_v56, 7  ;;  %v396_v8 = vpack.c.bf16 %v380_v61, %v379_v60 }
  0x67   : > { %v750_v1 = vor.u32 %v749_v58, %v745_v48  ;;  %v886_v20 = vsel %vm844_vm3, %v884_v4, %v885_v6 }
  0x68   : > { %921 = vrot.lane.b32.xlu1 %v889_v52, %s2225_s28  ;;  %v508_v9 = vor.u32 %v506_v59, %v505_v0  ;;  %v585_v13 = vsel %vm2265_vm2, %v505_v0, 0  ;;  %v510_v17 = vshrl.u32 %v396_v8, 16  ;;  %v513_v19 = vshll.u32 %v396_v8, 16 }
  0x69   : > { %v755_v15 = vsel %vm587_vm4, %v750_v1, %v754_v11  ;;  %v776_v7 = vshll.u32 %v585_v13, 16  ;;  %v891_v12 = vrot.slane %v585_v13, 1  ;;  %v1404_v0 = vsel %vm1059_vm5, %v2592_v55, 0 }
  0x6a   : > { %806 = vrot.lane.b32.xlu0 %v755_v15, %s2226_s29  ;;  %v2612_v18 = vsel %vm2265_vm2, 0, %v508_v9  ;;  %v512_v26 = vrot.slane %v510_v17, 7 }
  0x6b   : > { %v769_v16 = vshrl.u32 %v2612_v18, 16  ;;  %v771_v24 = vshll.u32 %v2612_v18, 16  ;;  %v890_v25 = vrot.slane %v2612_v18, 1  ;;  %v778_v29 = vrot.slane %v776_v7, 1 }
  0x6c   : > { %v515_v31 = vor.u32 %v513_v19, %v512_v26  ;;  %v586_v32 = vsel %vm2265_vm2, %v512_v26, 0 }
  0x6d   : > { %v773_v28 = vrot.slane %v771_v24, 1  ;;  %v892_v30 = vsel %vm844_vm3, %v890_v25, %v891_v12  ;;  %v1001_v34 = vshll.u32 %v586_v32, 16  ;;  %v1010_v37 = vrot.slane %v586_v32, 1 }
  0x6e   : > { %919 = vrot.lane.b32.xlu0 %v886_v20, %s2225_s28  ;;  %923 = vrot.lane.b32.xlu1 %v892_v30, %s2225_s28  ;;  %v2625_v36 = vsel %vm2265_vm2, 0, %v515_v31 }
  0x6f   : > { %v774_v33 = vor.u32 %v773_v28, %v769_v16  ;;  %v994_v39 = vshrl.u32 %v2625_v36, 16  ;;  %v996_v40 = vshll.u32 %v2625_v36, 16  ;;  %v1009_v41 = vrot.slane %v2625_v36, 1 }
  0x70   : > { %v1003_v5 = vrot.slane %v1001_v34, 1 }
  0x71   : > { %v779_v38 = vsel %vm587_vm4, %v774_v33, %v778_v29  ;;  %v998_v42 = vrot.slane %v996_v40, 1  ;;  %v1011_v44 = vsel %vm844_vm3, %v1009_v41, %v1010_v37 }
  0x72   : > { %810 = vrot.lane.b32.xlu0 %v779_v38, %s2226_s29  ;;  %1012 = vrot.lane.b32.xlu1 %v1011_v44, %s2225_s28 }
  0x73   : > { %v999_v46 = vor.u32 %v998_v42, %v994_v39 }
  0x75   : > { %v1004_v2 = vsel %vm587_vm4, %v999_v46, %v1003_v5 }
  0x76   : > { %1005 = vrot.lane.b32.xlu0 %v1004_v2, %s2226_s29 }
  0x7e   : > { %v894_v47 = vpop.permute.xlu1 %893 }
  0x82   : > { %v781_v48 = vpop.permute.xlu0 %780 }
  0x83   : > { %v927_v49 = vsel %vm925_vm6, %v2271_v3, %v781_v48 }
  0x84   : > { %v2639_v52 = vsel %vm958_vm7, %v927_v49, %v894_v47 }
  0x85   : > { %2066 = vmatprep.mubr.msk.bf16.mxu0 %vm1026_vm8, %v2639_v52 }
  0x99   : > { %v785_v11 = vpop.permute.xlu1 %784 }
  0x9a   : > { %v783_v56 = vpop.permute.xlu0 %782  ;;  %v931_v59 = vsel %vm925_vm6, %v2350_v21, %v785_v11 }
  0x9b   : > { %v929_v58 = vsel %vm925_vm6, %v2356_v27, %v783_v56 }
  0x9d   : > { %v898_v60 = vpop.permute.xlu1 %897 }
  0x9e   : > { %v964_v61 = vsel %vm958_vm7, %v931_v59, %v898_v60  ;;  %v896_v62 = vpop.permute.xlu0 %895 }
  0x9f   : > { %v962_v3 = vsel %vm958_vm7, %v929_v58, %v896_v62 }
  0xa0   : > { %2032 = vmatprep.mubr.msk.bf16.mxu1 %vm1026_vm8, %v962_v3  ;;  %2067 = vmatmul.mubr.msk.bf16.vlgmr.msra.gmra.mrb[0].mxu0 %vm1026_vm8, %v962_v3 }
  0xa1   : > { %2033 = vmatmul.mubr.msk.bf16.vlgmr.msra.gmra.mrb[0].mxu1 %vm1026_vm8, %v964_v61  ;;  %2070 = vmatprep.mubr.msk.bf16.mxu0 %vm1026_vm8, %v964_v61  ;;  %v789_v21 = vpop.permute.xlu1 %788 }
  0xa2   : > { %2133 = vmatpush3.bf16.msra.mxu1 %v2598_v63  ;;  %2099 = vmatpush3.bf16.msra.mxu0 %v1404_v0  ;;  %v787_v27 = vpop.permute.xlu0 %786  ;;  %v935_v1 = vsel %vm925_vm6, %v2363_v35, %v789_v21 }
  0xa3   : > { %v933_v55 = vsel %vm925_vm6, %v2381_v57, %v787_v27 }
  0xa5   : > { %v902_v4 = vpop.permute.xlu1 %901 }
  0xa6   : > { %v968_v6 = vsel %vm958_vm7, %v935_v1, %v902_v4  ;;  %v900_v8 = vpop.permute.xlu0 %899 }
  0xa7   : > { %v966_v9 = vsel %vm958_vm7, %v933_v55, %v900_v8 }
  0xa8   : > { %2036 = vmatprep.mubr.msk.bf16.mxu1 %vm1026_vm8, %v966_v9  ;;  %2071 = vmatmul.mubr.msk.bf16.gmra.mrb[4].mxu0 %vm1026_vm8, %v966_v9 }
  0xa9   : > { %2037 = vmatmul.mubr.msk.bf16.gmra.mrb[4].mxu1 %vm1026_vm8, %v968_v6  ;;  %2074 = vmatprep.mubr.msk.bf16.mxu0 %vm1026_vm8, %v968_v6 }
  0xab   : > { %v793_v63 = vpop.permute.xlu1 %792 }
  0xac   : > { %v939_v15 = vsel %vm925_vm6, %v2414_v45, %v793_v63 }
  0xae   : > { %v791_v13 = vpop.permute.xlu0 %790 }
  0xaf   : > { %v906_v35 = vpop.permute.xlu1 %905  ;;  %v937_v57 = vsel %vm925_vm6, %v2425_v54, %v791_v13 }
  0xb0   : > { %v972_v7 = vsel %vm958_vm7, %v939_v15, %v906_v35 }
  0xb2   : > { %v904_v12 = vpop.permute.xlu0 %903 }
  0xb3   : > { %v970_v17 = vsel %vm958_vm7, %v937_v57, %v904_v12 }
  0xb4   : > { %2040 = vmatprep.mubr.msk.bf16.mxu1 %vm1026_vm8, %v970_v17  ;;  %2075 = vmatmul.mubr.msk.bf16.gmra.mrb[8].mxu0 %vm1026_vm8, %v970_v17  ;;  %v797_v19 = vpop.permute.xlu1 %796 }
  0xb5   : > { %2041 = vmatmul.mubr.msk.bf16.gmra.mrb[8].mxu1 %vm1026_vm8, %v972_v7  ;;  %2078 = vmatprep.mubr.msk.bf16.mxu0 %vm1026_vm8, %v972_v7  ;;  %v943_v45 = vsel %vm925_vm6, %v2442_v10, %v797_v19 }
  0xb8   : > { %v910_v16 = vpop.permute.xlu1 %909 }
  0xb9   : > { %v795_v20 = vpop.permute.xlu0 %794  ;;  %v976_v24 = vsel %vm958_vm7, %v943_v45, %v910_v16 }
  0xba   : > { %v941_v54 = vsel %vm925_vm6, %v2464_v50, %v795_v20 }
  0xbd   : > { %v908_v25 = vpop.permute.xlu0 %907 }
  0xbe   : > { %v974_v26 = vsel %vm958_vm7, %v941_v54, %v908_v25 }
  0xbf   : > { %2044 = vmatprep.mubr.msk.bf16.mxu1 %vm1026_vm8, %v974_v26  ;;  %2079 = vmatmul.mubr.msk.bf16.gmra.mrb[12].mxu0 %vm1026_vm8, %v974_v26 }
  0xc0   : > { %v801_v28 = vpop.permute.xlu1 %800  ;;  %2045 = vmatmul.mubr.msk.bf16.gmra.mrb[12].mxu1 %vm1026_vm8, %v976_v24  ;;  %2100 = vmatprep.mubr.msk.bf16.mxu0 %vm1026_vm8, %v964_v61 }
  0xc1   : > { %v947_v10 = vsel %vm925_vm6, %v2485_v22, %v801_v28 }
  0xc4   : > { %v914_v30 = vpop.permute.xlu1 %913 }
  0xc5   : > { %v980_v31 = vsel %vm958_vm7, %v947_v10, %v914_v30 }
  0xc6   : > { %v799_v29 = vpop.permute.xlu0 %798 }
  0xc7   : > { %2101 = vmatmul.mubr.msk.bf16.vlgmr.msra.gmra.mrb[0].mxu0 %vm1026_vm8, %v966_v9  ;;  %v945_v50 = vsel %vm925_vm6, %v2505_v51, %v799_v29 }
  0xc8   : > { %2104 = vmatprep.mubr.msk.bf16.mxu0 %vm1026_vm8, %v968_v6 }
  0xca   : > { %v912_v32 = vpop.permute.xlu0 %911 }
  0xcb   : > { %v978_v33 = vsel %vm958_vm7, %v945_v50, %v912_v32 }
  0xcc   : > { %2048 = vmatprep.mubr.msk.bf16.mxu1 %vm1026_vm8, %v978_v33  ;;  %v805_v34 = vpop.permute.xlu1 %804 }
  0xcd   : > { %2049 = vmatmul.mubr.msk.bf16.gmra.mrb[16].mxu1 %vm1026_vm8, %v980_v31  ;;  %v951_v38 = vsel %vm925_vm6, %v2524_v23, %v805_v34 }
  0xcf   : > { %2105 = vmatmul.mubr.msk.bf16.gmra.mrb[4].mxu0 %vm1026_vm8, %v970_v17 }
  0xd0   : > { %v918_v37 = vpop.permute.xlu1 %917  ;;  %2108 = vmatprep.mubr.msk.bf16.mxu0 %vm1026_vm8, %v972_v7 }
  0xd1   : > { %v803_v22 = vpop.permute.xlu0 %802  ;;  %v984_v39 = vsel %vm958_vm7, %v951_v38, %v918_v37 }
  0xd2   : > { %v949_v51 = vsel %vm925_vm6, %v2543_v53, %v803_v22 }
  0xd5   : > { %v916_v40 = vpop.permute.xlu0 %915 }
  0xd6   : > { %v982_v41 = vsel %vm958_vm7, %v949_v51, %v916_v40  ;;  %v809_v42 = vpop.permute.xlu1 %808 }
  0xd7   : > { %2052 = vmatprep.mubr.msk.bf16.mxu1 %vm1026_vm8, %v982_v41  ;;  %2109 = vmatmul.mubr.msk.bf16.gmra.mrb[8].mxu0 %vm1026_vm8, %v974_v26  ;;  %v955_v23 = vsel %vm925_vm6, %v2555_v14, %v809_v42 }
  0xd8   : > { %2053 = vmatmul.mubr.msk.bf16.gmra.mrb[20].mxu1 %vm1026_vm8, %v984_v39  ;;  %2112 = vmatprep.mubr.msk.bf16.mxu0 %vm1026_vm8, %v976_v24 }
  0xda   : > { %v922_v44 = vpop.permute.xlu1 %921 }
  0xdb   : > { %v988_v46 = vsel %vm958_vm7, %v955_v23, %v922_v44 }
  0xdc   : > { %v807_v5 = vpop.permute.xlu0 %806 }
  0xdd   : > { %v953_v53 = vsel %vm925_vm6, %v2580_v43, %v807_v5 }
  0xdf   : > { %2113 = vmatmul.mubr.msk.bf16.gmra.mrb[12].mxu0 %vm1026_vm8, %v978_v33 }
  0xe0   : > { %v920_v2 = vpop.permute.xlu0 %919  ;;  %2116 = vmatprep.mubr.msk.bf16.mxu0 %vm1026_vm8, %v980_v31  ;;  %v924_v48 = vpop.permute.xlu1 %923 }
  0xe1   : > { %v986_v47 = vsel %vm958_vm7, %v953_v53, %v920_v2 }
  0xe2   : > { %2056 = vmatprep.mubr.msk.bf16.mxu1 %vm1026_vm8, %v986_v47 }
  0xe3   : > { %2057 = vmatmul.mubr.msk.bf16.gmra.mrb[24].mxu1 %vm1026_vm8, %v988_v46 }
  0xe4   : > { %v811_v49 = vpop.permute.xlu0 %810  ;;  %v1013_v11 = vpop.permute.xlu1 %1012 }
  0xe5   : > { %v957_v14 = vsel %vm925_vm6, %v2612_v18, %v811_v49 }
  0xe6   : > { %v990_v43 = vsel %vm958_vm7, %v957_v14, %v924_v48 }
  0xe7   : > { %2060 = vmatprep.mubr.msk.bf16.mxu1 %vm1026_vm8, %v990_v43  ;;  %2117 = vmatmul.mubr.msk.bf16.gmra.mrb[16].mxu0 %vm1026_vm8, %v982_v41 }
  0xe8   : > { %2120 = vmatprep.mubr.msk.bf16.mxu0 %vm1026_vm8, %v984_v39  ;;  %v1006_v56 = vpop.permute.xlu0 %1005 }
  0xe9   : > { %v1015_v59 = vsel %vm925_vm6, %v2625_v36, %v1006_v56 }
  0xea   : > { %v1017_v60 = vsel %vm958_vm7, %v1015_v59, %v1013_v11 }
  0xeb   : > { %2061 = vmatmul.mubr.msk.bf16.gmra.mrb[28].mxu1 %vm1026_vm8, %v1017_v60 }
  0xec   : > { %2082 = vmatprep.mubr.msk.bf16.mxu1 %vm1026_vm8, %v976_v24 }
  0xef   : > { %2121 = vmatmul.mubr.msk.bf16.gmra.mrb[20].mxu0 %vm1026_vm8, %v986_v47 }
  0xf0   : > { %2124 = vmatprep.mubr.msk.bf16.mxu0 %vm1026_vm8, %v988_v46 }
  0xf3   : > { %2083 = vmatmul.mubr.msk.bf16.vlgmr.msra.gmra.mrb[16].mxu1 %vm1026_vm8, %v978_v33 }
  0xf4   : > { %2086 = vmatprep.mubr.msk.bf16.mxu1 %vm1026_vm8, %v980_v31 }
  0xf7   : > { %2125 = vmatmul.mubr.msk.bf16.gmra.mrb[24].mxu0 %vm1026_vm8, %v990_v43 }
  0xf8   : > { %2128 = vmatprep.mubr.msk.bf16.mxu0 %vm1026_vm8, %v1017_v60 }
  0xfb   : > { %2087 = vmatmul.mubr.msk.bf16.gmra.mrb[20].mxu1 %vm1026_vm8, %v982_v41 }
  0xfc   : > { %2090 = vmatprep.mubr.msk.bf16.mxu1 %vm1026_vm8, %v984_v39 }
  0xff   : > { %2129 = vmatmul.mubr.msk.bf16.gmra.mrb[28].mxu0 %vm1026_vm8, %v2639_v52 }
 0x103   : > { %2091 = vmatmul.mubr.msk.bf16.gmra.mrb[24].mxu1 %vm1026_vm8, %v986_v47 }
 0x104   : > { %2094 = vmatprep.mubr.msk.bf16.mxu1 %vm1026_vm8, %v988_v46 }
 0x10b   : > { %2095 = vmatmul.mubr.msk.bf16.gmra.mrb[28].mxu1 %vm1026_vm8, %v990_v43 }
 0x174   : > { %v2034_v18 = vpop.f32.mrb[0].mxu1 }
 0x175   : > { %v1097_v36 = vpop.f32.mrb[1].mxu1 }
 0x176   : > { %v2035_v58 = vpop.f32.mrb[2].mxu1 }
 0x177   : > { %v1100_v61 = vpop.f32.mrb[3].mxu1 }
 0x17c   : > { %v2038_v62 = vpop.f32.mrb[4].mxu1 }
 0x17d   : > { %v1113_v3 = vpop.f32.mrb[5].mxu1 }
 0x17e   : > { %v2039_v0 = vpop.f32.mrb[6].mxu1 }
 0x17f   : > { %v1116_v21 = vpop.f32.mrb[7].mxu1 }
 0x188   : > { %v2742_v27 = vpop.f32.mrb[8].mxu1 }
 0x189   : > { %v2744_v1 = vpop.f32.mrb[9].mxu1 }
 0x18a   : > { %v2746_v52 = vpop.f32.mrb[10].mxu1 }
 0x18b   : > { %v2748_v4 = vpop.f32.mrb[11].mxu1 }
 0x193   : > { %v2750_v55 = vpop.f32.mrb[12].mxu1 }
 0x194   : > { %v2752_v6 = vpop.f32.mrb[13].mxu1 }
 0x195   : > { %v2754_v8 = vpop.f32.mrb[14].mxu1 }
 0x196   : > { %v2756_v9 = vpop.f32.mrb[15].mxu1 }
 0x19a   : > { %v2102_v63 = vpop.f32.mrb[0].mxu0 }
 0x19b   : > { %v2134_v13 = vadd.f32 %v2102_v63, %v2034_v18  ;;  %v1440_v35 = vpop.f32.mrb[1].mxu0 }
 0x19c   : > { %v2135_v15 = vadd.f32 %v1440_v35, %v1097_v36  ;;  %v2103_v57 = vpop.f32.mrb[2].mxu0 }
 0x19d   : > { %1601 = vst.msk [vmem:[%s2763_s13 + $0x10] sm:$0xff] %vm925_vm6, %v2134_v13  ;;  %v2136_v7 = vadd.f32 %v2103_v57, %v2035_v58  ;;  %v1443_v12 = vpop.f32.mrb[3].mxu0  ;;  %v1704_v20 = vmul.f32 %v2134_v13, %v2134_v13  ;;  %v1634_v26 = vsel %vm925_vm6, %v2134_v13, 0.0 }
 0x19e   : > { %1599 = vst.msk [vmem:[%s2763_s13] sm:$0xff] %vm925_vm6, %v2135_v15  ;;  %v1702_v17 = vmul.f32 %v2135_v15, %v2135_v15  ;;  %v2137_v19 = vadd.f32 %v1443_v12, %v1100_v61  ;;  %v1631_v16 = vsel %vm925_vm6, %v2135_v15, 0.0 }
 0x19f   : > { %1602 = vst.msk [vmem:[%s2763_s13 + $0x18] sm:$0xff] %vm925_vm6, %v2136_v7  ;;  %v1705_v24 = vmul.f32 %v2136_v7, %v2136_v7  ;;  %v1737_v33 = vsel %vm925_vm6, %v1704_v20, 0.0  ;;  %v1636_v34 = vsel %vm925_vm6, %v2136_v7, 0.0 }
 0x1a0   : > { %1600 = vst.msk [vmem:[%s2763_s13 + $0x8] sm:$0xff] %vm925_vm6, %v2137_v19  ;;  %v1632_v45 = vsel %vm925_vm6, %v2137_v19, 0.0  ;;  %v1703_v54 = vmul.f32 %v2137_v19, %v2137_v19  ;;  %v1734_v28 = vsel %vm925_vm6, %v1702_v17, 0.0 }
 0x1a1   : > { %v1633_v25 = vadd.f32 %v1632_v45, %v1631_v16  ;;  %v1739_v38 = vsel %vm925_vm6, %v1705_v24, 0.0 }
 0x1a2   : > { %v1735_v29 = vsel %vm925_vm6, %v1703_v54, 0.0  ;;  %v2106_v30 = vpop.f32.mrb[4].mxu0 }
 0x1a3   : > { %v1635_v10 = vadd.f32 %v1634_v26, %v1633_v25  ;;  %v1736_v50 = vadd.f32 %v1735_v29, %v1734_v28  ;;  %v2138_v31 = vadd.f32 %v2106_v30, %v2038_v62  ;;  %v1456_v32 = vpop.f32.mrb[5].mxu0 }
 0x1a4   : > { %v2139_v37 = vadd.f32 %v1456_v32, %v1113_v3  ;;  %v2107_v22 = vpop.f32.mrb[6].mxu0 }
 0x1a5   : > { %v1738_v51 = vadd.f32 %v1737_v33, %v1736_v50  ;;  %1605 = vst.msk [vmem:[%s2763_s13 + $0x30] sm:$0xff] %vm925_vm6, %v2138_v31  ;;  %v1637_v39 = vadd.f32 %v1636_v34, %v1635_v10  ;;  %v1459_v40 = vpop.f32.mrb[7].mxu0  ;;  %v2140_v5 = vadd.f32 %v2107_v22, %v2039_v0  ;;  %v1708_v47 = vmul.f32 %v2138_v31, %v2138_v31 }
 0x1a6   : > { %1603 = vst.msk [vmem:[%s2763_s13 + $0x20] sm:$0xff] %vm925_vm6, %v2139_v37  ;;  %v1638_v41 = vsel %vm925_vm6, %v2139_v37, 0.0  ;;  %v1706_v42 = vmul.f32 %v2139_v37, %v2139_v37  ;;  %v2141_v44 = vadd.f32 %v1459_v40, %v1116_v21  ;;  %v1642_v43 = vsel %vm925_vm6, %v2138_v31, 0.0 }
 0x1a7   : > { %v1639_v23 = vadd.f32 %v1638_v41, %v1637_v39  ;;  %v1740_v53 = vadd.f32 %v1739_v38, %v1738_v51  ;;  %1606 = vst.msk [vmem:[%s2763_s13 + $0x38] sm:$0xff] %vm925_vm6, %v2140_v5  ;;  %v1709_v56 = vmul.f32 %v2140_v5, %v2140_v5  ;;  %v1644_v58 = vsel %vm925_vm6, %v2140_v5, 0.0 }
 0x1a8   : > { %v1741_v46 = vsel %vm925_vm6, %v1706_v42, 0.0  ;;  %1604 = vst.msk [vmem:[%s2763_s13 + $0x28] sm:$0xff] %vm925_vm6, %v2141_v44  ;;  %v1640_v2 = vsel %vm925_vm6, %v2141_v44, 0.0  ;;  %v1707_v14 = vmul.f32 %v2141_v44, %v2141_v44  ;;  %v1745_v0 = vsel %vm925_vm6, %v1708_v47, 0.0 }
 0x1a9   : > { %v1742_v48 = vadd.f32 %v1741_v46, %v1740_v53  ;;  %v1641_v49 = vadd.f32 %v1640_v2, %v1639_v23 }
 0x1aa   : > { %v2110_v11 = vpop.f32.mrb[8].mxu0  ;;  %v1743_v60 = vsel %vm925_vm6, %v1707_v14, 0.0 }
 0x1ab   : > { %v1643_v59 = vadd.f32 %v1642_v43, %v1641_v49  ;;  %v2142_v18 = vadd.f32 %v2110_v11, %v2742_v27  ;;  %v1472_v36 = vpop.f32.mrb[9].mxu0  ;;  %v1744_v61 = vadd.f32 %v1743_v60, %v1742_v48 }
 0x1ac   : > { %v2143_v62 = vadd.f32 %v1472_v36, %v2744_v1  ;;  %v2111_v3 = vpop.f32.mrb[10].mxu0  ;;  %v1747_v1 = vsel %vm925_vm6, %v1709_v56, 0.0 }
 0x1ad   : > { %1609 = vst.msk [vmem:[%s2763_s13 + $0x50] sm:$0xff] %vm925_vm6, %v2142_v18  ;;  %v1645_v21 = vadd.f32 %v1644_v58, %v1643_v59  ;;  %v2144_v63 = vadd.f32 %v2111_v3, %v2746_v52  ;;  %v1475_v13 = vpop.f32.mrb[11].mxu0  ;;  %v1746_v35 = vadd.f32 %v1745_v0, %v1744_v61  ;;  %v1712_v20 = vmul.f32 %v2142_v18, %v2142_v18 }
 0x1ae   : > { %1607 = vst.msk [vmem:[%s2763_s13 + $0x40] sm:$0xff] %vm925_vm6, %v2143_v62  ;;  %v1646_v27 = vsel %vm925_vm6, %v2143_v62, 0.0  ;;  %v1710_v15 = vmul.f32 %v2143_v62, %v2143_v62  ;;  %v2145_v57 = vadd.f32 %v1475_v13, %v2748_v4  ;;  %v1650_v45 = vsel %vm925_vm6, %v2142_v18, 0.0 }
 0x1af   : > { %v1647_v7 = vadd.f32 %v1646_v27, %v1645_v21  ;;  %1610 = vst.msk [vmem:[%s2763_s13 + $0x58] sm:$0xff] %vm925_vm6, %v2144_v63  ;;  %v1748_v12 = vadd.f32 %v1747_v1, %v1746_v35  ;;  %v1713_v25 = vmul.f32 %v2144_v63, %v2144_v63  ;;  %v1652_v30 = vsel %vm925_vm6, %v2144_v63, 0.0 }
 0x1b0   : > { %v1749_v17 = vsel %vm925_vm6, %v1710_v15, 0.0  ;;  %1608 = vst.msk [vmem:[%s2763_s13 + $0x48] sm:$0xff] %vm925_vm6, %v2145_v57  ;;  %v1648_v52 = vsel %vm925_vm6, %v2145_v57, 0.0  ;;  %v1711_v19 = vmul.f32 %v2145_v57, %v2145_v57  ;;  %v1753_v32 = vsel %vm925_vm6, %v1712_v20, 0.0 }
 0x1b1   : > { %v1649_v16 = vadd.f32 %v1648_v52, %v1647_v7  ;;  %v1750_v54 = vadd.f32 %v1749_v17, %v1748_v12 }
 0x1b2   : > { %v1751_v4 = vsel %vm925_vm6, %v1711_v19, 0.0  ;;  %v2114_v24 = vpop.f32.mrb[12].mxu0 }
 0x1b3   : > { %v1651_v26 = vadd.f32 %v1650_v45, %v1649_v16  ;;  %v2146_v28 = vadd.f32 %v2114_v24, %v2750_v55  ;;  %v1488_v29 = vpop.f32.mrb[13].mxu0  ;;  %v1752_v10 = vadd.f32 %v1751_v4, %v1750_v54 }
 0x1b4   : > { %v2147_v50 = vadd.f32 %v1488_v29, %v2752_v6  ;;  %v2115_v31 = vpop.f32.mrb[14].mxu0  ;;  %v1755_v6 = vsel %vm925_vm6, %v1713_v25, 0.0 }
 0x1b5   : > { %1613 = vst.msk [vmem:[%s2763_s13 + $0x70] sm:$0xff] %vm925_vm6, %v2146_v28  ;;  %v1653_v33 = vadd.f32 %v1652_v30, %v1651_v26  ;;  %v2148_v34 = vadd.f32 %v2115_v31, %v2754_v8  ;;  %v1491_v37 = vpop.f32.mrb[15].mxu0  ;;  %v1754_v22 = vadd.f32 %v1753_v32, %v1752_v10  ;;  %v1716_v5 = vmul.f32 %v2146_v28, %v2146_v28 }
 0x1b6   : > { %1611 = vst.msk [vmem:[%s2763_s13 + $0x60] sm:$0xff] %vm925_vm6, %v2147_v50  ;;  %v1654_v55 = vsel %vm925_vm6, %v2147_v50, 0.0  ;;  %v1714_v38 = vmul.f32 %v2147_v50, %v2147_v50  ;;  %v2149_v51 = vadd.f32 %v1491_v37, %v2756_v9  ;;  %v1658_v23 = vsel %vm925_vm6, %v2146_v28, 0.0 }
 0x1b7   : > { %v1655_v39 = vadd.f32 %v1654_v55, %v1653_v33  ;;  %1614 = vst.msk [vmem:[%s2763_s13 + $0x78] sm:$0xff] %vm925_vm6, %v2148_v34  ;;  %v1756_v40 = vadd.f32 %v1755_v6, %v1754_v22  ;;  %v1717_v2 = vmul.f32 %v2148_v34, %v2148_v34  ;;  %v1660_v49 = vsel %vm925_vm6, %v2148_v34, 0.0 }
 0x1b8   : > { %v1757_v41 = vsel %vm925_vm6, %v1714_v38, 0.0  ;;  %1612 = vst.msk [vmem:[%s2763_s13 + $0x68] sm:$0xff] %vm925_vm6, %v2149_v51  ;;  %v1656_v8 = vsel %vm925_vm6, %v2149_v51, 0.0  ;;  %v1715_v42 = vmul.f32 %v2149_v51, %v2149_v51  ;;  %v1761_v11 = vsel %vm925_vm6, %v1716_v5, 0.0 }
 0x1b9   : > { %v1657_v44 = vadd.f32 %v1656_v8, %v1655_v39  ;;  %v1758_v53 = vadd.f32 %v1757_v41, %v1756_v40  ;;  %v1763_v18 = vsel %vm925_vm6, %v1717_v2, 0.0 }
 0x1ba   : > { %v1759_v9 = vsel %vm925_vm6, %v1715_v42, 0.0  ;;  %v2118_v46 = vpop.f32.mrb[16].mxu0 }
 0x1bb   : > { %v1659_v47 = vadd.f32 %v1658_v23, %v1657_v44  ;;  %v1504_v48 = vpop.f32.mrb[17].mxu0  ;;  %v1760_v14 = vadd.f32 %v1759_v9, %v1758_v53 }
 0x1bc   : > { %v2119_v43 = vpop.f32.mrb[18].mxu0 }
 0x1bd   : > { %v1661_v56 = vadd.f32 %v1660_v49, %v1659_v47  ;;  %v1507_v59 = vpop.f32.mrb[19].mxu0  ;;  %v1762_v60 = vadd.f32 %v1761_v11, %v1760_v14 }
 0x1bf   : > { %v1764_v36 = vadd.f32 %v1763_v18, %v1762_v60 }
 0x1c2   : > { %v2122_v58 = vpop.f32.mrb[20].mxu0 }
 0x1c3   : > { %v1520_v61 = vpop.f32.mrb[21].mxu0 }
 0x1c4   : > { %v2123_v62 = vpop.f32.mrb[22].mxu0 }
 0x1c5   : > { %v1523_v3 = vpop.f32.mrb[23].mxu0 }
 0x1c6   : > { %v2084_v0 = vpop.f32.mrb[16].mxu1 }
 0x1c7   : > { %v2150_v21 = vadd.f32 %v2118_v46, %v2084_v0  ;;  %v1332_v63 = vpop.f32.mrb[17].mxu1 }
 0x1c8   : > { %v2151_v13 = vadd.f32 %v1504_v48, %v1332_v63  ;;  %v2085_v35 = vpop.f32.mrb[18].mxu1 }
 0x1c9   : > { %1617 = vst.msk [vmem:[%s2763_s13 + $0x90] sm:$0xff] %vm925_vm6, %v2150_v21  ;;  %v2152_v27 = vadd.f32 %v2119_v43, %v2085_v35  ;;  %v1335_v15 = vpop.f32.mrb[19].mxu1  ;;  %v1720_v20 = vmul.f32 %v2150_v21, %v2150_v21  ;;  %v1666_v28 = vsel %vm925_vm6, %v2150_v21, 0.0 }
 0x1ca   : > { %v2126_v57 = vpop.f32.mrb[24].mxu0  ;;  %1615 = vst.msk [vmem:[%s2763_s13 + $0x80] sm:$0xff] %vm925_vm6, %v2151_v13  ;;  %v1662_v1 = vsel %vm925_vm6, %v2151_v13, 0.0  ;;  %v1718_v7 = vmul.f32 %v2151_v13, %v2151_v13  ;;  %v2153_v12 = vadd.f32 %v1507_v59, %v1335_v15 }
 0x1cb   : > { %v1536_v17 = vpop.f32.mrb[25].mxu0  ;;  %v1663_v52 = vadd.f32 %v1662_v1, %v1661_v56  ;;  %1618 = vst.msk [vmem:[%s2763_s13 + $0x98] sm:$0xff] %vm925_vm6, %v2152_v27  ;;  %v1721_v25 = vmul.f32 %v2152_v27, %v2152_v27  ;;  %v1769_v33 = vsel %vm925_vm6, %v1720_v20, 0.0  ;;  %v1668_v34 = vsel %vm925_vm6, %v2152_v27, 0.0 }
 0x1cc   : > { %v2127_v19 = vpop.f32.mrb[26].mxu0  ;;  %v1765_v16 = vsel %vm925_vm6, %v1718_v7, 0.0  ;;  %1616 = vst.msk [vmem:[%s2763_s13 + $0x88] sm:$0xff] %vm925_vm6, %v2153_v12  ;;  %v1664_v45 = vsel %vm925_vm6, %v2153_v12, 0.0  ;;  %v1719_v54 = vmul.f32 %v2153_v12, %v2153_v12 }
 0x1cd   : > { %v1539_v4 = vpop.f32.mrb[27].mxu0  ;;  %v1766_v24 = vadd.f32 %v1765_v16, %v1764_v36  ;;  %v1665_v26 = vadd.f32 %v1664_v45, %v1663_v52  ;;  %v1771_v55 = vsel %vm925_vm6, %v1721_v25, 0.0 }
 0x1ce   : > { %v1767_v29 = vsel %vm925_vm6, %v1719_v54, 0.0  ;;  %v2088_v30 = vpop.f32.mrb[20].mxu1 }
 0x1cf   : > { %v1667_v10 = vadd.f32 %v1666_v28, %v1665_v26  ;;  %v1768_v50 = vadd.f32 %v1767_v29, %v1766_v24  ;;  %v2154_v31 = vadd.f32 %v2122_v58, %v2088_v30  ;;  %v1348_v32 = vpop.f32.mrb[21].mxu1 }
 0x1d0   : > { %v2155_v37 = vadd.f32 %v1520_v61, %v1348_v32  ;;  %v2089_v22 = vpop.f32.mrb[22].mxu1 }
 0x1d1   : > { %v1770_v38 = vadd.f32 %v1769_v33, %v1768_v50  ;;  %1621 = vst.msk [vmem:[%s2763_s13 + $0xb0] sm:$0xff] %vm925_vm6, %v2154_v31  ;;  %v1669_v51 = vadd.f32 %v1668_v34, %v1667_v10  ;;  %v1351_v6 = vpop.f32.mrb[23].mxu1  ;;  %v2156_v8 = vadd.f32 %v2123_v62, %v2089_v22  ;;  %v1724_v47 = vmul.f32 %v2154_v31, %v2154_v31 }
 0x1d2   : > { %v2130_v39 = vpop.f32.mrb[28].mxu0  ;;  %1619 = vst.msk [vmem:[%s2763_s13 + $0xa0] sm:$0xff] %vm925_vm6, %v2155_v37  ;;  %v1670_v40 = vsel %vm925_vm6, %v2155_v37, 0.0  ;;  %v1722_v41 = vmul.f32 %v2155_v37, %v2155_v37  ;;  %v2157_v42 = vadd.f32 %v1523_v3, %v1351_v6  ;;  %v1674_v43 = vsel %vm925_vm6, %v2154_v31, 0.0 }
 0x1d3   : > { %v1552_v5 = vpop.f32.mrb[29].mxu0  ;;  %v1671_v44 = vadd.f32 %v1670_v40, %v1669_v51  ;;  %v1772_v23 = vadd.f32 %v1771_v55, %v1770_v38  ;;  %1622 = vst.msk [vmem:[%s2763_s13 + $0xb8] sm:$0xff] %vm925_vm6, %v2156_v8  ;;  %v1725_v56 = vmul.f32 %v2156_v8, %v2156_v8  ;;  %v1676_v58 = vsel %vm925_vm6, %v2156_v8, 0.0 }
 0x1d4   : > { %v2131_v53 = vpop.f32.mrb[30].mxu0  ;;  %v1773_v9 = vsel %vm925_vm6, %v1722_v41, 0.0  ;;  %1620 = vst.msk [vmem:[%s2763_s13 + $0xa8] sm:$0xff] %vm925_vm6, %v2157_v42  ;;  %v1672_v46 = vsel %vm925_vm6, %v2157_v42, 0.0  ;;  %v1723_v14 = vmul.f32 %v2157_v42, %v2157_v42  ;;  %v1777_v0 = vsel %vm925_vm6, %v1724_v47, 0.0 }
 0x1d5   : > { %v1555_v2 = vpop.f32.mrb[31].mxu0  ;;  %v1774_v48 = vadd.f32 %v1773_v9, %v1772_v23  ;;  %v1673_v49 = vadd.f32 %v1672_v46, %v1671_v44  ;;  %v1779_v1 = vsel %vm925_vm6, %v1725_v56, 0.0 }
 0x1d6   : > { %v2092_v11 = vpop.f32.mrb[24].mxu1  ;;  %v1775_v60 = vsel %vm925_vm6, %v1723_v14, 0.0 }
 0x1d7   : > { %v1675_v59 = vadd.f32 %v1674_v43, %v1673_v49  ;;  %v2158_v18 = vadd.f32 %v2126_v57, %v2092_v11  ;;  %v1364_v36 = vpop.f32.mrb[25].mxu1  ;;  %v1776_v61 = vadd.f32 %v1775_v60, %v1774_v48 }
 0x1d8   : > { %v2159_v62 = vadd.f32 %v1536_v17, %v1364_v36  ;;  %v2093_v3 = vpop.f32.mrb[26].mxu1 }
 0x1d9   : > { %1625 = vst.msk [vmem:[%s2763_s13 + $0xd0] sm:$0xff] %vm925_vm6, %v2158_v18  ;;  %v1677_v21 = vadd.f32 %v1676_v58, %v1675_v59  ;;  %v2160_v63 = vadd.f32 %v2127_v19, %v2093_v3  ;;  %v1367_v13 = vpop.f32.mrb[27].mxu1  ;;  %v1778_v35 = vadd.f32 %v1777_v0, %v1776_v61  ;;  %v1728_v20 = vmul.f32 %v2158_v18, %v2158_v18 }
 0x1da   : > { %1623 = vst.msk [vmem:[%s2763_s13 + $0xc0] sm:$0xff] %vm925_vm6, %v2159_v62  ;;  %v1678_v27 = vsel %vm925_vm6, %v2159_v62, 0.0  ;;  %v1726_v15 = vmul.f32 %v2159_v62, %v2159_v62  ;;  %v2161_v57 = vadd.f32 %v1539_v4, %v1367_v13  ;;  %v1682_v45 = vsel %vm925_vm6, %v2158_v18, 0.0 }
 0x1db   : > { %v1679_v7 = vadd.f32 %v1678_v27, %v1677_v21  ;;  %1626 = vst.msk [vmem:[%s2763_s13 + $0xd8] sm:$0xff] %vm925_vm6, %v2160_v63  ;;  %v1780_v12 = vadd.f32 %v1779_v1, %v1778_v35  ;;  %v1729_v25 = vmul.f32 %v2160_v63, %v2160_v63  ;;  %v1684_v30 = vsel %vm925_vm6, %v2160_v63, 0.0 }
 0x1dc   : > { %v1781_v17 = vsel %vm925_vm6, %v1726_v15, 0.0  ;;  %1624 = vst.msk [vmem:[%s2763_s13 + $0xc8] sm:$0xff] %vm925_vm6, %v2161_v57  ;;  %v1680_v52 = vsel %vm925_vm6, %v2161_v57, 0.0  ;;  %v1727_v19 = vmul.f32 %v2161_v57, %v2161_v57  ;;  %v1785_v32 = vsel %vm925_vm6, %v1728_v20, 0.0 }
 0x1dd   : > { %v1681_v16 = vadd.f32 %v1680_v52, %v1679_v7  ;;  %v1782_v54 = vadd.f32 %v1781_v17, %v1780_v12  ;;  %v1787_v6 = vsel %vm925_vm6, %v1729_v25, 0.0 }
 0x1de   : > { %v1783_v4 = vsel %vm925_vm6, %v1727_v19, 0.0  ;;  %v2096_v24 = vpop.f32.mrb[28].mxu1 }
 0x1df   : > { %v1683_v26 = vadd.f32 %v1682_v45, %v1681_v16  ;;  %v2162_v28 = vadd.f32 %v2130_v39, %v2096_v24  ;;  %v1380_v29 = vpop.f32.mrb[29].mxu1  ;;  %v1784_v10 = vadd.f32 %v1783_v4, %v1782_v54 }
 0x1e0   : > { %v2163_v50 = vadd.f32 %v1552_v5, %v1380_v29  ;;  %v2097_v31 = vpop.f32.mrb[30].mxu1 }
 0x1e1   : > { %1629 = vst.msk [vmem:[%s2763_s13 + $0xf0] sm:$0xff] %vm925_vm6, %v2162_v28  ;;  %v1685_v33 = vadd.f32 %v1684_v30, %v1683_v26  ;;  %v2164_v34 = vadd.f32 %v2131_v53, %v2097_v31  ;;  %v1383_v37 = vpop.f32.mrb[31].mxu1  ;;  %v1786_v22 = vadd.f32 %v1785_v32, %v1784_v10  ;;  %v1732_v5 = vmul.f32 %v2162_v28, %v2162_v28 }
 0x1e2   : > { %1627 = vst.msk [vmem:[%s2763_s13 + $0xe0] sm:$0xff] %vm925_vm6, %v2163_v50  ;;  %v1686_v55 = vsel %vm925_vm6, %v2163_v50, 0.0  ;;  %v1730_v38 = vmul.f32 %v2163_v50, %v2163_v50  ;;  %v2165_v51 = vadd.f32 %v1555_v2, %v1383_v37  ;;  %v1690_v23 = vsel %vm925_vm6, %v2162_v28, 0.0 }
 0x1e3   : > { %v1687_v39 = vadd.f32 %v1686_v55, %v1685_v33  ;;  %1630 = vst.msk [vmem:[%s2763_s13 + $0xf8] sm:$0xff] %vm925_vm6, %v2164_v34  ;;  %v1788_v40 = vadd.f32 %v1787_v6, %v1786_v22  ;;  %v1733_v46 = vmul.f32 %v2164_v34, %v2164_v34  ;;  %v1692_v47 = vsel %vm925_vm6, %v2164_v34, 0.0 }
 0x1e4   : > { %v1789_v41 = vsel %vm925_vm6, %v1730_v38, 0.0  ;;  %1628 = vst.msk [vmem:[%s2763_s13 + $0xe8] sm:$0xff] %vm925_vm6, %v2165_v51  ;;  %v1688_v8 = vsel %vm925_vm6, %v2165_v51, 0.0  ;;  %v1731_v42 = vmul.f32 %v2165_v51, %v2165_v51  ;;  %v1793_v49 = vsel %vm925_vm6, %v1732_v5, 0.0 }
 0x1e5   : > { %v1689_v44 = vadd.f32 %v1688_v8, %v1687_v39  ;;  %v1790_v53 = vadd.f32 %v1789_v41, %v1788_v40  ;;  %v1795_v11 = vsel %vm925_vm6, %v1733_v46, 0.0 }
 0x1e6   : > { %v1791_v9 = vsel %vm925_vm6, %v1731_v42, 0.0 }
 0x1e7   : > { %v1691_v2 = vadd.f32 %v1690_v23, %v1689_v44  ;;  %v1792_v48 = vadd.f32 %v1791_v9, %v1790_v53 }
 0x1e9   : > { %v1693_v14 = vadd.f32 %v1692_v47, %v1691_v2  ;;  %v1794_v43 = vadd.f32 %v1793_v49, %v1792_v48 }
 0x1eb   : > { %v1694_v56 = vrot.slane %v1693_v14, 4  ;;  %v1796_v59 = vadd.f32 %v1795_v11, %v1794_v43 }
 0x1ed   : > { %v1695_v60 = vadd.f32 %v1694_v56, %v1693_v14  ;;  %v1797_v18 = vrot.slane %v1796_v59, 4 }
 0x1ef   : > { %v1696_v36 = vrot.slane %v1695_v60, 2  ;;  %v1798_v58 = vadd.f32 %v1797_v18, %v1796_v59 }
 0x1f1   : > { %v1697_v61 = vadd.f32 %v1696_v36, %v1695_v60  ;;  %v1799_v62 = vrot.slane %v1798_v58, 2 }
 0x1f3   : > { %v1698_v3 = vrot.slane %v1697_v61, 1  ;;  %v1800_v0 = vadd.f32 %v1799_v62, %v1798_v58 }
 0x1f5   : > { %v1699_v21 = vadd.f32 %v1698_v3, %v1697_v61  ;;  %v1801_v63 = vrot.slane %v1800_v0, 1 }
 0x1f7   : > { %1701 = vst.msk [vmem:[%s238_s16] sm:$0x1] %vm1700_vm9, %v1699_v21  ;;  %v1802_v13 = vadd.f32 %v1801_v63, %v1800_v0 }
 0x1f9   : > { %1803 = vst.msk [vmem:[%s241_s21] sm:$0x1] %vm1700_vm9, %v1802_v13 }
 0x1fa PF: > { %s16_s18 = sadd.s32 1, %s2222_s18  }
 0x1fb   : > { %p13_p4 = scmp.ge.s32.totalorder %s16_s18, 4  }
 0x1fd   :  { %15 = sbr.rel (!%p13_p4) target bundleno = 1 (0x1), region = 88 }

</bundles_post_ra>
